<compile_context>
chip_gen: v7x
topology: tpu7x:2x2x1
jax: 0.10.0
libtpu: 0.0.40
codegen_flags: <defaults>
</compile_context>

<pallas_src>
import functools
import math

import jax
import jax.numpy as jnp
from jax.experimental import pallas as pl
from jax.experimental.pallas import tpu as pltpu

_VMEM = pl.BlockSpec(memory_space=pltpu.MemorySpace.VMEM)


def _round_up(x, m):
    return ((x + m - 1) // m) * m


# --------------------------- fused forward kernel ---------------------------

def _vit_kernel(patches_ref, pos_ref, w_patch_ref,
                w_qkv_ref, w_out_ref, w_mlp1_ref, w_mlp2_ref, vecs_ref,
                w_dense_ref, head_vecs_ref,
                out_ref, attn_ref, *, B, P, E, H, M, L):
    f32 = jnp.float32
    Dh = E // H
    scale = 1.0 / math.sqrt(Dh)
    inv_sqrt2 = 1.0 / math.sqrt(2.0)

    def layernorm(x, g, b):
        mean = jnp.mean(x, axis=-1, keepdims=True)
        var = jnp.mean(jnp.square(x - mean), axis=-1, keepdims=True)
        return (x - mean) * jax.lax.rsqrt(var + 1e-5) * g + b  # torch eps

    # Patch projection (bias-free Linear) fused with positional-embedding add.
    # TODO(synk): cast matmul operands to bf16 (f32 accumulate) on v6e/v7x once
    # the model is scaled; at E=32 the MXU is idle either way so keep f32.
    x = jnp.dot(patches_ref[...], w_patch_ref[...], preferred_element_type=f32)
    x = x + jnp.concatenate([pos_ref[...]] * B, axis=0)            # (B*P, E)

    for layer in range(L):                                         # static unroll
        ln1_g = vecs_ref[layer, 0:1, 0:E]
        ln1_b = vecs_ref[layer, 1:2, 0:E]
        ln2_g = vecs_ref[layer, 2:3, 0:E]
        ln2_b = vecs_ref[layer, 3:4, 0:E]
        b_out = vecs_ref[layer, 4:5, 0:E]
        b_mlp2 = vecs_ref[layer, 5:6, 0:E]
        b_mlp1 = vecs_ref[layer, 6:7, 0:M]
        b_qkv = vecs_ref[layer, 7:8, 0:3 * E]

        # ---- multi-head attention (sequence = B, attention batch = P) ----
        n1 = layernorm(x, ln1_g, ln1_b)
        qkv = jnp.dot(n1, w_qkv_ref[layer],
                      preferred_element_type=f32) + b_qkv          # (B*P, 3E)

        # per (sequence position b, head h) key/value slices, kept in registers
        k_h = [[qkv[b * P:(b + 1) * P, E + h * Dh:E + (h + 1) * Dh]
                for h in range(H)] for b in range(B)]
        v_h = [[qkv[b * P:(b + 1) * P, 2 * E + h * Dh:2 * E + (h + 1) * Dh]
                for h in range(H)] for b in range(B)]

        o_rows = []        # per query position b1: (P, E)
        attn_cols = []     # per query position b1: head-averaged (P, B)
        for b1 in range(B):
            q_b1 = qkv[b1 * P:(b1 + 1) * P, 0:E] * scale           # (P, E)
            head_outs = []
            attn_sum = None
            for h in range(H):
                q_bh = q_b1[:, h * Dh:(h + 1) * Dh]                # (P, Dh)
                # Scores vs every key position: VPU multiply + lane-reduce
                # (the MXU would be <1% occupied for these (4x16)x(16x4) dots).
                s = jnp.concatenate(
                    [jnp.sum(q_bh * k_h[b2][h], axis=-1, keepdims=True)
                     for b2 in range(B)], axis=-1)                 # (P, B)
                s = s - jnp.max(s, axis=-1, keepdims=True)
                e_s = jnp.exp(s)
                p_attn = e_s / jnp.sum(e_s, axis=-1, keepdims=True)
                o_h = None
                for b2 in range(B):
                    term = p_attn[:, b2:b2 + 1] * v_h[b2][h]       # (P, Dh)
                    o_h = term if o_h is None else o_h + term
                head_outs.append(o_h)
                attn_sum = p_attn if attn_sum is None else attn_sum + p_attn
            o_rows.append(jnp.concatenate(head_outs, axis=-1))     # (P, E)
            attn_cols.append(attn_sum * (1.0 / H))                 # (P, B)

        # Head-averaged attention weights, lane-packed as (P, B*B):
        # lane b1*B + b2 = weight of query b1 attending to key b2 (batch p).
        attn_ref[layer] = jnp.concatenate(attn_cols, axis=-1)

        attn_out = jnp.concatenate(o_rows, axis=0)                 # (B*P, E)
        x = x + jnp.dot(attn_out, w_out_ref[layer],
                        preferred_element_type=f32) + b_out        # + residual

        # ---- MLP (dropout is identity in eval mode) ----
        # TODO(synk): training-mode dropout (random masking) not reproduced.
        n2 = layernorm(x, ln2_g, ln2_b)
        h1 = jnp.dot(n2, w_mlp1_ref[layer],
                     preferred_element_type=f32) + b_mlp1
        h1 = 0.5 * h1 * (1.0 + jax.lax.erf(h1 * inv_sqrt2))        # exact GELU
        x = x + jnp.dot(h1, w_mlp2_ref[layer],
                        preferred_element_type=f32) + b_mlp2       # + residual

    # ---- classifier head: mean over patches -> dense -> final(1) -> sigmoid
    b_dense = head_vecs_ref[0:1, 0:E]                              # (1, E)
    w_final = head_vecs_ref[1:2, 0:E]                              # (1, E)
    b_final = head_vecs_ref[2:3, 0:1]                              # (1, 1)
    pooled = jnp.concatenate(
        [jnp.mean(x[b * P:(b + 1) * P, :], axis=0, keepdims=True)
         for b in range(B)], axis=0)                               # (B, E)
    hdr = jnp.dot(pooled, w_dense_ref[...],
                  preferred_element_type=f32) + b_dense            # (B, E)
    logit = jnp.sum(hdr * w_final, axis=-1, keepdims=True) + b_final
    out_ref[...] = jax.nn.sigmoid(logit)                           # (B, 1)


# ------------------------------- glue (JAX) --------------------------------

def patcher(images, patch_size):
    # exact re-implementation of Patcher.forward (unfold + permute + view)
    b, c, h, w = images.shape
    ph = pw = patch_size
    nh, nw = h // ph, w // pw
    patches = images.reshape(b, c, nh, ph, nw, pw)
    patches = patches.transpose(0, 2, 4, 3, 5, 1)   # (B, nH, nW, ph, pw, C)
    return patches.reshape(b, nh * nw, ph * pw * c)


def vision_transformer(params, images, cfg):
    B = images.shape[0]
    E, H, P = cfg["hidden_dim"], cfg["num_heads"], cfg["num_patches"]
    M, L = cfg["mlp_dim"], cfg["num_layers"]
    patches = patcher(images, cfg["patch_size"]).reshape(B * P, -1)

    # Pack every per-layer small vector into one lane-dense slab (L, 8, width).
    width = _round_up(max(128, 3 * E, M), 128)

    def row(v):
        v = v.astype(jnp.float32)
        return jnp.pad(v, (0, width - v.shape[0]))

    layers = params["layers"]
    vecs = jnp.stack([
        jnp.stack([row(lp["ln1_g"]), row(lp["ln1_b"]),
                   row(lp["ln2_g"]), row(lp["ln2_b"]),
                   row(lp["b_out"]), row(lp["b_mlp2"]),
                   row(lp["b_mlp1"]), row(lp["b_qkv"])])
        for lp in layers])                                         # (L, 8, width)
    w_qkv = jnp.stack([lp["w_qkv"] for lp in layers])              # (L, E, 3E)
    w_out = jnp.stack([lp["w_out"] for lp in layers])              # (L, E, E)
    w_mlp1 = jnp.stack([lp["w_mlp1"] for lp in layers])            # (L, E, M)
    w_mlp2 = jnp.stack([lp["w_mlp2"] for lp in layers])            # (L, M, E)
    head_vecs = jnp.stack([row(params["b_dense"]),
                           row(params["w_final"]),                 # used as (1,E)
                           row(params["b_final"])])                # (3, width)

    kernel = functools.partial(_vit_kernel, B=B, P=P, E=E, H=H, M=M, L=L)
    # Single fused pallas_call: all weights/activations (<1 MiB total) fit in
    # VMEM on every TPU generation, so no grid/tiling is needed at this size.
    # TODO(synk): when B*P grows, add a row-axis grid with
    # dimension_semantics=("parallel",) to use both v7x TensorCores and tile
    # the weight BlockSpecs against the smaller v7x / v5e scoped VMEM limits.
    out, attn = pl.pallas_call(
        kernel,
        out_shape=(jax.ShapeDtypeStruct((B, 1), jnp.float32),
                   jax.ShapeDtypeStruct((L, P, B * B), jnp.float32)),
        in_specs=[_VMEM] * 10,
        out_specs=(_VMEM, _VMEM),
    )(patches, params["pos_emb"], params["w_patch"],
      w_qkv, w_out, w_mlp1, w_mlp2, vecs,
      params["w_dense"], head_vecs)

    # (L, P, B*B) -> list of (P, B, B); row-major reshape is metadata-only.
    attn_list = [attn[l].reshape(P, B, B) for l in range(L)]
    return out, attn_list


# ----------------------------- parameter init ------------------------------

def init_params(key, cfg):
    E, M, P = cfg["hidden_dim"], cfg["mlp_dim"], cfg["num_patches"]
    PE = cfg["patching_elements"]

    def u(k, shape, scale):
        return jax.random.uniform(k, shape, jnp.float32, -scale, scale)

    keys = iter(jax.random.split(key, 8 * cfg["num_layers"] + 8))
    params = {
        # matches `weight.data.uniform_(0, 1)` on the positional embedding
        "pos_emb": jax.random.uniform(next(keys), (P, E), jnp.float32, 0.0, 1.0),
        "w_patch": u(next(keys), (PE, E), 1.0 / math.sqrt(PE)),
    }
    layers = []
    for _ in range(cfg["num_layers"]):
        layers.append({
            "ln1_g": jnp.ones((E,), jnp.float32),
            "ln1_b": jnp.zeros((E,), jnp.float32),
            "w_qkv": u(next(keys), (E, 3 * E), 1.0 / math.sqrt(E)),
            "b_qkv": jnp.zeros((3 * E,), jnp.float32),
            "w_out": u(next(keys), (E, E), 1.0 / math.sqrt(E)),
            "b_out": jnp.zeros((E,), jnp.float32),
            "ln2_g": jnp.ones((E,), jnp.float32),
            "ln2_b": jnp.zeros((E,), jnp.float32),
            "w_mlp1": u(next(keys), (E, M), 1.0 / math.sqrt(E)),
            "b_mlp1": u(next(keys), (M,), 1.0 / math.sqrt(E)),
            "w_mlp2": u(next(keys), (M, E), 1.0 / math.sqrt(M)),
            "b_mlp2": u(next(keys), (E,), 1.0 / math.sqrt(M)),
        })
    params["layers"] = layers
    params["w_dense"] = u(next(keys), (E, E), 1.0 / math.sqrt(E))
    params["b_dense"] = u(next(keys), (E,), 1.0 / math.sqrt(E))
    params["w_final"] = u(next(keys), (E,), 1.0 / math.sqrt(E))   # Linear(E,1) weight row
    params["b_final"] = u(next(keys), (1,), 1.0 / math.sqrt(E))
    return params


# ----------------------------------- main -----------------------------------

if __name__ == "__main__":
    cfg = dict(hidden_dim=32, mlp_dim=64, num_heads=2, num_layers=2,
               patch_size=4, image_size=16, channels=3, dropout_rate=0.1)
    cfg["num_patches"] = (cfg["image_size"] // cfg["patch_size"]) ** 2   # 16
    cfg["patching_elements"] = cfg["patch_size"] ** 2 * cfg["channels"]  # 48

    key = jax.random.PRNGKey(0)
    pkey, xkey = jax.random.split(key)
    params = init_params(pkey, cfg)
    x = jax.random.normal(
        xkey, (4, cfg["channels"], cfg["image_size"], cfg["image_size"]),
        jnp.float32)

    fwd = jax.jit(functools.partial(vision_transformer, cfg=cfg))
    out, attn_weights = fwd(params, x)
    jax.block_until_ready(out)
    jax.block_until_ready(attn_weights)

    assert out.shape == (4, 1)
    assert bool(jnp.all((out >= 0.0) & (out <= 1.0)))
    assert len(attn_weights) == cfg["num_layers"]
    assert attn_weights[0].shape == (cfg["num_patches"], 4, 4)
    # softmax rows of the head-averaged attention weights must sum to 1
    assert bool(jnp.allclose(attn_weights[0].sum(-1), 1.0, atol=1e-5))
    print("KERNEL_OK")
</pallas_src>

<mosaic_0001>
module attributes {stable_mosaic.version = 11 : i64} {
  func.func @_vit_kernel(%arg0: memref<64x48xf32, #tpu.memory_space<vmem>>, %arg1: memref<16x32xf32, #tpu.memory_space<vmem>>, %arg2: memref<48x32xf32, #tpu.memory_space<vmem>>, %arg3: memref<2x32x96xf32, #tpu.memory_space<vmem>>, %arg4: memref<2x32x32xf32, #tpu.memory_space<vmem>>, %arg5: memref<2x32x64xf32, #tpu.memory_space<vmem>>, %arg6: memref<2x64x32xf32, #tpu.memory_space<vmem>>, %arg7: memref<2x8x128xf32, #tpu.memory_space<vmem>>, %arg8: memref<32x32xf32, #tpu.memory_space<vmem>>, %arg9: memref<3x128xf32, #tpu.memory_space<vmem>>, %arg10: memref<4x1xf32, #tpu.memory_space<vmem>>, %arg11: memref<2x16x16xf32, #tpu.memory_space<vmem>>) attributes {dimension_semantics = [], scalar_prefetch = 0 : i64, scratch_operands = 0 : i64, tpu.core_type = #tpu.core_type<tc>} {
    %c0 = arith.constant 0 : index
    %c0_0 = arith.constant 0 : index
    %0 = vector.load %arg0[%c0, %c0_0] : memref<64x48xf32, #tpu.memory_space<vmem>>, vector<64x48xf32>
    %c0_1 = arith.constant 0 : index
    %c0_2 = arith.constant 0 : index
    %1 = vector.load %arg2[%c0_1, %c0_2] : memref<48x32xf32, #tpu.memory_space<vmem>>, vector<48x32xf32>
    %cst = arith.constant dense<0.000000e+00> : vector<64x32xf32>
    %2 = tpu.matmul %0, %1, %cst {dimension_numbers = #tpu.dot_dimension_numbers<[1], [0], [0], [1], [0, 0, 1, 1], [], []>} : vector<64x48xf32>, vector<48x32xf32>, vector<64x32xf32> -> vector<64x32xf32>
    %c0_3 = arith.constant 0 : index
    %c0_4 = arith.constant 0 : index
    %3 = vector.load %arg1[%c0_3, %c0_4] : memref<16x32xf32, #tpu.memory_space<vmem>>, vector<16x32xf32>
    %4 = tpu.concatenate %3, %3, %3, %3 in 0 : vector<16x32xf32>, vector<16x32xf32>, vector<16x32xf32>, vector<16x32xf32> -> vector<64x32xf32>
    %5 = arith.addf %2, %4 : vector<64x32xf32>
    %c0_5 = arith.constant 0 : index
    %c0_6 = arith.constant 0 : index
    %c0_7 = arith.constant 0 : index
    %6 = vector.load %arg7[%c0_5, %c0_6, %c0_7] : memref<2x8x128xf32, #tpu.memory_space<vmem>>, vector<1x1x32xf32>
    %7 = vector.shape_cast %6 : vector<1x1x32xf32> to vector<1x32xf32>
    %c0_8 = arith.constant 0 : index
    %c1 = arith.constant 1 : index
    %c0_9 = arith.constant 0 : index
    %8 = vector.load %arg7[%c0_8, %c1, %c0_9] : memref<2x8x128xf32, #tpu.memory_space<vmem>>, vector<1x1x32xf32>
    %9 = vector.shape_cast %8 : vector<1x1x32xf32> to vector<1x32xf32>
    %c0_10 = arith.constant 0 : index
    %c2 = arith.constant 2 : index
    %c0_11 = arith.constant 0 : index
    %10 = vector.load %arg7[%c0_10, %c2, %c0_11] : memref<2x8x128xf32, #tpu.memory_space<vmem>>, vector<1x1x32xf32>
    %11 = vector.shape_cast %10 : vector<1x1x32xf32> to vector<1x32xf32>
    %c0_12 = arith.constant 0 : index
    %c3 = arith.constant 3 : index
    %c0_13 = arith.constant 0 : index
    %12 = vector.load %arg7[%c0_12, %c3, %c0_13] : memref<2x8x128xf32, #tpu.memory_space<vmem>>, vector<1x1x32xf32>
    %13 = vector.shape_cast %12 : vector<1x1x32xf32> to vector<1x32xf32>
    %c0_14 = arith.constant 0 : index
    %c4 = arith.constant 4 : index
    %c0_15 = arith.constant 0 : index
    %14 = vector.load %arg7[%c0_14, %c4, %c0_15] : memref<2x8x128xf32, #tpu.memory_space<vmem>>, vector<1x1x32xf32>
    %15 = vector.shape_cast %14 : vector<1x1x32xf32> to vector<1x32xf32>
    %c0_16 = arith.constant 0 : index
    %c5 = arith.constant 5 : index
    %c0_17 = arith.constant 0 : index
    %16 = vector.load %arg7[%c0_16, %c5, %c0_17] : memref<2x8x128xf32, #tpu.memory_space<vmem>>, vector<1x1x32xf32>
    %17 = vector.shape_cast %16 : vector<1x1x32xf32> to vector<1x32xf32>
    %c0_18 = arith.constant 0 : index
    %c6 = arith.constant 6 : index
    %c0_19 = arith.constant 0 : index
    %18 = vector.load %arg7[%c0_18, %c6, %c0_19] : memref<2x8x128xf32, #tpu.memory_space<vmem>>, vector<1x1x64xf32>
    %19 = vector.shape_cast %18 : vector<1x1x64xf32> to vector<1x64xf32>
    %c0_20 = arith.constant 0 : index
    %c7 = arith.constant 7 : index
    %c0_21 = arith.constant 0 : index
    %20 = vector.load %arg7[%c0_20, %c7, %c0_21] : memref<2x8x128xf32, #tpu.memory_space<vmem>>, vector<1x1x96xf32>
    %21 = vector.shape_cast %20 : vector<1x1x96xf32> to vector<1x96xf32>
    %cst_22 = arith.constant dense<0.000000e+00> : vector<64xf32>
    %22 = vector.multi_reduction <add>, %5, %cst_22 [1] : vector<64x32xf32> to vector<64xf32>
    %23 = vector.shape_cast %22 : vector<64xf32> to vector<64x1xf32>
    %cst_23 = arith.constant 3.200000e+01 : f32
    %24 = vector.broadcast %cst_23 : f32 to vector<64x1xf32>
    %25 = arith.divf %23, %24 : vector<64x1xf32>
    %26 = vector.broadcast %25 : vector<64x1xf32> to vector<64x32xf32>
    %27 = arith.subf %5, %26 : vector<64x32xf32>
    %28 = arith.mulf %27, %27 : vector<64x32xf32>
    %cst_24 = arith.constant dense<0.000000e+00> : vector<64xf32>
    %29 = vector.multi_reduction <add>, %28, %cst_24 [1] : vector<64x32xf32> to vector<64xf32>
    %30 = vector.shape_cast %29 : vector<64xf32> to vector<64x1xf32>
    %cst_25 = arith.constant 3.200000e+01 : f32
    %31 = vector.broadcast %cst_25 : f32 to vector<64x1xf32>
    %32 = arith.divf %30, %31 : vector<64x1xf32>
    %33 = vector.broadcast %25 : vector<64x1xf32> to vector<64x32xf32>
    %34 = arith.subf %5, %33 : vector<64x32xf32>
    %cst_26 = arith.constant 9.99999974E-6 : f32
    %35 = vector.broadcast %cst_26 : f32 to vector<64x1xf32>
    %36 = arith.addf %32, %35 : vector<64x1xf32>
    %37 = math.rsqrt %36 : vector<64x1xf32>
    %38 = vector.broadcast %37 : vector<64x1xf32> to vector<64x32xf32>
    %39 = arith.mulf %34, %38 : vector<64x32xf32>
    %40 = vector.broadcast %7 : vector<1x32xf32> to vector<64x32xf32>
    %41 = arith.mulf %39, %40 : vector<64x32xf32>
    %42 = vector.broadcast %9 : vector<1x32xf32> to vector<64x32xf32>
    %43 = arith.addf %41, %42 : vector<64x32xf32>
    %c0_27 = arith.constant 0 : index
    %c0_28 = arith.constant 0 : index
    %c0_29 = arith.constant 0 : index
    %44 = vector.load %arg3[%c0_27, %c0_28, %c0_29] : memref<2x32x96xf32, #tpu.memory_space<vmem>>, vector<1x32x96xf32>
    %45 = vector.shape_cast %44 : vector<1x32x96xf32> to vector<32x96xf32>
    %cst_30 = arith.constant dense<0.000000e+00> : vector<64x96xf32>
    %46 = tpu.matmul %43, %45, %cst_30 {dimension_numbers = #tpu.dot_dimension_numbers<[1], [0], [0], [1], [0, 0, 1, 1], [], []>} : vector<64x32xf32>, vector<32x96xf32>, vector<64x96xf32> -> vector<64x96xf32>
    %47 = vector.broadcast %21 : vector<1x96xf32> to vector<64x96xf32>
    %48 = arith.addf %46, %47 : vector<64x96xf32>
    %49 = vector.extract_strided_slice %48 {offsets = [0, 32], sizes = [16, 16], strides = [1, 1]} : vector<64x96xf32> to vector<16x16xf32>
    %50 = vector.extract_strided_slice %48 {offsets = [0, 48], sizes = [16, 16], strides = [1, 1]} : vector<64x96xf32> to vector<16x16xf32>
    %51 = vector.extract_strided_slice %48 {offsets = [16, 32], sizes = [16, 16], strides = [1, 1]} : vector<64x96xf32> to vector<16x16xf32>
    %52 = vector.extract_strided_slice %48 {offsets = [16, 48], sizes = [16, 16], strides = [1, 1]} : vector<64x96xf32> to vector<16x16xf32>
    %53 = vector.extract_strided_slice %48 {offsets = [32, 32], sizes = [16, 16], strides = [1, 1]} : vector<64x96xf32> to vector<16x16xf32>
    %54 = vector.extract_strided_slice %48 {offsets = [32, 48], sizes = [16, 16], strides = [1, 1]} : vector<64x96xf32> to vector<16x16xf32>
    %55 = vector.extract_strided_slice %48 {offsets = [48, 32], sizes = [16, 16], strides = [1, 1]} : vector<64x96xf32> to vector<16x16xf32>
    %56 = vector.extract_strided_slice %48 {offsets = [48, 48], sizes = [16, 16], strides = [1, 1]} : vector<64x96xf32> to vector<16x16xf32>
    %57 = vector.extract_strided_slice %48 {offsets = [0, 64], sizes = [16, 16], strides = [1, 1]} : vector<64x96xf32> to vector<16x16xf32>
    %58 = vector.extract_strided_slice %48 {offsets = [0, 80], sizes = [16, 16], strides = [1, 1]} : vector<64x96xf32> to vector<16x16xf32>
    %59 = vector.extract_strided_slice %48 {offsets = [16, 64], sizes = [16, 16], strides = [1, 1]} : vector<64x96xf32> to vector<16x16xf32>
    %60 = vector.extract_strided_slice %48 {offsets = [16, 80], sizes = [16, 16], strides = [1, 1]} : vector<64x96xf32> to vector<16x16xf32>
    %61 = vector.extract_strided_slice %48 {offsets = [32, 64], sizes = [16, 16], strides = [1, 1]} : vector<64x96xf32> to vector<16x16xf32>
    %62 = vector.extract_strided_slice %48 {offsets = [32, 80], sizes = [16, 16], strides = [1, 1]} : vector<64x96xf32> to vector<16x16xf32>
    %63 = vector.extract_strided_slice %48 {offsets = [48, 64], sizes = [16, 16], strides = [1, 1]} : vector<64x96xf32> to vector<16x16xf32>
    %64 = vector.extract_strided_slice %48 {offsets = [48, 80], sizes = [16, 16], strides = [1, 1]} : vector<64x96xf32> to vector<16x16xf32>
    %65 = vector.extract_strided_slice %48 {offsets = [0, 0], sizes = [16, 32], strides = [1, 1]} : vector<64x96xf32> to vector<16x32xf32>
    %cst_31 = arith.constant 2.500000e-01 : f32
    %66 = vector.broadcast %cst_31 : f32 to vector<16x32xf32>
    %67 = arith.mulf %65, %66 : vector<16x32xf32>
    %68 = vector.extract_strided_slice %67 {offsets = [0, 0], sizes = [16, 16], strides = [1, 1]} : vector<16x32xf32> to vector<16x16xf32>
    %69 = arith.mulf %68, %49 : vector<16x16xf32>
    %cst_32 = arith.constant dense<0.000000e+00> : vector<16xf32>
    %70 = vector.multi_reduction <add>, %69, %cst_32 [1] : vector<16x16xf32> to vector<16xf32>
    %71 = vector.shape_cast %70 : vector<16xf32> to vector<16x1xf32>
    %72 = arith.mulf %68, %51 : vector<16x16xf32>
    %cst_33 = arith.constant dense<0.000000e+00> : vector<16xf32>
    %73 = vector.multi_reduction <add>, %72, %cst_33 [1] : vector<16x16xf32> to vector<16xf32>
    %74 = vector.shape_cast %73 : vector<16xf32> to vector<16x1xf32>
    %75 = arith.mulf %68, %53 : vector<16x16xf32>
    %cst_34 = arith.constant dense<0.000000e+00> : vector<16xf32>
    %76 = vector.multi_reduction <add>, %75, %cst_34 [1] : vector<16x16xf32> to vector<16xf32>
    %77 = vector.shape_cast %76 : vector<16xf32> to vector<16x1xf32>
    %78 = arith.mulf %68, %55 : vector<16x16xf32>
    %cst_35 = arith.constant dense<0.000000e+00> : vector<16xf32>
    %79 = vector.multi_reduction <add>, %78, %cst_35 [1] : vector<16x16xf32> to vector<16xf32>
    %80 = vector.shape_cast %79 : vector<16xf32> to vector<16x1xf32>
    %81 = tpu.concatenate %71, %74, %77, %80 in 1 : vector<16x1xf32>, vector<16x1xf32>, vector<16x1xf32>, vector<16x1xf32> -> vector<16x4xf32>
    %cst_36 = arith.constant dense<0xFF800000> : vector<16xf32>
    %82 = vector.multi_reduction <maximumf>, %81, %cst_36 [1] : vector<16x4xf32> to vector<16xf32>
    %83 = vector.shape_cast %82 : vector<16xf32> to vector<16x1xf32>
    %84 = vector.broadcast %83 : vector<16x1xf32> to vector<16x4xf32>
    %85 = arith.subf %81, %84 : vector<16x4xf32>
    %86 = math.exp %85 : vector<16x4xf32>
    %cst_37 = arith.constant dense<0.000000e+00> : vector<16xf32>
    %87 = vector.multi_reduction <add>, %86, %cst_37 [1] : vector<16x4xf32> to vector<16xf32>
    %88 = vector.shape_cast %87 : vector<16xf32> to vector<16x1xf32>
    %89 = vector.broadcast %88 : vector<16x1xf32> to vector<16x4xf32>
    %90 = arith.divf %86, %89 : vector<16x4xf32>
    %91 = vector.extract_strided_slice %90 {offsets = [0, 0], sizes = [16, 1], strides = [1, 1]} : vector<16x4xf32> to vector<16x1xf32>
    %92 = vector.broadcast %91 : vector<16x1xf32> to vector<16x16xf32>
    %93 = arith.mulf %92, %57 : vector<16x16xf32>
    %94 = vector.extract_strided_slice %90 {offsets = [0, 1], sizes = [16, 1], strides = [1, 1]} : vector<16x4xf32> to vector<16x1xf32>
    %95 = vector.broadcast %94 : vector<16x1xf32> to vector<16x16xf32>
    %96 = arith.mulf %95, %59 : vector<16x16xf32>
    %97 = arith.addf %93, %96 : vector<16x16xf32>
    %98 = vector.extract_strided_slice %90 {offsets = [0, 2], sizes = [16, 1], strides = [1, 1]} : vector<16x4xf32> to vector<16x1xf32>
    %99 = vector.broadcast %98 : vector<16x1xf32> to vector<16x16xf32>
    %100 = arith.mulf %99, %61 : vector<16x16xf32>
    %101 = arith.addf %97, %100 : vector<16x16xf32>
    %102 = vector.extract_strided_slice %90 {offsets = [0, 3], sizes = [16, 1], strides = [1, 1]} : vector<16x4xf32> to vector<16x1xf32>
    %103 = vector.broadcast %102 : vector<16x1xf32> to vector<16x16xf32>
    %104 = arith.mulf %103, %63 : vector<16x16xf32>
    %105 = arith.addf %101, %104 : vector<16x16xf32>
    %106 = vector.extract_strided_slice %67 {offsets = [0, 16], sizes = [16, 16], strides = [1, 1]} : vector<16x32xf32> to vector<16x16xf32>
    %107 = arith.mulf %106, %50 : vector<16x16xf32>
    %cst_38 = arith.constant dense<0.000000e+00> : vector<16xf32>
    %108 = vector.multi_reduction <add>, %107, %cst_38 [1] : vector<16x16xf32> to vector<16xf32>
    %109 = vector.shape_cast %108 : vector<16xf32> to vector<16x1xf32>
    %110 = arith.mulf %106, %52 : vector<16x16xf32>
    %cst_39 = arith.constant dense<0.000000e+00> : vector<16xf32>
    %111 = vector.multi_reduction <add>, %110, %cst_39 [1] : vector<16x16xf32> to vector<16xf32>
    %112 = vector.shape_cast %111 : vector<16xf32> to vector<16x1xf32>
    %113 = arith.mulf %106, %54 : vector<16x16xf32>
    %cst_40 = arith.constant dense<0.000000e+00> : vector<16xf32>
    %114 = vector.multi_reduction <add>, %113, %cst_40 [1] : vector<16x16xf32> to vector<16xf32>
    %115 = vector.shape_cast %114 : vector<16xf32> to vector<16x1xf32>
    %116 = arith.mulf %106, %56 : vector<16x16xf32>
    %cst_41 = arith.constant dense<0.000000e+00> : vector<16xf32>
    %117 = vector.multi_reduction <add>, %116, %cst_41 [1] : vector<16x16xf32> to vector<16xf32>
    %118 = vector.shape_cast %117 : vector<16xf32> to vector<16x1xf32>
    %119 = tpu.concatenate %109, %112, %115, %118 in 1 : vector<16x1xf32>, vector<16x1xf32>, vector<16x1xf32>, vector<16x1xf32> -> vector<16x4xf32>
    %cst_42 = arith.constant dense<0xFF800000> : vector<16xf32>
    %120 = vector.multi_reduction <maximumf>, %119, %cst_42 [1] : vector<16x4xf32> to vector<16xf32>
    %121 = vector.shape_cast %120 : vector<16xf32> to vector<16x1xf32>
    %122 = vector.broadcast %121 : vector<16x1xf32> to vector<16x4xf32>
    %123 = arith.subf %119, %122 : vector<16x4xf32>
    %124 = math.exp %123 : vector<16x4xf32>
    %cst_43 = arith.constant dense<0.000000e+00> : vector<16xf32>
    %125 = vector.multi_reduction <add>, %124, %cst_43 [1] : vector<16x4xf32> to vector<16xf32>
    %126 = vector.shape_cast %125 : vector<16xf32> to vector<16x1xf32>
    %127 = vector.broadcast %126 : vector<16x1xf32> to vector<16x4xf32>
    %128 = arith.divf %124, %127 : vector<16x4xf32>
    %129 = vector.extract_strided_slice %128 {offsets = [0, 0], sizes = [16, 1], strides = [1, 1]} : vector<16x4xf32> to vector<16x1xf32>
    %130 = vector.broadcast %129 : vector<16x1xf32> to vector<16x16xf32>
    %131 = arith.mulf %130, %58 : vector<16x16xf32>
    %132 = vector.extract_strided_slice %128 {offsets = [0, 1], sizes = [16, 1], strides = [1, 1]} : vector<16x4xf32> to vector<16x1xf32>
    %133 = vector.broadcast %132 : vector<16x1xf32> to vector<16x16xf32>
    %134 = arith.mulf %133, %60 : vector<16x16xf32>
    %135 = arith.addf %131, %134 : vector<16x16xf32>
    %136 = vector.extract_strided_slice %128 {offsets = [0, 2], sizes = [16, 1], strides = [1, 1]} : vector<16x4xf32> to vector<16x1xf32>
    %137 = vector.broadcast %136 : vector<16x1xf32> to vector<16x16xf32>
    %138 = arith.mulf %137, %62 : vector<16x16xf32>
    %139 = arith.addf %135, %138 : vector<16x16xf32>
    %140 = vector.extract_strided_slice %128 {offsets = [0, 3], sizes = [16, 1], strides = [1, 1]} : vector<16x4xf32> to vector<16x1xf32>
    %141 = vector.broadcast %140 : vector<16x1xf32> to vector<16x16xf32>
    %142 = arith.mulf %141, %64 : vector<16x16xf32>
    %143 = arith.addf %139, %142 : vector<16x16xf32>
    %144 = arith.addf %90, %128 : vector<16x4xf32>
    %145 = tpu.concatenate %105, %143 in 1 : vector<16x16xf32>, vector<16x16xf32> -> vector<16x32xf32>
    %cst_44 = arith.constant 5.000000e-01 : f32
    %146 = vector.broadcast %cst_44 : f32 to vector<16x4xf32>
    %147 = arith.mulf %144, %146 : vector<16x4xf32>
    %148 = vector.extract_strided_slice %48 {offsets = [16, 0], sizes = [16, 32], strides = [1, 1]} : vector<64x96xf32> to vector<16x32xf32>
    %cst_45 = arith.constant 2.500000e-01 : f32
    %149 = vector.broadcast %cst_45 : f32 to vector<16x32xf32>
    %150 = arith.mulf %148, %149 : vector<16x32xf32>
    %151 = vector.extract_strided_slice %150 {offsets = [0, 0], sizes = [16, 16], strides = [1, 1]} : vector<16x32xf32> to vector<16x16xf32>
    %152 = arith.mulf %151, %49 : vector<16x16xf32>
    %cst_46 = arith.constant dense<0.000000e+00> : vector<16xf32>
    %153 = vector.multi_reduction <add>, %152, %cst_46 [1] : vector<16x16xf32> to vector<16xf32>
    %154 = vector.shape_cast %153 : vector<16xf32> to vector<16x1xf32>
    %155 = arith.mulf %151, %51 : vector<16x16xf32>
    %cst_47 = arith.constant dense<0.000000e+00> : vector<16xf32>
    %156 = vector.multi_reduction <add>, %155, %cst_47 [1] : vector<16x16xf32> to vector<16xf32>
    %157 = vector.shape_cast %156 : vector<16xf32> to vector<16x1xf32>
    %158 = arith.mulf %151, %53 : vector<16x16xf32>
    %cst_48 = arith.constant dense<0.000000e+00> : vector<16xf32>
    %159 = vector.multi_reduction <add>, %158, %cst_48 [1] : vector<16x16xf32> to vector<16xf32>
    %160 = vector.shape_cast %159 : vector<16xf32> to vector<16x1xf32>
    %161 = arith.mulf %151, %55 : vector<16x16xf32>
    %cst_49 = arith.constant dense<0.000000e+00> : vector<16xf32>
    %162 = vector.multi_reduction <add>, %161, %cst_49 [1] : vector<16x16xf32> to vector<16xf32>
    %163 = vector.shape_cast %162 : vector<16xf32> to vector<16x1xf32>
    %164 = tpu.concatenate %154, %157, %160, %163 in 1 : vector<16x1xf32>, vector<16x1xf32>, vector<16x1xf32>, vector<16x1xf32> -> vector<16x4xf32>
    %cst_50 = arith.constant dense<0xFF800000> : vector<16xf32>
    %165 = vector.multi_reduction <maximumf>, %164, %cst_50 [1] : vector<16x4xf32> to vector<16xf32>
    %166 = vector.shape_cast %165 : vector<16xf32> to vector<16x1xf32>
    %167 = vector.broadcast %166 : vector<16x1xf32> to vector<16x4xf32>
    %168 = arith.subf %164, %167 : vector<16x4xf32>
    %169 = math.exp %168 : vector<16x4xf32>
    %cst_51 = arith.constant dense<0.000000e+00> : vector<16xf32>
    %170 = vector.multi_reduction <add>, %169, %cst_51 [1] : vector<16x4xf32> to vector<16xf32>
    %171 = vector.shape_cast %170 : vector<16xf32> to vector<16x1xf32>
    %172 = vector.broadcast %171 : vector<16x1xf32> to vector<16x4xf32>
    %173 = arith.divf %169, %172 : vector<16x4xf32>
    %174 = vector.extract_strided_slice %173 {offsets = [0, 0], sizes = [16, 1], strides = [1, 1]} : vector<16x4xf32> to vector<16x1xf32>
    %175 = vector.broadcast %174 : vector<16x1xf32> to vector<16x16xf32>
    %176 = arith.mulf %175, %57 : vector<16x16xf32>
    %177 = vector.extract_strided_slice %173 {offsets = [0, 1], sizes = [16, 1], strides = [1, 1]} : vector<16x4xf32> to vector<16x1xf32>
    %178 = vector.broadcast %177 : vector<16x1xf32> to vector<16x16xf32>
    %179 = arith.mulf %178, %59 : vector<16x16xf32>
    %180 = arith.addf %176, %179 : vector<16x16xf32>
    %181 = vector.extract_strided_slice %173 {offsets = [0, 2], sizes = [16, 1], strides = [1, 1]} : vector<16x4xf32> to vector<16x1xf32>
    %182 = vector.broadcast %181 : vector<16x1xf32> to vector<16x16xf32>
    %183 = arith.mulf %182, %61 : vector<16x16xf32>
    %184 = arith.addf %180, %183 : vector<16x16xf32>
    %185 = vector.extract_strided_slice %173 {offsets = [0, 3], sizes = [16, 1], strides = [1, 1]} : vector<16x4xf32> to vector<16x1xf32>
    %186 = vector.broadcast %185 : vector<16x1xf32> to vector<16x16xf32>
    %187 = arith.mulf %186, %63 : vector<16x16xf32>
    %188 = arith.addf %184, %187 : vector<16x16xf32>
    %189 = vector.extract_strided_slice %150 {offsets = [0, 16], sizes = [16, 16], strides = [1, 1]} : vector<16x32xf32> to vector<16x16xf32>
    %190 = arith.mulf %189, %50 : vector<16x16xf32>
    %cst_52 = arith.constant dense<0.000000e+00> : vector<16xf32>
    %191 = vector.multi_reduction <add>, %190, %cst_52 [1] : vector<16x16xf32> to vector<16xf32>
    %192 = vector.shape_cast %191 : vector<16xf32> to vector<16x1xf32>
    %193 = arith.mulf %189, %52 : vector<16x16xf32>
    %cst_53 = arith.constant dense<0.000000e+00> : vector<16xf32>
    %194 = vector.multi_reduction <add>, %193, %cst_53 [1] : vector<16x16xf32> to vector<16xf32>
    %195 = vector.shape_cast %194 : vector<16xf32> to vector<16x1xf32>
    %196 = arith.mulf %189, %54 : vector<16x16xf32>
    %cst_54 = arith.constant dense<0.000000e+00> : vector<16xf32>
    %197 = vector.multi_reduction <add>, %196, %cst_54 [1] : vector<16x16xf32> to vector<16xf32>
    %198 = vector.shape_cast %197 : vector<16xf32> to vector<16x1xf32>
    %199 = arith.mulf %189, %56 : vector<16x16xf32>
    %cst_55 = arith.constant dense<0.000000e+00> : vector<16xf32>
    %200 = vector.multi_reduction <add>, %199, %cst_55 [1] : vector<16x16xf32> to vector<16xf32>
    %201 = vector.shape_cast %200 : vector<16xf32> to vector<16x1xf32>
    %202 = tpu.concatenate %192, %195, %198, %201 in 1 : vector<16x1xf32>, vector<16x1xf32>, vector<16x1xf32>, vector<16x1xf32> -> vector<16x4xf32>
    %cst_56 = arith.constant dense<0xFF800000> : vector<16xf32>
    %203 = vector.multi_reduction <maximumf>, %202, %cst_56 [1] : vector<16x4xf32> to vector<16xf32>
    %204 = vector.shape_cast %203 : vector<16xf32> to vector<16x1xf32>
    %205 = vector.broadcast %204 : vector<16x1xf32> to vector<16x4xf32>
    %206 = arith.subf %202, %205 : vector<16x4xf32>
    %207 = math.exp %206 : vector<16x4xf32>
    %cst_57 = arith.constant dense<0.000000e+00> : vector<16xf32>
    %208 = vector.multi_reduction <add>, %207, %cst_57 [1] : vector<16x4xf32> to vector<16xf32>
    %209 = vector.shape_cast %208 : vector<16xf32> to vector<16x1xf32>
    %210 = vector.broadcast %209 : vector<16x1xf32> to vector<16x4xf32>
    %211 = arith.divf %207, %210 : vector<16x4xf32>
    %212 = vector.extract_strided_slice %211 {offsets = [0, 0], sizes = [16, 1], strides = [1, 1]} : vector<16x4xf32> to vector<16x1xf32>
    %213 = vector.broadcast %212 : vector<16x1xf32> to vector<16x16xf32>
    %214 = arith.mulf %213, %58 : vector<16x16xf32>
    %215 = vector.extract_strided_slice %211 {offsets = [0, 1], sizes = [16, 1], strides = [1, 1]} : vector<16x4xf32> to vector<16x1xf32>
    %216 = vector.broadcast %215 : vector<16x1xf32> to vector<16x16xf32>
    %217 = arith.mulf %216, %60 : vector<16x16xf32>
    %218 = arith.addf %214, %217 : vector<16x16xf32>
    %219 = vector.extract_strided_slice %211 {offsets = [0, 2], sizes = [16, 1], strides = [1, 1]} : vector<16x4xf32> to vector<16x1xf32>
    %220 = vector.broadcast %219 : vector<16x1xf32> to vector<16x16xf32>
    %221 = arith.mulf %220, %62 : vector<16x16xf32>
    %222 = arith.addf %218, %221 : vector<16x16xf32>
    %223 = vector.extract_strided_slice %211 {offsets = [0, 3], sizes = [16, 1], strides = [1, 1]} : vector<16x4xf32> to vector<16x1xf32>
    %224 = vector.broadcast %223 : vector<16x1xf32> to vector<16x16xf32>
    %225 = arith.mulf %224, %64 : vector<16x16xf32>
    %226 = arith.addf %222, %225 : vector<16x16xf32>
    %227 = arith.addf %173, %211 : vector<16x4xf32>
    %228 = tpu.concatenate %188, %226 in 1 : vector<16x16xf32>, vector<16x16xf32> -> vector<16x32xf32>
    %cst_58 = arith.constant 5.000000e-01 : f32
    %229 = vector.broadcast %cst_58 : f32 to vector<16x4xf32>
    %230 = arith.mulf %227, %229 : vector<16x4xf32>
    %231 = vector.extract_strided_slice %48 {offsets = [32, 0], sizes = [16, 32], strides = [1, 1]} : vector<64x96xf32> to vector<16x32xf32>
    %cst_59 = arith.constant 2.500000e-01 : f32
    %232 = vector.broadcast %cst_59 : f32 to vector<16x32xf32>
    %233 = arith.mulf %231, %232 : vector<16x32xf32>
    %234 = vector.extract_strided_slice %233 {offsets = [0, 0], sizes = [16, 16], strides = [1, 1]} : vector<16x32xf32> to vector<16x16xf32>
    %235 = arith.mulf %234, %49 : vector<16x16xf32>
    %cst_60 = arith.constant dense<0.000000e+00> : vector<16xf32>
    %236 = vector.multi_reduction <add>, %235, %cst_60 [1] : vector<16x16xf32> to vector<16xf32>
    %237 = vector.shape_cast %236 : vector<16xf32> to vector<16x1xf32>
    %238 = arith.mulf %234, %51 : vector<16x16xf32>
    %cst_61 = arith.constant dense<0.000000e+00> : vector<16xf32>
    %239 = vector.multi_reduction <add>, %238, %cst_61 [1] : vector<16x16xf32> to vector<16xf32>
    %240 = vector.shape_cast %239 : vector<16xf32> to vector<16x1xf32>
    %241 = arith.mulf %234, %53 : vector<16x16xf32>
    %cst_62 = arith.constant dense<0.000000e+00> : vector<16xf32>
    %242 = vector.multi_reduction <add>, %241, %cst_62 [1] : vector<16x16xf32> to vector<16xf32>
    %243 = vector.shape_cast %242 : vector<16xf32> to vector<16x1xf32>
    %244 = arith.mulf %234, %55 : vector<16x16xf32>
    %cst_63 = arith.constant dense<0.000000e+00> : vector<16xf32>
    %245 = vector.multi_reduction <add>, %244, %cst_63 [1] : vector<16x16xf32> to vector<16xf32>
    %246 = vector.shape_cast %245 : vector<16xf32> to vector<16x1xf32>
    %247 = tpu.concatenate %237, %240, %243, %246 in 1 : vector<16x1xf32>, vector<16x1xf32>, vector<16x1xf32>, vector<16x1xf32> -> vector<16x4xf32>
    %cst_64 = arith.constant dense<0xFF800000> : vector<16xf32>
    %248 = vector.multi_reduction <maximumf>, %247, %cst_64 [1] : vector<16x4xf32> to vector<16xf32>
    %249 = vector.shape_cast %248 : vector<16xf32> to vector<16x1xf32>
    %250 = vector.broadcast %249 : vector<16x1xf32> to vector<16x4xf32>
    %251 = arith.subf %247, %250 : vector<16x4xf32>
    %252 = math.exp %251 : vector<16x4xf32>
    %cst_65 = arith.constant dense<0.000000e+00> : vector<16xf32>
    %253 = vector.multi_reduction <add>, %252, %cst_65 [1] : vector<16x4xf32> to vector<16xf32>
    %254 = vector.shape_cast %253 : vector<16xf32> to vector<16x1xf32>
    %255 = vector.broadcast %254 : vector<16x1xf32> to vector<16x4xf32>
    %256 = arith.divf %252, %255 : vector<16x4xf32>
    %257 = vector.extract_strided_slice %256 {offsets = [0, 0], sizes = [16, 1], strides = [1, 1]} : vector<16x4xf32> to vector<16x1xf32>
    %258 = vector.broadcast %257 : vector<16x1xf32> to vector<16x16xf32>
    %259 = arith.mulf %258, %57 : vector<16x16xf32>
    %260 = vector.extract_strided_slice %256 {offsets = [0, 1], sizes = [16, 1], strides = [1, 1]} : vector<16x4xf32> to vector<16x1xf32>
    %261 = vector.broadcast %260 : vector<16x1xf32> to vector<16x16xf32>
    %262 = arith.mulf %261, %59 : vector<16x16xf32>
    %263 = arith.addf %259, %262 : vector<16x16xf32>
    %264 = vector.extract_strided_slice %256 {offsets = [0, 2], sizes = [16, 1], strides = [1, 1]} : vector<16x4xf32> to vector<16x1xf32>
    %265 = vector.broadcast %264 : vector<16x1xf32> to vector<16x16xf32>
    %266 = arith.mulf %265, %61 : vector<16x16xf32>
    %267 = arith.addf %263, %266 : vector<16x16xf32>
    %268 = vector.extract_strided_slice %256 {offsets = [0, 3], sizes = [16, 1], strides = [1, 1]} : vector<16x4xf32> to vector<16x1xf32>
    %269 = vector.broadcast %268 : vector<16x1xf32> to vector<16x16xf32>
    %270 = arith.mulf %269, %63 : vector<16x16xf32>
    %271 = arith.addf %267, %270 : vector<16x16xf32>
    %272 = vector.extract_strided_slice %233 {offsets = [0, 16], sizes = [16, 16], strides = [1, 1]} : vector<16x32xf32> to vector<16x16xf32>
    %273 = arith.mulf %272, %50 : vector<16x16xf32>
    %cst_66 = arith.constant dense<0.000000e+00> : vector<16xf32>
    %274 = vector.multi_reduction <add>, %273, %cst_66 [1] : vector<16x16xf32> to vector<16xf32>
    %275 = vector.shape_cast %274 : vector<16xf32> to vector<16x1xf32>
    %276 = arith.mulf %272, %52 : vector<16x16xf32>
    %cst_67 = arith.constant dense<0.000000e+00> : vector<16xf32>
    %277 = vector.multi_reduction <add>, %276, %cst_67 [1] : vector<16x16xf32> to vector<16xf32>
    %278 = vector.shape_cast %277 : vector<16xf32> to vector<16x1xf32>
    %279 = arith.mulf %272, %54 : vector<16x16xf32>
    %cst_68 = arith.constant dense<0.000000e+00> : vector<16xf32>
    %280 = vector.multi_reduction <add>, %279, %cst_68 [1] : vector<16x16xf32> to vector<16xf32>
    %281 = vector.shape_cast %280 : vector<16xf32> to vector<16x1xf32>
    %282 = arith.mulf %272, %56 : vector<16x16xf32>
    %cst_69 = arith.constant dense<0.000000e+00> : vector<16xf32>
    %283 = vector.multi_reduction <add>, %282, %cst_69 [1] : vector<16x16xf32> to vector<16xf32>
    %284 = vector.shape_cast %283 : vector<16xf32> to vector<16x1xf32>
    %285 = tpu.concatenate %275, %278, %281, %284 in 1 : vector<16x1xf32>, vector<16x1xf32>, vector<16x1xf32>, vector<16x1xf32> -> vector<16x4xf32>
    %cst_70 = arith.constant dense<0xFF800000> : vector<16xf32>
    %286 = vector.multi_reduction <maximumf>, %285, %cst_70 [1] : vector<16x4xf32> to vector<16xf32>
    %287 = vector.shape_cast %286 : vector<16xf32> to vector<16x1xf32>
    %288 = vector.broadcast %287 : vector<16x1xf32> to vector<16x4xf32>
    %289 = arith.subf %285, %288 : vector<16x4xf32>
    %290 = math.exp %289 : vector<16x4xf32>
    %cst_71 = arith.constant dense<0.000000e+00> : vector<16xf32>
    %291 = vector.multi_reduction <add>, %290, %cst_71 [1] : vector<16x4xf32> to vector<16xf32>
    %292 = vector.shape_cast %291 : vector<16xf32> to vector<16x1xf32>
    %293 = vector.broadcast %292 : vector<16x1xf32> to vector<16x4xf32>
    %294 = arith.divf %290, %293 : vector<16x4xf32>
    %295 = vector.extract_strided_slice %294 {offsets = [0, 0], sizes = [16, 1], strides = [1, 1]} : vector<16x4xf32> to vector<16x1xf32>
    %296 = vector.broadcast %295 : vector<16x1xf32> to vector<16x16xf32>
    %297 = arith.mulf %296, %58 : vector<16x16xf32>
    %298 = vector.extract_strided_slice %294 {offsets = [0, 1], sizes = [16, 1], strides = [1, 1]} : vector<16x4xf32> to vector<16x1xf32>
    %299 = vector.broadcast %298 : vector<16x1xf32> to vector<16x16xf32>
    %300 = arith.mulf %299, %60 : vector<16x16xf32>
    %301 = arith.addf %297, %300 : vector<16x16xf32>
    %302 = vector.extract_strided_slice %294 {offsets = [0, 2], sizes = [16, 1], strides = [1, 1]} : vector<16x4xf32> to vector<16x1xf32>
    %303 = vector.broadcast %302 : vector<16x1xf32> to vector<16x16xf32>
    %304 = arith.mulf %303, %62 : vector<16x16xf32>
    %305 = arith.addf %301, %304 : vector<16x16xf32>
    %306 = vector.extract_strided_slice %294 {offsets = [0, 3], sizes = [16, 1], strides = [1, 1]} : vector<16x4xf32> to vector<16x1xf32>
    %307 = vector.broadcast %306 : vector<16x1xf32> to vector<16x16xf32>
    %308 = arith.mulf %307, %64 : vector<16x16xf32>
    %309 = arith.addf %305, %308 : vector<16x16xf32>
    %310 = arith.addf %256, %294 : vector<16x4xf32>
    %311 = tpu.concatenate %271, %309 in 1 : vector<16x16xf32>, vector<16x16xf32> -> vector<16x32xf32>
    %cst_72 = arith.constant 5.000000e-01 : f32
    %312 = vector.broadcast %cst_72 : f32 to vector<16x4xf32>
    %313 = arith.mulf %310, %312 : vector<16x4xf32>
    %314 = vector.extract_strided_slice %48 {offsets = [48, 0], sizes = [16, 32], strides = [1, 1]} : vector<64x96xf32> to vector<16x32xf32>
    %cst_73 = arith.constant 2.500000e-01 : f32
    %315 = vector.broadcast %cst_73 : f32 to vector<16x32xf32>
    %316 = arith.mulf %314, %315 : vector<16x32xf32>
    %317 = vector.extract_strided_slice %316 {offsets = [0, 0], sizes = [16, 16], strides = [1, 1]} : vector<16x32xf32> to vector<16x16xf32>
    %318 = arith.mulf %317, %49 : vector<16x16xf32>
    %cst_74 = arith.constant dense<0.000000e+00> : vector<16xf32>
    %319 = vector.multi_reduction <add>, %318, %cst_74 [1] : vector<16x16xf32> to vector<16xf32>
    %320 = vector.shape_cast %319 : vector<16xf32> to vector<16x1xf32>
    %321 = arith.mulf %317, %51 : vector<16x16xf32>
    %cst_75 = arith.constant dense<0.000000e+00> : vector<16xf32>
    %322 = vector.multi_reduction <add>, %321, %cst_75 [1] : vector<16x16xf32> to vector<16xf32>
    %323 = vector.shape_cast %322 : vector<16xf32> to vector<16x1xf32>
    %324 = arith.mulf %317, %53 : vector<16x16xf32>
    %cst_76 = arith.constant dense<0.000000e+00> : vector<16xf32>
    %325 = vector.multi_reduction <add>, %324, %cst_76 [1] : vector<16x16xf32> to vector<16xf32>
    %326 = vector.shape_cast %325 : vector<16xf32> to vector<16x1xf32>
    %327 = arith.mulf %317, %55 : vector<16x16xf32>
    %cst_77 = arith.constant dense<0.000000e+00> : vector<16xf32>
    %328 = vector.multi_reduction <add>, %327, %cst_77 [1] : vector<16x16xf32> to vector<16xf32>
    %329 = vector.shape_cast %328 : vector<16xf32> to vector<16x1xf32>
    %330 = tpu.concatenate %320, %323, %326, %329 in 1 : vector<16x1xf32>, vector<16x1xf32>, vector<16x1xf32>, vector<16x1xf32> -> vector<16x4xf32>
    %cst_78 = arith.constant dense<0xFF800000> : vector<16xf32>
    %331 = vector.multi_reduction <maximumf>, %330, %cst_78 [1] : vector<16x4xf32> to vector<16xf32>
    %332 = vector.shape_cast %331 : vector<16xf32> to vector<16x1xf32>
    %333 = vector.broadcast %332 : vector<16x1xf32> to vector<16x4xf32>
    %334 = arith.subf %330, %333 : vector<16x4xf32>
    %335 = math.exp %334 : vector<16x4xf32>
    %cst_79 = arith.constant dense<0.000000e+00> : vector<16xf32>
    %336 = vector.multi_reduction <add>, %335, %cst_79 [1] : vector<16x4xf32> to vector<16xf32>
    %337 = vector.shape_cast %336 : vector<16xf32> to vector<16x1xf32>
    %338 = vector.broadcast %337 : vector<16x1xf32> to vector<16x4xf32>
    %339 = arith.divf %335, %338 : vector<16x4xf32>
    %340 = vector.extract_strided_slice %339 {offsets = [0, 0], sizes = [16, 1], strides = [1, 1]} : vector<16x4xf32> to vector<16x1xf32>
    %341 = vector.broadcast %340 : vector<16x1xf32> to vector<16x16xf32>
    %342 = arith.mulf %341, %57 : vector<16x16xf32>
    %343 = vector.extract_strided_slice %339 {offsets = [0, 1], sizes = [16, 1], strides = [1, 1]} : vector<16x4xf32> to vector<16x1xf32>
    %344 = vector.broadcast %343 : vector<16x1xf32> to vector<16x16xf32>
    %345 = arith.mulf %344, %59 : vector<16x16xf32>
    %346 = arith.addf %342, %345 : vector<16x16xf32>
    %347 = vector.extract_strided_slice %339 {offsets = [0, 2], sizes = [16, 1], strides = [1, 1]} : vector<16x4xf32> to vector<16x1xf32>
    %348 = vector.broadcast %347 : vector<16x1xf32> to vector<16x16xf32>
    %349 = arith.mulf %348, %61 : vector<16x16xf32>
    %350 = arith.addf %346, %349 : vector<16x16xf32>
    %351 = vector.extract_strided_slice %339 {offsets = [0, 3], sizes = [16, 1], strides = [1, 1]} : vector<16x4xf32> to vector<16x1xf32>
    %352 = vector.broadcast %351 : vector<16x1xf32> to vector<16x16xf32>
    %353 = arith.mulf %352, %63 : vector<16x16xf32>
    %354 = arith.addf %350, %353 : vector<16x16xf32>
    %355 = vector.extract_strided_slice %316 {offsets = [0, 16], sizes = [16, 16], strides = [1, 1]} : vector<16x32xf32> to vector<16x16xf32>
    %356 = arith.mulf %355, %50 : vector<16x16xf32>
    %cst_80 = arith.constant dense<0.000000e+00> : vector<16xf32>
    %357 = vector.multi_reduction <add>, %356, %cst_80 [1] : vector<16x16xf32> to vector<16xf32>
    %358 = vector.shape_cast %357 : vector<16xf32> to vector<16x1xf32>
    %359 = arith.mulf %355, %52 : vector<16x16xf32>
    %cst_81 = arith.constant dense<0.000000e+00> : vector<16xf32>
    %360 = vector.multi_reduction <add>, %359, %cst_81 [1] : vector<16x16xf32> to vector<16xf32>
    %361 = vector.shape_cast %360 : vector<16xf32> to vector<16x1xf32>
    %362 = arith.mulf %355, %54 : vector<16x16xf32>
    %cst_82 = arith.constant dense<0.000000e+00> : vector<16xf32>
    %363 = vector.multi_reduction <add>, %362, %cst_82 [1] : vector<16x16xf32> to vector<16xf32>
    %364 = vector.shape_cast %363 : vector<16xf32> to vector<16x1xf32>
    %365 = arith.mulf %355, %56 : vector<16x16xf32>
    %cst_83 = arith.constant dense<0.000000e+00> : vector<16xf32>
    %366 = vector.multi_reduction <add>, %365, %cst_83 [1] : vector<16x16xf32> to vector<16xf32>
    %367 = vector.shape_cast %366 : vector<16xf32> to vector<16x1xf32>
    %368 = tpu.concatenate %358, %361, %364, %367 in 1 : vector<16x1xf32>, vector<16x1xf32>, vector<16x1xf32>, vector<16x1xf32> -> vector<16x4xf32>
    %cst_84 = arith.constant dense<0xFF800000> : vector<16xf32>
    %369 = vector.multi_reduction <maximumf>, %368, %cst_84 [1] : vector<16x4xf32> to vector<16xf32>
    %370 = vector.shape_cast %369 : vector<16xf32> to vector<16x1xf32>
    %371 = vector.broadcast %370 : vector<16x1xf32> to vector<16x4xf32>
    %372 = arith.subf %368, %371 : vector<16x4xf32>
    %373 = math.exp %372 : vector<16x4xf32>
    %cst_85 = arith.constant dense<0.000000e+00> : vector<16xf32>
    %374 = vector.multi_reduction <add>, %373, %cst_85 [1] : vector<16x4xf32> to vector<16xf32>
    %375 = vector.shape_cast %374 : vector<16xf32> to vector<16x1xf32>
    %376 = vector.broadcast %375 : vector<16x1xf32> to vector<16x4xf32>
    %377 = arith.divf %373, %376 : vector<16x4xf32>
    %378 = vector.extract_strided_slice %377 {offsets = [0, 0], sizes = [16, 1], strides = [1, 1]} : vector<16x4xf32> to vector<16x1xf32>
    %379 = vector.broadcast %378 : vector<16x1xf32> to vector<16x16xf32>
    %380 = arith.mulf %379, %58 : vector<16x16xf32>
    %381 = vector.extract_strided_slice %377 {offsets = [0, 1], sizes = [16, 1], strides = [1, 1]} : vector<16x4xf32> to vector<16x1xf32>
    %382 = vector.broadcast %381 : vector<16x1xf32> to vector<16x16xf32>
    %383 = arith.mulf %382, %60 : vector<16x16xf32>
    %384 = arith.addf %380, %383 : vector<16x16xf32>
    %385 = vector.extract_strided_slice %377 {offsets = [0, 2], sizes = [16, 1], strides = [1, 1]} : vector<16x4xf32> to vector<16x1xf32>
    %386 = vector.broadcast %385 : vector<16x1xf32> to vector<16x16xf32>
    %387 = arith.mulf %386, %62 : vector<16x16xf32>
    %388 = arith.addf %384, %387 : vector<16x16xf32>
    %389 = vector.extract_strided_slice %377 {offsets = [0, 3], sizes = [16, 1], strides = [1, 1]} : vector<16x4xf32> to vector<16x1xf32>
    %390 = vector.broadcast %389 : vector<16x1xf32> to vector<16x16xf32>
    %391 = arith.mulf %390, %64 : vector<16x16xf32>
    %392 = arith.addf %388, %391 : vector<16x16xf32>
    %393 = arith.addf %339, %377 : vector<16x4xf32>
    %394 = tpu.concatenate %354, %392 in 1 : vector<16x16xf32>, vector<16x16xf32> -> vector<16x32xf32>
    %cst_86 = arith.constant 5.000000e-01 : f32
    %395 = vector.broadcast %cst_86 : f32 to vector<16x4xf32>
    %396 = arith.mulf %393, %395 : vector<16x4xf32>
    %397 = tpu.concatenate %147, %230, %313, %396 in 1 : vector<16x4xf32>, vector<16x4xf32>, vector<16x4xf32>, vector<16x4xf32> -> vector<16x16xf32>
    %c0_87 = arith.constant 0 : index
    %c0_88 = arith.constant 0 : index
    %c0_89 = arith.constant 0 : index
    %398 = vector.load %arg11[%c0_87, %c0_88, %c0_89] : memref<2x16x16xf32, #tpu.memory_space<vmem>>, vector<1x16x16xf32>
    %399 = vector.shape_cast %398 : vector<1x16x16xf32> to vector<16x16xf32>
    %400 = vector.shape_cast %397 : vector<16x16xf32> to vector<1x16x16xf32>
    tpu.vector_store %arg11[%c0_87, %c0_88, %c0_89], %400 {strides = array<i32>} : memref<2x16x16xf32, #tpu.memory_space<vmem>>, vector<1x16x16xf32>,
    %401 = tpu.concatenate %145, %228, %311, %394 in 0 : vector<16x32xf32>, vector<16x32xf32>, vector<16x32xf32>, vector<16x32xf32> -> vector<64x32xf32>
    %c0_90 = arith.constant 0 : index
    %c0_91 = arith.constant 0 : index
    %c0_92 = arith.constant 0 : index
    %402 = vector.load %arg4[%c0_90, %c0_91, %c0_92] : memref<2x32x32xf32, #tpu.memory_space<vmem>>, vector<1x32x32xf32>
    %403 = vector.shape_cast %402 : vector<1x32x32xf32> to vector<32x32xf32>
    %cst_93 = arith.constant dense<0.000000e+00> : vector<64x32xf32>
    %404 = tpu.matmul %401, %403, %cst_93 {dimension_numbers = #tpu.dot_dimension_numbers<[1], [0], [0], [1], [0, 0, 1, 1], [], []>} : vector<64x32xf32>, vector<32x32xf32>, vector<64x32xf32> -> vector<64x32xf32>
    %405 = arith.addf %5, %404 : vector<64x32xf32>
    %406 = vector.broadcast %15 : vector<1x32xf32> to vector<64x32xf32>
    %407 = arith.addf %405, %406 : vector<64x32xf32>
    %cst_94 = arith.constant dense<0.000000e+00> : vector<64xf32>
    %408 = vector.multi_reduction <add>, %407, %cst_94 [1] : vector<64x32xf32> to vector<64xf32>
    %409 = vector.shape_cast %408 : vector<64xf32> to vector<64x1xf32>
    %cst_95 = arith.constant 3.200000e+01 : f32
    %410 = vector.broadcast %cst_95 : f32 to vector<64x1xf32>
    %411 = arith.divf %409, %410 : vector<64x1xf32>
    %412 = vector.broadcast %411 : vector<64x1xf32> to vector<64x32xf32>
    %413 = arith.subf %407, %412 : vector<64x32xf32>
    %414 = arith.mulf %413, %413 : vector<64x32xf32>
    %cst_96 = arith.constant dense<0.000000e+00> : vector<64xf32>
    %415 = vector.multi_reduction <add>, %414, %cst_96 [1] : vector<64x32xf32> to vector<64xf32>
    %416 = vector.shape_cast %415 : vector<64xf32> to vector<64x1xf32>
    %cst_97 = arith.constant 3.200000e+01 : f32
    %417 = vector.broadcast %cst_97 : f32 to vector<64x1xf32>
    %418 = arith.divf %416, %417 : vector<64x1xf32>
    %419 = vector.broadcast %411 : vector<64x1xf32> to vector<64x32xf32>
    %420 = arith.subf %407, %419 : vector<64x32xf32>
    %cst_98 = arith.constant 9.99999974E-6 : f32
    %421 = vector.broadcast %cst_98 : f32 to vector<64x1xf32>
    %422 = arith.addf %418, %421 : vector<64x1xf32>
    %423 = math.rsqrt %422 : vector<64x1xf32>
    %424 = vector.broadcast %423 : vector<64x1xf32> to vector<64x32xf32>
    %425 = arith.mulf %420, %424 : vector<64x32xf32>
    %426 = vector.broadcast %11 : vector<1x32xf32> to vector<64x32xf32>
    %427 = arith.mulf %425, %426 : vector<64x32xf32>
    %428 = vector.broadcast %13 : vector<1x32xf32> to vector<64x32xf32>
    %429 = arith.addf %427, %428 : vector<64x32xf32>
    %c0_99 = arith.constant 0 : index
    %c0_100 = arith.constant 0 : index
    %c0_101 = arith.constant 0 : index
    %430 = vector.load %arg5[%c0_99, %c0_100, %c0_101] : memref<2x32x64xf32, #tpu.memory_space<vmem>>, vector<1x32x64xf32>
    %431 = vector.shape_cast %430 : vector<1x32x64xf32> to vector<32x64xf32>
    %cst_102 = arith.constant dense<0.000000e+00> : vector<64x64xf32>
    %432 = tpu.matmul %429, %431, %cst_102 {dimension_numbers = #tpu.dot_dimension_numbers<[1], [0], [0], [1], [0, 0, 1, 1], [], []>} : vector<64x32xf32>, vector<32x64xf32>, vector<64x64xf32> -> vector<64x64xf32>
    %433 = vector.broadcast %19 : vector<1x64xf32> to vector<64x64xf32>
    %434 = arith.addf %432, %433 : vector<64x64xf32>
    %cst_103 = arith.constant 5.000000e-01 : f32
    %435 = vector.broadcast %cst_103 : f32 to vector<64x64xf32>
    %436 = arith.mulf %435, %434 : vector<64x64xf32>
    %cst_104 = arith.constant 0.707106769 : f32
    %437 = vector.broadcast %cst_104 : f32 to vector<64x64xf32>
    %438 = arith.mulf %434, %437 : vector<64x64xf32>
    %439 = math.erf %438 : vector<64x64xf32>
    %cst_105 = arith.constant 1.000000e+00 : f32
    %440 = vector.broadcast %cst_105 : f32 to vector<64x64xf32>
    %441 = arith.addf %440, %439 : vector<64x64xf32>
    %442 = arith.mulf %436, %441 : vector<64x64xf32>
    %c0_106 = arith.constant 0 : index
    %c0_107 = arith.constant 0 : index
    %c0_108 = arith.constant 0 : index
    %443 = vector.load %arg6[%c0_106, %c0_107, %c0_108] : memref<2x64x32xf32, #tpu.memory_space<vmem>>, vector<1x64x32xf32>
    %444 = vector.shape_cast %443 : vector<1x64x32xf32> to vector<64x32xf32>
    %cst_109 = arith.constant dense<0.000000e+00> : vector<64x32xf32>
    %445 = tpu.matmul %442, %444, %cst_109 {dimension_numbers = #tpu.dot_dimension_numbers<[1], [0], [0], [1], [0, 0, 1, 1], [], []>} : vector<64x64xf32>, vector<64x32xf32>, vector<64x32xf32> -> vector<64x32xf32>
    %446 = arith.addf %407, %445 : vector<64x32xf32>
    %447 = vector.broadcast %17 : vector<1x32xf32> to vector<64x32xf32>
    %448 = arith.addf %446, %447 : vector<64x32xf32>
    %c1_110 = arith.constant 1 : index
    %c0_111 = arith.constant 0 : index
    %c0_112 = arith.constant 0 : index
    %449 = vector.load %arg7[%c1_110, %c0_111, %c0_112] : memref<2x8x128xf32, #tpu.memory_space<vmem>>, vector<1x1x32xf32>
    %450 = vector.shape_cast %449 : vector<1x1x32xf32> to vector<1x32xf32>
    %c1_113 = arith.constant 1 : index
    %c1_114 = arith.constant 1 : index
    %c0_115 = arith.constant 0 : index
    %451 = vector.load %arg7[%c1_113, %c1_114, %c0_115] : memref<2x8x128xf32, #tpu.memory_space<vmem>>, vector<1x1x32xf32>
    %452 = vector.shape_cast %451 : vector<1x1x32xf32> to vector<1x32xf32>
    %c1_116 = arith.constant 1 : index
    %c2_117 = arith.constant 2 : index
    %c0_118 = arith.constant 0 : index
    %453 = vector.load %arg7[%c1_116, %c2_117, %c0_118] : memref<2x8x128xf32, #tpu.memory_space<vmem>>, vector<1x1x32xf32>
    %454 = vector.shape_cast %453 : vector<1x1x32xf32> to vector<1x32xf32>
    %c1_119 = arith.constant 1 : index
    %c3_120 = arith.constant 3 : index
    %c0_121 = arith.constant 0 : index
    %455 = vector.load %arg7[%c1_119, %c3_120, %c0_121] : memref<2x8x128xf32, #tpu.memory_space<vmem>>, vector<1x1x32xf32>
    %456 = vector.shape_cast %455 : vector<1x1x32xf32> to vector<1x32xf32>
    %c1_122 = arith.constant 1 : index
    %c4_123 = arith.constant 4 : index
    %c0_124 = arith.constant 0 : index
    %457 = vector.load %arg7[%c1_122, %c4_123, %c0_124] : memref<2x8x128xf32, #tpu.memory_space<vmem>>, vector<1x1x32xf32>
    %458 = vector.shape_cast %457 : vector<1x1x32xf32> to vector<1x32xf32>
    %c1_125 = arith.constant 1 : index
    %c5_126 = arith.constant 5 : index
    %c0_127 = arith.constant 0 : index
    %459 = vector.load %arg7[%c1_125, %c5_126, %c0_127] : memref<2x8x128xf32, #tpu.memory_space<vmem>>, vector<1x1x32xf32>
    %460 = vector.shape_cast %459 : vector<1x1x32xf32> to vector<1x32xf32>
    %c1_128 = arith.constant 1 : index
    %c6_129 = arith.constant 6 : index
    %c0_130 = arith.constant 0 : index
    %461 = vector.load %arg7[%c1_128, %c6_129, %c0_130] : memref<2x8x128xf32, #tpu.memory_space<vmem>>, vector<1x1x64xf32>
    %462 = vector.shape_cast %461 : vector<1x1x64xf32> to vector<1x64xf32>
    %c1_131 = arith.constant 1 : index
    %c7_132 = arith.constant 7 : index
    %c0_133 = arith.constant 0 : index
    %463 = vector.load %arg7[%c1_131, %c7_132, %c0_133] : memref<2x8x128xf32, #tpu.memory_space<vmem>>, vector<1x1x96xf32>
    %464 = vector.shape_cast %463 : vector<1x1x96xf32> to vector<1x96xf32>
    %cst_134 = arith.constant dense<0.000000e+00> : vector<64xf32>
    %465 = vector.multi_reduction <add>, %448, %cst_134 [1] : vector<64x32xf32> to vector<64xf32>
    %466 = vector.shape_cast %465 : vector<64xf32> to vector<64x1xf32>
    %cst_135 = arith.constant 3.200000e+01 : f32
    %467 = vector.broadcast %cst_135 : f32 to vector<64x1xf32>
    %468 = arith.divf %466, %467 : vector<64x1xf32>
    %469 = vector.broadcast %468 : vector<64x1xf32> to vector<64x32xf32>
    %470 = arith.subf %448, %469 : vector<64x32xf32>
    %471 = arith.mulf %470, %470 : vector<64x32xf32>
    %cst_136 = arith.constant dense<0.000000e+00> : vector<64xf32>
    %472 = vector.multi_reduction <add>, %471, %cst_136 [1] : vector<64x32xf32> to vector<64xf32>
    %473 = vector.shape_cast %472 : vector<64xf32> to vector<64x1xf32>
    %cst_137 = arith.constant 3.200000e+01 : f32
    %474 = vector.broadcast %cst_137 : f32 to vector<64x1xf32>
    %475 = arith.divf %473, %474 : vector<64x1xf32>
    %476 = vector.broadcast %468 : vector<64x1xf32> to vector<64x32xf32>
    %477 = arith.subf %448, %476 : vector<64x32xf32>
    %cst_138 = arith.constant 9.99999974E-6 : f32
    %478 = vector.broadcast %cst_138 : f32 to vector<64x1xf32>
    %479 = arith.addf %475, %478 : vector<64x1xf32>
    %480 = math.rsqrt %479 : vector<64x1xf32>
    %481 = vector.broadcast %480 : vector<64x1xf32> to vector<64x32xf32>
    %482 = arith.mulf %477, %481 : vector<64x32xf32>
    %483 = vector.broadcast %450 : vector<1x32xf32> to vector<64x32xf32>
    %484 = arith.mulf %482, %483 : vector<64x32xf32>
    %485 = vector.broadcast %452 : vector<1x32xf32> to vector<64x32xf32>
    %486 = arith.addf %484, %485 : vector<64x32xf32>
    %c1_139 = arith.constant 1 : index
    %c0_140 = arith.constant 0 : index
    %c0_141 = arith.constant 0 : index
    %487 = vector.load %arg3[%c1_139, %c0_140, %c0_141] : memref<2x32x96xf32, #tpu.memory_space<vmem>>, vector<1x32x96xf32>
    %488 = vector.shape_cast %487 : vector<1x32x96xf32> to vector<32x96xf32>
    %cst_142 = arith.constant dense<0.000000e+00> : vector<64x96xf32>
    %489 = tpu.matmul %486, %488, %cst_142 {dimension_numbers = #tpu.dot_dimension_numbers<[1], [0], [0], [1], [0, 0, 1, 1], [], []>} : vector<64x32xf32>, vector<32x96xf32>, vector<64x96xf32> -> vector<64x96xf32>
    %490 = vector.broadcast %464 : vector<1x96xf32> to vector<64x96xf32>
    %491 = arith.addf %489, %490 : vector<64x96xf32>
    %492 = vector.extract_strided_slice %491 {offsets = [0, 32], sizes = [16, 16], strides = [1, 1]} : vector<64x96xf32> to vector<16x16xf32>
    %493 = vector.extract_strided_slice %491 {offsets = [0, 48], sizes = [16, 16], strides = [1, 1]} : vector<64x96xf32> to vector<16x16xf32>
    %494 = vector.extract_strided_slice %491 {offsets = [16, 32], sizes = [16, 16], strides = [1, 1]} : vector<64x96xf32> to vector<16x16xf32>
    %495 = vector.extract_strided_slice %491 {offsets = [16, 48], sizes = [16, 16], strides = [1, 1]} : vector<64x96xf32> to vector<16x16xf32>
    %496 = vector.extract_strided_slice %491 {offsets = [32, 32], sizes = [16, 16], strides = [1, 1]} : vector<64x96xf32> to vector<16x16xf32>
    %497 = vector.extract_strided_slice %491 {offsets = [32, 48], sizes = [16, 16], strides = [1, 1]} : vector<64x96xf32> to vector<16x16xf32>
    %498 = vector.extract_strided_slice %491 {offsets = [48, 32], sizes = [16, 16], strides = [1, 1]} : vector<64x96xf32> to vector<16x16xf32>
    %499 = vector.extract_strided_slice %491 {offsets = [48, 48], sizes = [16, 16], strides = [1, 1]} : vector<64x96xf32> to vector<16x16xf32>
    %500 = vector.extract_strided_slice %491 {offsets = [0, 64], sizes = [16, 16], strides = [1, 1]} : vector<64x96xf32> to vector<16x16xf32>
    %501 = vector.extract_strided_slice %491 {offsets = [0, 80], sizes = [16, 16], strides = [1, 1]} : vector<64x96xf32> to vector<16x16xf32>
    %502 = vector.extract_strided_slice %491 {offsets = [16, 64], sizes = [16, 16], strides = [1, 1]} : vector<64x96xf32> to vector<16x16xf32>
    %503 = vector.extract_strided_slice %491 {offsets = [16, 80], sizes = [16, 16], strides = [1, 1]} : vector<64x96xf32> to vector<16x16xf32>
    %504 = vector.extract_strided_slice %491 {offsets = [32, 64], sizes = [16, 16], strides = [1, 1]} : vector<64x96xf32> to vector<16x16xf32>
    %505 = vector.extract_strided_slice %491 {offsets = [32, 80], sizes = [16, 16], strides = [1, 1]} : vector<64x96xf32> to vector<16x16xf32>
    %506 = vector.extract_strided_slice %491 {offsets = [48, 64], sizes = [16, 16], strides = [1, 1]} : vector<64x96xf32> to vector<16x16xf32>
    %507 = vector.extract_strided_slice %491 {offsets = [48, 80], sizes = [16, 16], strides = [1, 1]} : vector<64x96xf32> to vector<16x16xf32>
    %508 = vector.extract_strided_slice %491 {offsets = [0, 0], sizes = [16, 32], strides = [1, 1]} : vector<64x96xf32> to vector<16x32xf32>
    %cst_143 = arith.constant 2.500000e-01 : f32
    %509 = vector.broadcast %cst_143 : f32 to vector<16x32xf32>
    %510 = arith.mulf %508, %509 : vector<16x32xf32>
    %511 = vector.extract_strided_slice %510 {offsets = [0, 0], sizes = [16, 16], strides = [1, 1]} : vector<16x32xf32> to vector<16x16xf32>
    %512 = arith.mulf %511, %492 : vector<16x16xf32>
    %cst_144 = arith.constant dense<0.000000e+00> : vector<16xf32>
    %513 = vector.multi_reduction <add>, %512, %cst_144 [1] : vector<16x16xf32> to vector<16xf32>
    %514 = vector.shape_cast %513 : vector<16xf32> to vector<16x1xf32>
    %515 = arith.mulf %511, %494 : vector<16x16xf32>
    %cst_145 = arith.constant dense<0.000000e+00> : vector<16xf32>
    %516 = vector.multi_reduction <add>, %515, %cst_145 [1] : vector<16x16xf32> to vector<16xf32>
    %517 = vector.shape_cast %516 : vector<16xf32> to vector<16x1xf32>
    %518 = arith.mulf %511, %496 : vector<16x16xf32>
    %cst_146 = arith.constant dense<0.000000e+00> : vector<16xf32>
    %519 = vector.multi_reduction <add>, %518, %cst_146 [1] : vector<16x16xf32> to vector<16xf32>
    %520 = vector.shape_cast %519 : vector<16xf32> to vector<16x1xf32>
    %521 = arith.mulf %511, %498 : vector<16x16xf32>
    %cst_147 = arith.constant dense<0.000000e+00> : vector<16xf32>
    %522 = vector.multi_reduction <add>, %521, %cst_147 [1] : vector<16x16xf32> to vector<16xf32>
    %523 = vector.shape_cast %522 : vector<16xf32> to vector<16x1xf32>
    %524 = tpu.concatenate %514, %517, %520, %523 in 1 : vector<16x1xf32>, vector<16x1xf32>, vector<16x1xf32>, vector<16x1xf32> -> vector<16x4xf32>
    %cst_148 = arith.constant dense<0xFF800000> : vector<16xf32>
    %525 = vector.multi_reduction <maximumf>, %524, %cst_148 [1] : vector<16x4xf32> to vector<16xf32>
    %526 = vector.shape_cast %525 : vector<16xf32> to vector<16x1xf32>
    %527 = vector.broadcast %526 : vector<16x1xf32> to vector<16x4xf32>
    %528 = arith.subf %524, %527 : vector<16x4xf32>
    %529 = math.exp %528 : vector<16x4xf32>
    %cst_149 = arith.constant dense<0.000000e+00> : vector<16xf32>
    %530 = vector.multi_reduction <add>, %529, %cst_149 [1] : vector<16x4xf32> to vector<16xf32>
    %531 = vector.shape_cast %530 : vector<16xf32> to vector<16x1xf32>
    %532 = vector.broadcast %531 : vector<16x1xf32> to vector<16x4xf32>
    %533 = arith.divf %529, %532 : vector<16x4xf32>
    %534 = vector.extract_strided_slice %533 {offsets = [0, 0], sizes = [16, 1], strides = [1, 1]} : vector<16x4xf32> to vector<16x1xf32>
    %535 = vector.broadcast %534 : vector<16x1xf32> to vector<16x16xf32>
    %536 = arith.mulf %535, %500 : vector<16x16xf32>
    %537 = vector.extract_strided_slice %533 {offsets = [0, 1], sizes = [16, 1], strides = [1, 1]} : vector<16x4xf32> to vector<16x1xf32>
    %538 = vector.broadcast %537 : vector<16x1xf32> to vector<16x16xf32>
    %539 = arith.mulf %538, %502 : vector<16x16xf32>
    %540 = arith.addf %536, %539 : vector<16x16xf32>
    %541 = vector.extract_strided_slice %533 {offsets = [0, 2], sizes = [16, 1], strides = [1, 1]} : vector<16x4xf32> to vector<16x1xf32>
    %542 = vector.broadcast %541 : vector<16x1xf32> to vector<16x16xf32>
    %543 = arith.mulf %542, %504 : vector<16x16xf32>
    %544 = arith.addf %540, %543 : vector<16x16xf32>
    %545 = vector.extract_strided_slice %533 {offsets = [0, 3], sizes = [16, 1], strides = [1, 1]} : vector<16x4xf32> to vector<16x1xf32>
    %546 = vector.broadcast %545 : vector<16x1xf32> to vector<16x16xf32>
    %547 = arith.mulf %546, %506 : vector<16x16xf32>
    %548 = arith.addf %544, %547 : vector<16x16xf32>
    %549 = vector.extract_strided_slice %510 {offsets = [0, 16], sizes = [16, 16], strides = [1, 1]} : vector<16x32xf32> to vector<16x16xf32>
    %550 = arith.mulf %549, %493 : vector<16x16xf32>
    %cst_150 = arith.constant dense<0.000000e+00> : vector<16xf32>
    %551 = vector.multi_reduction <add>, %550, %cst_150 [1] : vector<16x16xf32> to vector<16xf32>
    %552 = vector.shape_cast %551 : vector<16xf32> to vector<16x1xf32>
    %553 = arith.mulf %549, %495 : vector<16x16xf32>
    %cst_151 = arith.constant dense<0.000000e+00> : vector<16xf32>
    %554 = vector.multi_reduction <add>, %553, %cst_151 [1] : vector<16x16xf32> to vector<16xf32>
    %555 = vector.shape_cast %554 : vector<16xf32> to vector<16x1xf32>
    %556 = arith.mulf %549, %497 : vector<16x16xf32>
    %cst_152 = arith.constant dense<0.000000e+00> : vector<16xf32>
    %557 = vector.multi_reduction <add>, %556, %cst_152 [1] : vector<16x16xf32> to vector<16xf32>
    %558 = vector.shape_cast %557 : vector<16xf32> to vector<16x1xf32>
    %559 = arith.mulf %549, %499 : vector<16x16xf32>
    %cst_153 = arith.constant dense<0.000000e+00> : vector<16xf32>
    %560 = vector.multi_reduction <add>, %559, %cst_153 [1] : vector<16x16xf32> to vector<16xf32>
    %561 = vector.shape_cast %560 : vector<16xf32> to vector<16x1xf32>
    %562 = tpu.concatenate %552, %555, %558, %561 in 1 : vector<16x1xf32>, vector<16x1xf32>, vector<16x1xf32>, vector<16x1xf32> -> vector<16x4xf32>
    %cst_154 = arith.constant dense<0xFF800000> : vector<16xf32>
    %563 = vector.multi_reduction <maximumf>, %562, %cst_154 [1] : vector<16x4xf32> to vector<16xf32>
    %564 = vector.shape_cast %563 : vector<16xf32> to vector<16x1xf32>
    %565 = vector.broadcast %564 : vector<16x1xf32> to vector<16x4xf32>
    %566 = arith.subf %562, %565 : vector<16x4xf32>
    %567 = math.exp %566 : vector<16x4xf32>
    %cst_155 = arith.constant dense<0.000000e+00> : vector<16xf32>
    %568 = vector.multi_reduction <add>, %567, %cst_155 [1] : vector<16x4xf32> to vector<16xf32>
    %569 = vector.shape_cast %568 : vector<16xf32> to vector<16x1xf32>
    %570 = vector.broadcast %569 : vector<16x1xf32> to vector<16x4xf32>
    %571 = arith.divf %567, %570 : vector<16x4xf32>
    %572 = vector.extract_strided_slice %571 {offsets = [0, 0], sizes = [16, 1], strides = [1, 1]} : vector<16x4xf32> to vector<16x1xf32>
    %573 = vector.broadcast %572 : vector<16x1xf32> to vector<16x16xf32>
    %574 = arith.mulf %573, %501 : vector<16x16xf32>
    %575 = vector.extract_strided_slice %571 {offsets = [0, 1], sizes = [16, 1], strides = [1, 1]} : vector<16x4xf32> to vector<16x1xf32>
    %576 = vector.broadcast %575 : vector<16x1xf32> to vector<16x16xf32>
    %577 = arith.mulf %576, %503 : vector<16x16xf32>
    %578 = arith.addf %574, %577 : vector<16x16xf32>
    %579 = vector.extract_strided_slice %571 {offsets = [0, 2], sizes = [16, 1], strides = [1, 1]} : vector<16x4xf32> to vector<16x1xf32>
    %580 = vector.broadcast %579 : vector<16x1xf32> to vector<16x16xf32>
    %581 = arith.mulf %580, %505 : vector<16x16xf32>
    %582 = arith.addf %578, %581 : vector<16x16xf32>
    %583 = vector.extract_strided_slice %571 {offsets = [0, 3], sizes = [16, 1], strides = [1, 1]} : vector<16x4xf32> to vector<16x1xf32>
    %584 = vector.broadcast %583 : vector<16x1xf32> to vector<16x16xf32>
    %585 = arith.mulf %584, %507 : vector<16x16xf32>
    %586 = arith.addf %582, %585 : vector<16x16xf32>
    %587 = arith.addf %533, %571 : vector<16x4xf32>
    %588 = tpu.concatenate %548, %586 in 1 : vector<16x16xf32>, vector<16x16xf32> -> vector<16x32xf32>
    %cst_156 = arith.constant 5.000000e-01 : f32
    %589 = vector.broadcast %cst_156 : f32 to vector<16x4xf32>
    %590 = arith.mulf %587, %589 : vector<16x4xf32>
    %591 = vector.extract_strided_slice %491 {offsets = [16, 0], sizes = [16, 32], strides = [1, 1]} : vector<64x96xf32> to vector<16x32xf32>
    %cst_157 = arith.constant 2.500000e-01 : f32
    %592 = vector.broadcast %cst_157 : f32 to vector<16x32xf32>
    %593 = arith.mulf %591, %592 : vector<16x32xf32>
    %594 = vector.extract_strided_slice %593 {offsets = [0, 0], sizes = [16, 16], strides = [1, 1]} : vector<16x32xf32> to vector<16x16xf32>
    %595 = arith.mulf %594, %492 : vector<16x16xf32>
    %cst_158 = arith.constant dense<0.000000e+00> : vector<16xf32>
    %596 = vector.multi_reduction <add>, %595, %cst_158 [1] : vector<16x16xf32> to vector<16xf32>
    %597 = vector.shape_cast %596 : vector<16xf32> to vector<16x1xf32>
    %598 = arith.mulf %594, %494 : vector<16x16xf32>
    %cst_159 = arith.constant dense<0.000000e+00> : vector<16xf32>
    %599 = vector.multi_reduction <add>, %598, %cst_159 [1] : vector<16x16xf32> to vector<16xf32>
    %600 = vector.shape_cast %599 : vector<16xf32> to vector<16x1xf32>
    %601 = arith.mulf %594, %496 : vector<16x16xf32>
    %cst_160 = arith.constant dense<0.000000e+00> : vector<16xf32>
    %602 = vector.multi_reduction <add>, %601, %cst_160 [1] : vector<16x16xf32> to vector<16xf32>
    %603 = vector.shape_cast %602 : vector<16xf32> to vector<16x1xf32>
    %604 = arith.mulf %594, %498 : vector<16x16xf32>
    %cst_161 = arith.constant dense<0.000000e+00> : vector<16xf32>
    %605 = vector.multi_reduction <add>, %604, %cst_161 [1] : vector<16x16xf32> to vector<16xf32>
    %606 = vector.shape_cast %605 : vector<16xf32> to vector<16x1xf32>
    %607 = tpu.concatenate %597, %600, %603, %606 in 1 : vector<16x1xf32>, vector<16x1xf32>, vector<16x1xf32>, vector<16x1xf32> -> vector<16x4xf32>
    %cst_162 = arith.constant dense<0xFF800000> : vector<16xf32>
    %608 = vector.multi_reduction <maximumf>, %607, %cst_162 [1] : vector<16x4xf32> to vector<16xf32>
    %609 = vector.shape_cast %608 : vector<16xf32> to vector<16x1xf32>
    %610 = vector.broadcast %609 : vector<16x1xf32> to vector<16x4xf32>
    %611 = arith.subf %607, %610 : vector<16x4xf32>
    %612 = math.exp %611 : vector<16x4xf32>
    %cst_163 = arith.constant dense<0.000000e+00> : vector<16xf32>
    %613 = vector.multi_reduction <add>, %612, %cst_163 [1] : vector<16x4xf32> to vector<16xf32>
    %614 = vector.shape_cast %613 : vector<16xf32> to vector<16x1xf32>
    %615 = vector.broadcast %614 : vector<16x1xf32> to vector<16x4xf32>
    %616 = arith.divf %612, %615 : vector<16x4xf32>
    %617 = vector.extract_strided_slice %616 {offsets = [0, 0], sizes = [16, 1], strides = [1, 1]} : vector<16x4xf32> to vector<16x1xf32>
    %618 = vector.broadcast %617 : vector<16x1xf32> to vector<16x16xf32>
    %619 = arith.mulf %618, %500 : vector<16x16xf32>
    %620 = vector.extract_strided_slice %616 {offsets = [0, 1], sizes = [16, 1], strides = [1, 1]} : vector<16x4xf32> to vector<16x1xf32>
    %621 = vector.broadcast %620 : vector<16x1xf32> to vector<16x16xf32>
    %622 = arith.mulf %621, %502 : vector<16x16xf32>
    %623 = arith.addf %619, %622 : vector<16x16xf32>
    %624 = vector.extract_strided_slice %616 {offsets = [0, 2], sizes = [16, 1], strides = [1, 1]} : vector<16x4xf32> to vector<16x1xf32>
    %625 = vector.broadcast %624 : vector<16x1xf32> to vector<16x16xf32>
    %626 = arith.mulf %625, %504 : vector<16x16xf32>
    %627 = arith.addf %623, %626 : vector<16x16xf32>
    %628 = vector.extract_strided_slice %616 {offsets = [0, 3], sizes = [16, 1], strides = [1, 1]} : vector<16x4xf32> to vector<16x1xf32>
    %629 = vector.broadcast %628 : vector<16x1xf32> to vector<16x16xf32>
    %630 = arith.mulf %629, %506 : vector<16x16xf32>
    %631 = arith.addf %627, %630 : vector<16x16xf32>
    %632 = vector.extract_strided_slice %593 {offsets = [0, 16], sizes = [16, 16], strides = [1, 1]} : vector<16x32xf32> to vector<16x16xf32>
    %633 = arith.mulf %632, %493 : vector<16x16xf32>
    %cst_164 = arith.constant dense<0.000000e+00> : vector<16xf32>
    %634 = vector.multi_reduction <add>, %633, %cst_164 [1] : vector<16x16xf32> to vector<16xf32>
    %635 = vector.shape_cast %634 : vector<16xf32> to vector<16x1xf32>
    %636 = arith.mulf %632, %495 : vector<16x16xf32>
    %cst_165 = arith.constant dense<0.000000e+00> : vector<16xf32>
    %637 = vector.multi_reduction <add>, %636, %cst_165 [1] : vector<16x16xf32> to vector<16xf32>
    %638 = vector.shape_cast %637 : vector<16xf32> to vector<16x1xf32>
    %639 = arith.mulf %632, %497 : vector<16x16xf32>
    %cst_166 = arith.constant dense<0.000000e+00> : vector<16xf32>
    %640 = vector.multi_reduction <add>, %639, %cst_166 [1] : vector<16x16xf32> to vector<16xf32>
    %641 = vector.shape_cast %640 : vector<16xf32> to vector<16x1xf32>
    %642 = arith.mulf %632, %499 : vector<16x16xf32>
    %cst_167 = arith.constant dense<0.000000e+00> : vector<16xf32>
    %643 = vector.multi_reduction <add>, %642, %cst_167 [1] : vector<16x16xf32> to vector<16xf32>
    %644 = vector.shape_cast %643 : vector<16xf32> to vector<16x1xf32>
    %645 = tpu.concatenate %635, %638, %641, %644 in 1 : vector<16x1xf32>, vector<16x1xf32>, vector<16x1xf32>, vector<16x1xf32> -> vector<16x4xf32>
    %cst_168 = arith.constant dense<0xFF800000> : vector<16xf32>
    %646 = vector.multi_reduction <maximumf>, %645, %cst_168 [1] : vector<16x4xf32> to vector<16xf32>
    %647 = vector.shape_cast %646 : vector<16xf32> to vector<16x1xf32>
    %648 = vector.broadcast %647 : vector<16x1xf32> to vector<16x4xf32>
    %649 = arith.subf %645, %648 : vector<16x4xf32>
    %650 = math.exp %649 : vector<16x4xf32>
    %cst_169 = arith.constant dense<0.000000e+00> : vector<16xf32>
    %651 = vector.multi_reduction <add>, %650, %cst_169 [1] : vector<16x4xf32> to vector<16xf32>
    %652 = vector.shape_cast %651 : vector<16xf32> to vector<16x1xf32>
    %653 = vector.broadcast %652 : vector<16x1xf32> to vector<16x4xf32>
    %654 = arith.divf %650, %653 : vector<16x4xf32>
    %655 = vector.extract_strided_slice %654 {offsets = [0, 0], sizes = [16, 1], strides = [1, 1]} : vector<16x4xf32> to vector<16x1xf32>
    %656 = vector.broadcast %655 : vector<16x1xf32> to vector<16x16xf32>
    %657 = arith.mulf %656, %501 : vector<16x16xf32>
    %658 = vector.extract_strided_slice %654 {offsets = [0, 1], sizes = [16, 1], strides = [1, 1]} : vector<16x4xf32> to vector<16x1xf32>
    %659 = vector.broadcast %658 : vector<16x1xf32> to vector<16x16xf32>
    %660 = arith.mulf %659, %503 : vector<16x16xf32>
    %661 = arith.addf %657, %660 : vector<16x16xf32>
    %662 = vector.extract_strided_slice %654 {offsets = [0, 2], sizes = [16, 1], strides = [1, 1]} : vector<16x4xf32> to vector<16x1xf32>
    %663 = vector.broadcast %662 : vector<16x1xf32> to vector<16x16xf32>
    %664 = arith.mulf %663, %505 : vector<16x16xf32>
    %665 = arith.addf %661, %664 : vector<16x16xf32>
    %666 = vector.extract_strided_slice %654 {offsets = [0, 3], sizes = [16, 1], strides = [1, 1]} : vector<16x4xf32> to vector<16x1xf32>
    %667 = vector.broadcast %666 : vector<16x1xf32> to vector<16x16xf32>
    %668 = arith.mulf %667, %507 : vector<16x16xf32>
    %669 = arith.addf %665, %668 : vector<16x16xf32>
    %670 = arith.addf %616, %654 : vector<16x4xf32>
    %671 = tpu.concatenate %631, %669 in 1 : vector<16x16xf32>, vector<16x16xf32> -> vector<16x32xf32>
    %cst_170 = arith.constant 5.000000e-01 : f32
    %672 = vector.broadcast %cst_170 : f32 to vector<16x4xf32>
    %673 = arith.mulf %670, %672 : vector<16x4xf32>
    %674 = vector.extract_strided_slice %491 {offsets = [32, 0], sizes = [16, 32], strides = [1, 1]} : vector<64x96xf32> to vector<16x32xf32>
    %cst_171 = arith.constant 2.500000e-01 : f32
    %675 = vector.broadcast %cst_171 : f32 to vector<16x32xf32>
    %676 = arith.mulf %674, %675 : vector<16x32xf32>
    %677 = vector.extract_strided_slice %676 {offsets = [0, 0], sizes = [16, 16], strides = [1, 1]} : vector<16x32xf32> to vector<16x16xf32>
    %678 = arith.mulf %677, %492 : vector<16x16xf32>
    %cst_172 = arith.constant dense<0.000000e+00> : vector<16xf32>
    %679 = vector.multi_reduction <add>, %678, %cst_172 [1] : vector<16x16xf32> to vector<16xf32>
    %680 = vector.shape_cast %679 : vector<16xf32> to vector<16x1xf32>
    %681 = arith.mulf %677, %494 : vector<16x16xf32>
    %cst_173 = arith.constant dense<0.000000e+00> : vector<16xf32>
    %682 = vector.multi_reduction <add>, %681, %cst_173 [1] : vector<16x16xf32> to vector<16xf32>
    %683 = vector.shape_cast %682 : vector<16xf32> to vector<16x1xf32>
    %684 = arith.mulf %677, %496 : vector<16x16xf32>
    %cst_174 = arith.constant dense<0.000000e+00> : vector<16xf32>
    %685 = vector.multi_reduction <add>, %684, %cst_174 [1] : vector<16x16xf32> to vector<16xf32>
    %686 = vector.shape_cast %685 : vector<16xf32> to vector<16x1xf32>
    %687 = arith.mulf %677, %498 : vector<16x16xf32>
    %cst_175 = arith.constant dense<0.000000e+00> : vector<16xf32>
    %688 = vector.multi_reduction <add>, %687, %cst_175 [1] : vector<16x16xf32> to vector<16xf32>
    %689 = vector.shape_cast %688 : vector<16xf32> to vector<16x1xf32>
    %690 = tpu.concatenate %680, %683, %686, %689 in 1 : vector<16x1xf32>, vector<16x1xf32>, vector<16x1xf32>, vector<16x1xf32> -> vector<16x4xf32>
    %cst_176 = arith.constant dense<0xFF800000> : vector<16xf32>
    %691 = vector.multi_reduction <maximumf>, %690, %cst_176 [1] : vector<16x4xf32> to vector<16xf32>
    %692 = vector.shape_cast %691 : vector<16xf32> to vector<16x1xf32>
    %693 = vector.broadcast %692 : vector<16x1xf32> to vector<16x4xf32>
    %694 = arith.subf %690, %693 : vector<16x4xf32>
    %695 = math.exp %694 : vector<16x4xf32>
    %cst_177 = arith.constant dense<0.000000e+00> : vector<16xf32>
    %696 = vector.multi_reduction <add>, %695, %cst_177 [1] : vector<16x4xf32> to vector<16xf32>
    %697 = vector.shape_cast %696 : vector<16xf32> to vector<16x1xf32>
    %698 = vector.broadcast %697 : vector<16x1xf32> to vector<16x4xf32>
    %699 = arith.divf %695, %698 : vector<16x4xf32>
    %700 = vector.extract_strided_slice %699 {offsets = [0, 0], sizes = [16, 1], strides = [1, 1]} : vector<16x4xf32> to vector<16x1xf32>
    %701 = vector.broadcast %700 : vector<16x1xf32> to vector<16x16xf32>
    %702 = arith.mulf %701, %500 : vector<16x16xf32>
    %703 = vector.extract_strided_slice %699 {offsets = [0, 1], sizes = [16, 1], strides = [1, 1]} : vector<16x4xf32> to vector<16x1xf32>
    %704 = vector.broadcast %703 : vector<16x1xf32> to vector<16x16xf32>
    %705 = arith.mulf %704, %502 : vector<16x16xf32>
    %706 = arith.addf %702, %705 : vector<16x16xf32>
    %707 = vector.extract_strided_slice %699 {offsets = [0, 2], sizes = [16, 1], strides = [1, 1]} : vector<16x4xf32> to vector<16x1xf32>
    %708 = vector.broadcast %707 : vector<16x1xf32> to vector<16x16xf32>
    %709 = arith.mulf %708, %504 : vector<16x16xf32>
    %710 = arith.addf %706, %709 : vector<16x16xf32>
    %711 = vector.extract_strided_slice %699 {offsets = [0, 3], sizes = [16, 1], strides = [1, 1]} : vector<16x4xf32> to vector<16x1xf32>
    %712 = vector.broadcast %711 : vector<16x1xf32> to vector<16x16xf32>
    %713 = arith.mulf %712, %506 : vector<16x16xf32>
    %714 = arith.addf %710, %713 : vector<16x16xf32>
    %715 = vector.extract_strided_slice %676 {offsets = [0, 16], sizes = [16, 16], strides = [1, 1]} : vector<16x32xf32> to vector<16x16xf32>
    %716 = arith.mulf %715, %493 : vector<16x16xf32>
    %cst_178 = arith.constant dense<0.000000e+00> : vector<16xf32>
    %717 = vector.multi_reduction <add>, %716, %cst_178 [1] : vector<16x16xf32> to vector<16xf32>
    %718 = vector.shape_cast %717 : vector<16xf32> to vector<16x1xf32>
    %719 = arith.mulf %715, %495 : vector<16x16xf32>
    %cst_179 = arith.constant dense<0.000000e+00> : vector<16xf32>
    %720 = vector.multi_reduction <add>, %719, %cst_179 [1] : vector<16x16xf32> to vector<16xf32>
    %721 = vector.shape_cast %720 : vector<16xf32> to vector<16x1xf32>
    %722 = arith.mulf %715, %497 : vector<16x16xf32>
    %cst_180 = arith.constant dense<0.000000e+00> : vector<16xf32>
    %723 = vector.multi_reduction <add>, %722, %cst_180 [1] : vector<16x16xf32> to vector<16xf32>
    %724 = vector.shape_cast %723 : vector<16xf32> to vector<16x1xf32>
    %725 = arith.mulf %715, %499 : vector<16x16xf32>
    %cst_181 = arith.constant dense<0.000000e+00> : vector<16xf32>
    %726 = vector.multi_reduction <add>, %725, %cst_181 [1] : vector<16x16xf32> to vector<16xf32>
    %727 = vector.shape_cast %726 : vector<16xf32> to vector<16x1xf32>
    %728 = tpu.concatenate %718, %721, %724, %727 in 1 : vector<16x1xf32>, vector<16x1xf32>, vector<16x1xf32>, vector<16x1xf32> -> vector<16x4xf32>
    %cst_182 = arith.constant dense<0xFF800000> : vector<16xf32>
    %729 = vector.multi_reduction <maximumf>, %728, %cst_182 [1] : vector<16x4xf32> to vector<16xf32>
    %730 = vector.shape_cast %729 : vector<16xf32> to vector<16x1xf32>
    %731 = vector.broadcast %730 : vector<16x1xf32> to vector<16x4xf32>
    %732 = arith.subf %728, %731 : vector<16x4xf32>
    %733 = math.exp %732 : vector<16x4xf32>
    %cst_183 = arith.constant dense<0.000000e+00> : vector<16xf32>
    %734 = vector.multi_reduction <add>, %733, %cst_183 [1] : vector<16x4xf32> to vector<16xf32>
    %735 = vector.shape_cast %734 : vector<16xf32> to vector<16x1xf32>
    %736 = vector.broadcast %735 : vector<16x1xf32> to vector<16x4xf32>
    %737 = arith.divf %733, %736 : vector<16x4xf32>
    %738 = vector.extract_strided_slice %737 {offsets = [0, 0], sizes = [16, 1], strides = [1, 1]} : vector<16x4xf32> to vector<16x1xf32>
    %739 = vector.broadcast %738 : vector<16x1xf32> to vector<16x16xf32>
    %740 = arith.mulf %739, %501 : vector<16x16xf32>
    %741 = vector.extract_strided_slice %737 {offsets = [0, 1], sizes = [16, 1], strides = [1, 1]} : vector<16x4xf32> to vector<16x1xf32>
    %742 = vector.broadcast %741 : vector<16x1xf32> to vector<16x16xf32>
    %743 = arith.mulf %742, %503 : vector<16x16xf32>
    %744 = arith.addf %740, %743 : vector<16x16xf32>
    %745 = vector.extract_strided_slice %737 {offsets = [0, 2], sizes = [16, 1], strides = [1, 1]} : vector<16x4xf32> to vector<16x1xf32>
    %746 = vector.broadcast %745 : vector<16x1xf32> to vector<16x16xf32>
    %747 = arith.mulf %746, %505 : vector<16x16xf32>
    %748 = arith.addf %744, %747 : vector<16x16xf32>
    %749 = vector.extract_strided_slice %737 {offsets = [0, 3], sizes = [16, 1], strides = [1, 1]} : vector<16x4xf32> to vector<16x1xf32>
    %750 = vector.broadcast %749 : vector<16x1xf32> to vector<16x16xf32>
    %751 = arith.mulf %750, %507 : vector<16x16xf32>
    %752 = arith.addf %748, %751 : vector<16x16xf32>
    %753 = arith.addf %699, %737 : vector<16x4xf32>
    %754 = tpu.concatenate %714, %752 in 1 : vector<16x16xf32>, vector<16x16xf32> -> vector<16x32xf32>
    %cst_184 = arith.constant 5.000000e-01 : f32
    %755 = vector.broadcast %cst_184 : f32 to vector<16x4xf32>
    %756 = arith.mulf %753, %755 : vector<16x4xf32>
    %757 = vector.extract_strided_slice %491 {offsets = [48, 0], sizes = [16, 32], strides = [1, 1]} : vector<64x96xf32> to vector<16x32xf32>
    %cst_185 = arith.constant 2.500000e-01 : f32
    %758 = vector.broadcast %cst_185 : f32 to vector<16x32xf32>
    %759 = arith.mulf %757, %758 : vector<16x32xf32>
    %760 = vector.extract_strided_slice %759 {offsets = [0, 0], sizes = [16, 16], strides = [1, 1]} : vector<16x32xf32> to vector<16x16xf32>
    %761 = arith.mulf %760, %492 : vector<16x16xf32>
    %cst_186 = arith.constant dense<0.000000e+00> : vector<16xf32>
    %762 = vector.multi_reduction <add>, %761, %cst_186 [1] : vector<16x16xf32> to vector<16xf32>
    %763 = vector.shape_cast %762 : vector<16xf32> to vector<16x1xf32>
    %764 = arith.mulf %760, %494 : vector<16x16xf32>
    %cst_187 = arith.constant dense<0.000000e+00> : vector<16xf32>
    %765 = vector.multi_reduction <add>, %764, %cst_187 [1] : vector<16x16xf32> to vector<16xf32>
    %766 = vector.shape_cast %765 : vector<16xf32> to vector<16x1xf32>
    %767 = arith.mulf %760, %496 : vector<16x16xf32>
    %cst_188 = arith.constant dense<0.000000e+00> : vector<16xf32>
    %768 = vector.multi_reduction <add>, %767, %cst_188 [1] : vector<16x16xf32> to vector<16xf32>
    %769 = vector.shape_cast %768 : vector<16xf32> to vector<16x1xf32>
    %770 = arith.mulf %760, %498 : vector<16x16xf32>
    %cst_189 = arith.constant dense<0.000000e+00> : vector<16xf32>
    %771 = vector.multi_reduction <add>, %770, %cst_189 [1] : vector<16x16xf32> to vector<16xf32>
    %772 = vector.shape_cast %771 : vector<16xf32> to vector<16x1xf32>
    %773 = tpu.concatenate %763, %766, %769, %772 in 1 : vector<16x1xf32>, vector<16x1xf32>, vector<16x1xf32>, vector<16x1xf32> -> vector<16x4xf32>
    %cst_190 = arith.constant dense<0xFF800000> : vector<16xf32>
    %774 = vector.multi_reduction <maximumf>, %773, %cst_190 [1] : vector<16x4xf32> to vector<16xf32>
    %775 = vector.shape_cast %774 : vector<16xf32> to vector<16x1xf32>
    %776 = vector.broadcast %775 : vector<16x1xf32> to vector<16x4xf32>
    %777 = arith.subf %773, %776 : vector<16x4xf32>
    %778 = math.exp %777 : vector<16x4xf32>
    %cst_191 = arith.constant dense<0.000000e+00> : vector<16xf32>
    %779 = vector.multi_reduction <add>, %778, %cst_191 [1] : vector<16x4xf32> to vector<16xf32>
    %780 = vector.shape_cast %779 : vector<16xf32> to vector<16x1xf32>
    %781 = vector.broadcast %780 : vector<16x1xf32> to vector<16x4xf32>
    %782 = arith.divf %778, %781 : vector<16x4xf32>
    %783 = vector.extract_strided_slice %782 {offsets = [0, 0], sizes = [16, 1], strides = [1, 1]} : vector<16x4xf32> to vector<16x1xf32>
    %784 = vector.broadcast %783 : vector<16x1xf32> to vector<16x16xf32>
    %785 = arith.mulf %784, %500 : vector<16x16xf32>
    %786 = vector.extract_strided_slice %782 {offsets = [0, 1], sizes = [16, 1], strides = [1, 1]} : vector<16x4xf32> to vector<16x1xf32>
    %787 = vector.broadcast %786 : vector<16x1xf32> to vector<16x16xf32>
    %788 = arith.mulf %787, %502 : vector<16x16xf32>
    %789 = arith.addf %785, %788 : vector<16x16xf32>
    %790 = vector.extract_strided_slice %782 {offsets = [0, 2], sizes = [16, 1], strides = [1, 1]} : vector<16x4xf32> to vector<16x1xf32>
    %791 = vector.broadcast %790 : vector<16x1xf32> to vector<16x16xf32>
    %792 = arith.mulf %791, %504 : vector<16x16xf32>
    %793 = arith.addf %789, %792 : vector<16x16xf32>
    %794 = vector.extract_strided_slice %782 {offsets = [0, 3], sizes = [16, 1], strides = [1, 1]} : vector<16x4xf32> to vector<16x1xf32>
    %795 = vector.broadcast %794 : vector<16x1xf32> to vector<16x16xf32>
    %796 = arith.mulf %795, %506 : vector<16x16xf32>
    %797 = arith.addf %793, %796 : vector<16x16xf32>
    %798 = vector.extract_strided_slice %759 {offsets = [0, 16], sizes = [16, 16], strides = [1, 1]} : vector<16x32xf32> to vector<16x16xf32>
    %799 = arith.mulf %798, %493 : vector<16x16xf32>
    %cst_192 = arith.constant dense<0.000000e+00> : vector<16xf32>
    %800 = vector.multi_reduction <add>, %799, %cst_192 [1] : vector<16x16xf32> to vector<16xf32>
    %801 = vector.shape_cast %800 : vector<16xf32> to vector<16x1xf32>
    %802 = arith.mulf %798, %495 : vector<16x16xf32>
    %cst_193 = arith.constant dense<0.000000e+00> : vector<16xf32>
    %803 = vector.multi_reduction <add>, %802, %cst_193 [1] : vector<16x16xf32> to vector<16xf32>
    %804 = vector.shape_cast %803 : vector<16xf32> to vector<16x1xf32>
    %805 = arith.mulf %798, %497 : vector<16x16xf32>
    %cst_194 = arith.constant dense<0.000000e+00> : vector<16xf32>
    %806 = vector.multi_reduction <add>, %805, %cst_194 [1] : vector<16x16xf32> to vector<16xf32>
    %807 = vector.shape_cast %806 : vector<16xf32> to vector<16x1xf32>
    %808 = arith.mulf %798, %499 : vector<16x16xf32>
    %cst_195 = arith.constant dense<0.000000e+00> : vector<16xf32>
    %809 = vector.multi_reduction <add>, %808, %cst_195 [1] : vector<16x16xf32> to vector<16xf32>
    %810 = vector.shape_cast %809 : vector<16xf32> to vector<16x1xf32>
    %811 = tpu.concatenate %801, %804, %807, %810 in 1 : vector<16x1xf32>, vector<16x1xf32>, vector<16x1xf32>, vector<16x1xf32> -> vector<16x4xf32>
    %cst_196 = arith.constant dense<0xFF800000> : vector<16xf32>
    %812 = vector.multi_reduction <maximumf>, %811, %cst_196 [1] : vector<16x4xf32> to vector<16xf32>
    %813 = vector.shape_cast %812 : vector<16xf32> to vector<16x1xf32>
    %814 = vector.broadcast %813 : vector<16x1xf32> to vector<16x4xf32>
    %815 = arith.subf %811, %814 : vector<16x4xf32>
    %816 = math.exp %815 : vector<16x4xf32>
    %cst_197 = arith.constant dense<0.000000e+00> : vector<16xf32>
    %817 = vector.multi_reduction <add>, %816, %cst_197 [1] : vector<16x4xf32> to vector<16xf32>
    %818 = vector.shape_cast %817 : vector<16xf32> to vector<16x1xf32>
    %819 = vector.broadcast %818 : vector<16x1xf32> to vector<16x4xf32>
    %820 = arith.divf %816, %819 : vector<16x4xf32>
    %821 = vector.extract_strided_slice %820 {offsets = [0, 0], sizes = [16, 1], strides = [1, 1]} : vector<16x4xf32> to vector<16x1xf32>
    %822 = vector.broadcast %821 : vector<16x1xf32> to vector<16x16xf32>
    %823 = arith.mulf %822, %501 : vector<16x16xf32>
    %824 = vector.extract_strided_slice %820 {offsets = [0, 1], sizes = [16, 1], strides = [1, 1]} : vector<16x4xf32> to vector<16x1xf32>
    %825 = vector.broadcast %824 : vector<16x1xf32> to vector<16x16xf32>
    %826 = arith.mulf %825, %503 : vector<16x16xf32>
    %827 = arith.addf %823, %826 : vector<16x16xf32>
    %828 = vector.extract_strided_slice %820 {offsets = [0, 2], sizes = [16, 1], strides = [1, 1]} : vector<16x4xf32> to vector<16x1xf32>
    %829 = vector.broadcast %828 : vector<16x1xf32> to vector<16x16xf32>
    %830 = arith.mulf %829, %505 : vector<16x16xf32>
    %831 = arith.addf %827, %830 : vector<16x16xf32>
    %832 = vector.extract_strided_slice %820 {offsets = [0, 3], sizes = [16, 1], strides = [1, 1]} : vector<16x4xf32> to vector<16x1xf32>
    %833 = vector.broadcast %832 : vector<16x1xf32> to vector<16x16xf32>
    %834 = arith.mulf %833, %507 : vector<16x16xf32>
    %835 = arith.addf %831, %834 : vector<16x16xf32>
    %836 = arith.addf %782, %820 : vector<16x4xf32>
    %837 = tpu.concatenate %797, %835 in 1 : vector<16x16xf32>, vector<16x16xf32> -> vector<16x32xf32>
    %cst_198 = arith.constant 5.000000e-01 : f32
    %838 = vector.broadcast %cst_198 : f32 to vector<16x4xf32>
    %839 = arith.mulf %836, %838 : vector<16x4xf32>
    %840 = tpu.concatenate %590, %673, %756, %839 in 1 : vector<16x4xf32>, vector<16x4xf32>, vector<16x4xf32>, vector<16x4xf32> -> vector<16x16xf32>
    %c1_199 = arith.constant 1 : index
    %c0_200 = arith.constant 0 : index
    %c0_201 = arith.constant 0 : index
    %841 = vector.load %arg11[%c1_199, %c0_200, %c0_201] : memref<2x16x16xf32, #tpu.memory_space<vmem>>, vector<1x16x16xf32>
    %842 = vector.shape_cast %841 : vector<1x16x16xf32> to vector<16x16xf32>
    %843 = vector.shape_cast %840 : vector<16x16xf32> to vector<1x16x16xf32>
    tpu.vector_store %arg11[%c1_199, %c0_200, %c0_201], %843 {strides = array<i32>} : memref<2x16x16xf32, #tpu.memory_space<vmem>>, vector<1x16x16xf32>,
    %844 = tpu.concatenate %588, %671, %754, %837 in 0 : vector<16x32xf32>, vector<16x32xf32>, vector<16x32xf32>, vector<16x32xf32> -> vector<64x32xf32>
    %c1_202 = arith.constant 1 : index
    %c0_203 = arith.constant 0 : index
    %c0_204 = arith.constant 0 : index
    %845 = vector.load %arg4[%c1_202, %c0_203, %c0_204] : memref<2x32x32xf32, #tpu.memory_space<vmem>>, vector<1x32x32xf32>
    %846 = vector.shape_cast %845 : vector<1x32x32xf32> to vector<32x32xf32>
    %cst_205 = arith.constant dense<0.000000e+00> : vector<64x32xf32>
    %847 = tpu.matmul %844, %846, %cst_205 {dimension_numbers = #tpu.dot_dimension_numbers<[1], [0], [0], [1], [0, 0, 1, 1], [], []>} : vector<64x32xf32>, vector<32x32xf32>, vector<64x32xf32> -> vector<64x32xf32>
    %848 = arith.addf %448, %847 : vector<64x32xf32>
    %849 = vector.broadcast %458 : vector<1x32xf32> to vector<64x32xf32>
    %850 = arith.addf %848, %849 : vector<64x32xf32>
    %cst_206 = arith.constant dense<0.000000e+00> : vector<64xf32>
    %851 = vector.multi_reduction <add>, %850, %cst_206 [1] : vector<64x32xf32> to vector<64xf32>
    %852 = vector.shape_cast %851 : vector<64xf32> to vector<64x1xf32>
    %cst_207 = arith.constant 3.200000e+01 : f32
    %853 = vector.broadcast %cst_207 : f32 to vector<64x1xf32>
    %854 = arith.divf %852, %853 : vector<64x1xf32>
    %855 = vector.broadcast %854 : vector<64x1xf32> to vector<64x32xf32>
    %856 = arith.subf %850, %855 : vector<64x32xf32>
    %857 = arith.mulf %856, %856 : vector<64x32xf32>
    %cst_208 = arith.constant dense<0.000000e+00> : vector<64xf32>
    %858 = vector.multi_reduction <add>, %857, %cst_208 [1] : vector<64x32xf32> to vector<64xf32>
    %859 = vector.shape_cast %858 : vector<64xf32> to vector<64x1xf32>
    %cst_209 = arith.constant 3.200000e+01 : f32
    %860 = vector.broadcast %cst_209 : f32 to vector<64x1xf32>
    %861 = arith.divf %859, %860 : vector<64x1xf32>
    %862 = vector.broadcast %854 : vector<64x1xf32> to vector<64x32xf32>
    %863 = arith.subf %850, %862 : vector<64x32xf32>
    %cst_210 = arith.constant 9.99999974E-6 : f32
    %864 = vector.broadcast %cst_210 : f32 to vector<64x1xf32>
    %865 = arith.addf %861, %864 : vector<64x1xf32>
    %866 = math.rsqrt %865 : vector<64x1xf32>
    %867 = vector.broadcast %866 : vector<64x1xf32> to vector<64x32xf32>
    %868 = arith.mulf %863, %867 : vector<64x32xf32>
    %869 = vector.broadcast %454 : vector<1x32xf32> to vector<64x32xf32>
    %870 = arith.mulf %868, %869 : vector<64x32xf32>
    %871 = vector.broadcast %456 : vector<1x32xf32> to vector<64x32xf32>
    %872 = arith.addf %870, %871 : vector<64x32xf32>
    %c1_211 = arith.constant 1 : index
    %c0_212 = arith.constant 0 : index
    %c0_213 = arith.constant 0 : index
    %873 = vector.load %arg5[%c1_211, %c0_212, %c0_213] : memref<2x32x64xf32, #tpu.memory_space<vmem>>, vector<1x32x64xf32>
    %874 = vector.shape_cast %873 : vector<1x32x64xf32> to vector<32x64xf32>
    %cst_214 = arith.constant dense<0.000000e+00> : vector<64x64xf32>
    %875 = tpu.matmul %872, %874, %cst_214 {dimension_numbers = #tpu.dot_dimension_numbers<[1], [0], [0], [1], [0, 0, 1, 1], [], []>} : vector<64x32xf32>, vector<32x64xf32>, vector<64x64xf32> -> vector<64x64xf32>
    %876 = vector.broadcast %462 : vector<1x64xf32> to vector<64x64xf32>
    %877 = arith.addf %875, %876 : vector<64x64xf32>
    %cst_215 = arith.constant 5.000000e-01 : f32
    %878 = vector.broadcast %cst_215 : f32 to vector<64x64xf32>
    %879 = arith.mulf %878, %877 : vector<64x64xf32>
    %cst_216 = arith.constant 0.707106769 : f32
    %880 = vector.broadcast %cst_216 : f32 to vector<64x64xf32>
    %881 = arith.mulf %877, %880 : vector<64x64xf32>
    %882 = math.erf %881 : vector<64x64xf32>
    %cst_217 = arith.constant 1.000000e+00 : f32
    %883 = vector.broadcast %cst_217 : f32 to vector<64x64xf32>
    %884 = arith.addf %883, %882 : vector<64x64xf32>
    %885 = arith.mulf %879, %884 : vector<64x64xf32>
    %c1_218 = arith.constant 1 : index
    %c0_219 = arith.constant 0 : index
    %c0_220 = arith.constant 0 : index
    %886 = vector.load %arg6[%c1_218, %c0_219, %c0_220] : memref<2x64x32xf32, #tpu.memory_space<vmem>>, vector<1x64x32xf32>
    %887 = vector.shape_cast %886 : vector<1x64x32xf32> to vector<64x32xf32>
    %cst_221 = arith.constant dense<0.000000e+00> : vector<64x32xf32>
    %888 = tpu.matmul %885, %887, %cst_221 {dimension_numbers = #tpu.dot_dimension_numbers<[1], [0], [0], [1], [0, 0, 1, 1], [], []>} : vector<64x64xf32>, vector<64x32xf32>, vector<64x32xf32> -> vector<64x32xf32>
    %889 = arith.addf %850, %888 : vector<64x32xf32>
    %890 = vector.broadcast %460 : vector<1x32xf32> to vector<64x32xf32>
    %891 = arith.addf %889, %890 : vector<64x32xf32>
    %c0_222 = arith.constant 0 : index
    %c0_223 = arith.constant 0 : index
    %892 = vector.load %arg9[%c0_222, %c0_223] : memref<3x128xf32, #tpu.memory_space<vmem>>, vector<1x32xf32>
    %c1_224 = arith.constant 1 : index
    %c0_225 = arith.constant 0 : index
    %893 = vector.load %arg9[%c1_224, %c0_225] : memref<3x128xf32, #tpu.memory_space<vmem>>, vector<1x32xf32>
    %c2_226 = arith.constant 2 : index
    %c0_227 = arith.constant 0 : index
    %894 = vector.load %arg9[%c2_226, %c0_227] : memref<3x128xf32, #tpu.memory_space<vmem>>, vector<1x1xf32>
    %895 = vector.extract_strided_slice %891 {offsets = [0, 0], sizes = [16, 32], strides = [1, 1]} : vector<64x32xf32> to vector<16x32xf32>
    %cst_228 = arith.constant dense<0.000000e+00> : vector<32xf32>
    %896 = vector.multi_reduction <add>, %895, %cst_228 [0] : vector<16x32xf32> to vector<32xf32>
    %897 = vector.shape_cast %896 : vector<32xf32> to vector<1x32xf32>
    %cst_229 = arith.constant 1.600000e+01 : f32
    %898 = vector.broadcast %cst_229 : f32 to vector<1x32xf32>
    %899 = arith.divf %897, %898 : vector<1x32xf32>
    %900 = vector.extract_strided_slice %891 {offsets = [16, 0], sizes = [16, 32], strides = [1, 1]} : vector<64x32xf32> to vector<16x32xf32>
    %cst_230 = arith.constant dense<0.000000e+00> : vector<32xf32>
    %901 = vector.multi_reduction <add>, %900, %cst_230 [0] : vector<16x32xf32> to vector<32xf32>
    %902 = vector.shape_cast %901 : vector<32xf32> to vector<1x32xf32>
    %cst_231 = arith.constant 1.600000e+01 : f32
    %903 = vector.broadcast %cst_231 : f32 to vector<1x32xf32>
    %904 = arith.divf %902, %903 : vector<1x32xf32>
    %905 = vector.extract_strided_slice %891 {offsets = [32, 0], sizes = [16, 32], strides = [1, 1]} : vector<64x32xf32> to vector<16x32xf32>
    %cst_232 = arith.constant dense<0.000000e+00> : vector<32xf32>
    %906 = vector.multi_reduction <add>, %905, %cst_232 [0] : vector<16x32xf32> to vector<32xf32>
    %907 = vector.shape_cast %906 : vector<32xf32> to vector<1x32xf32>
    %cst_233 = arith.constant 1.600000e+01 : f32
    %908 = vector.broadcast %cst_233 : f32 to vector<1x32xf32>
    %909 = arith.divf %907, %908 : vector<1x32xf32>
    %910 = vector.extract_strided_slice %891 {offsets = [48, 0], sizes = [16, 32], strides = [1, 1]} : vector<64x32xf32> to vector<16x32xf32>
    %cst_234 = arith.constant dense<0.000000e+00> : vector<32xf32>
    %911 = vector.multi_reduction <add>, %910, %cst_234 [0] : vector<16x32xf32> to vector<32xf32>
    %912 = vector.shape_cast %911 : vector<32xf32> to vector<1x32xf32>
    %cst_235 = arith.constant 1.600000e+01 : f32
    %913 = vector.broadcast %cst_235 : f32 to vector<1x32xf32>
    %914 = arith.divf %912, %913 : vector<1x32xf32>
    %915 = tpu.concatenate %899, %904, %909, %914 in 0 : vector<1x32xf32>, vector<1x32xf32>, vector<1x32xf32>, vector<1x32xf32> -> vector<4x32xf32>
    %c0_236 = arith.constant 0 : index
    %c0_237 = arith.constant 0 : index
    %916 = vector.load %arg8[%c0_236, %c0_237] : memref<32x32xf32, #tpu.memory_space<vmem>>, vector<32x32xf32>
    %cst_238 = arith.constant dense<0.000000e+00> : vector<4x32xf32>
    %917 = tpu.matmul %915, %916, %cst_238 {dimension_numbers = #tpu.dot_dimension_numbers<[1], [0], [0], [1], [0, 0, 1, 1], [], []>} : vector<4x32xf32>, vector<32x32xf32>, vector<4x32xf32> -> vector<4x32xf32>
    %918 = vector.broadcast %892 : vector<1x32xf32> to vector<4x32xf32>
    %919 = arith.addf %917, %918 : vector<4x32xf32>
    %920 = vector.broadcast %893 : vector<1x32xf32> to vector<4x32xf32>
    %921 = arith.mulf %919, %920 : vector<4x32xf32>
    %cst_239 = arith.constant dense<0.000000e+00> : vector<4xf32>
    %922 = vector.multi_reduction <add>, %921, %cst_239 [1] : vector<4x32xf32> to vector<4xf32>
    %923 = vector.shape_cast %922 : vector<4xf32> to vector<4x1xf32>
    %924 = vector.broadcast %894 : vector<1x1xf32> to vector<4x1xf32>
    %925 = arith.addf %923, %924 : vector<4x1xf32>
    %926 = arith.negf %925 : vector<4x1xf32>
    %927 = math.exp %926 : vector<4x1xf32>
    %cst_240 = arith.constant 1.000000e+00 : f32
    %928 = vector.broadcast %cst_240 : f32 to vector<4x1xf32>
    %929 = arith.addf %928, %927 : vector<4x1xf32>
    %930 = arith.divf %928, %929 : vector<4x1xf32>
    %c0_241 = arith.constant 0 : index
    %c0_242 = arith.constant 0 : index
    %931 = vector.load %arg10[%c0_241, %c0_242] : memref<4x1xf32, #tpu.memory_space<vmem>>, vector<4x1xf32>
    tpu.vector_store %arg10[%c0_241, %c0_242], %930 {strides = array<i32>} : memref<4x1xf32, #tpu.memory_space<vmem>>, vector<4x1xf32>,
    return
  }
}

</mosaic_0001>

<bundles_post_ra>
// kernel: vision_transformer.1
= control target key start
LH: loop header
LB: loop body
LE: loop exit
PB: predicated region body
PF: predicated region fallthrough
CT: control target
= control target key end

     0   :  { %vm53_vm0 = vcmask 392192   ;;  %vm191_vm1 = vcmask 261120   ;;  %s5291_s21 = smov 96   ;;  %s5292_s22 = smov 112   ;;  %vm470_vm2 = vcmask 130048   ;;  %vm525_vm3 = vcmask 7168   ;;  %s7753_s2 = inlined_call_operand.vmem [shape: f32[48,32], index: 2, kind: input, shape index: {}]   ;;  %s7754_s0 = inlined_call_operand.vmem [shape: f32[64,48], index: 0, kind: input, shape index: {}]   ;;  %s7755_s1 = inlined_call_operand.vmem [shape: f32[16,32], index: 1, kind: input, shape index: {}]   ;;  %s7756_s3 = inlined_call_operand.vmem [shape: f32[2,32,96], index: 3, kind: input, shape index: {}]   ;;  %s7757_s7 = inlined_call_operand.vmem [shape: f32[2,8,128], index: 7, kind: input, shape index: {}]   ;;  %s7758_s4 = inlined_call_operand.vmem [shape: f32[2,32,32], index: 4, kind: input, shape index: {}]   ;;  %s7759_s5 = inlined_call_operand.vmem [shape: f32[2,32,64], index: 5, kind: input, shape index: {}]   ;;  %s7760_s6 = inlined_call_operand.vmem [shape: f32[2,64,32], index: 6, kind: input, shape index: {}]   ;;  %s7761_s11 = inlined_call_operand.vmem [shape: f32[2,16,16], index: 11, kind: output, shape index: {1}]   ;;  %s7762_s8 = inlined_call_operand.vmem [shape: f32[32,32], index: 8, kind: input, shape index: {}]   ;;  %s7763_s9 = inlined_call_operand.vmem [shape: f32[3,128], index: 9, kind: input, shape index: {}]   ;;  %s7764_s10 = inlined_call_operand.vmem [shape: f32[4,1], index: 10, kind: output, shape index: {0}]  }
   0x1   :  { %v45_v0 = vld [vmem:[%s7753_s2] sm:$0xff]  ;;  %v46_v1 = vld [vmem:[%s7753_s2 + $0x8] sm:$0xff]  ;;  %v47_v2 = vld [vmem:[%s7753_s2 + $0x10] sm:$0xff]  ;;  %vm528_vm4 = vcmask 15360   ;;  %vm531_vm5 = vcmask 23552   ;;  %vm534_vm6 = vcmask 31744  }
   0x2   :  { %v4833_v3 = vpack.c.bf16 %v46_v1, %v45_v0  ;;  %v48_v4 = vld [vmem:[%s7753_s2 + $0x18] sm:$0xff]  ;;  %v49_v6 = vld [vmem:[%s7753_s2 + $0x20] sm:$0xff]  ;;  %v50_v7 = vld [vmem:[%s7753_s2 + $0x28] sm:$0xff]  ;;  %s5297_s23 = smov 64   ;;  %vm2051_vm7 = vcmask 523264   ;;  %s5298_s15 = smov 4  }
   0x3   :  { %v4837_v5 = vpack.c.bf16 %v48_v4, %v47_v2  ;;  %v37_v8 = vld [vmem:[%s7754_s0] sm:$0xff]  ;;  %v4841_v9 = vpack.c.bf16 %v50_v7, %v49_v6  ;;  %v38_v10 = vld [vmem:[%s7754_s0 + $0x8] sm:$0xff]  ;;  %v39_v11 = vld [vmem:[%s7754_s0 + $0x10] sm:$0xff]  ;;  %s5300_s2 = smov 12   ;;  %vm1580_vm8 = vcmask 97280   ;;  %vm1577_vm9 = vcmask 64512  }
   0x4   :  { %4834 = vmatprep.subr.bf16.mxu0 %v4833_v3  ;;  %4634 = vmatprep.mubr.msk.f32.mxu0 %vm53_vm0, %v37_v8  ;;  %v40_v12 = vld [vmem:[%s7754_s0 + $0x18] sm:$0xff]  ;;  %v41_v13 = vld [vmem:[%s7754_s0 + $0x20] sm:$0xff]  ;;  %v42_v14 = vld [vmem:[%s7754_s0 + $0x28] sm:$0xff]  ;;  %vm5302_vm10 = vmmov 0   ;;  %vm4259_vm11 = vcmask 1040384   ;;  %vm4261_vm12 = vcmask 1041408  }
   0x5   :  { %4836 = vmatpush3.bf16.msra.mxu0 %v4833_v3  ;;  %v43_v15 = vld [vmem:[%s7754_s0 + $0x30] sm:$0xff]  ;;  %v44_v16 = vld [vmem:[%s7754_s0 + $0x38] sm:$0xff]  ;;  %v51_v17 = vld [vmem:[%s7755_s1] sm:$0xff]  ;;  %vm4263_vm13 = vcmask 1042432   ;;  %vm4351_vm14 = vcmask 257024   ;;  %vm4366_vm15 = vcmask 3072  }
   0x6   :  { %4838 = vmatprep.subr.bf16.mxu0 %v4837_v5  ;;  %v52_v19 = vld [vmem:[%s7755_s1 + $0x8] sm:$0xff] }
   0x9   :  { %4840 = vmatpush3.bf16.msra.mxu0 %v4837_v5 }
   0xa   :  { %4842 = vmatprep.subr.bf16.mxu0 %v4841_v9 }
   0xd   :  { %4844 = vmatpush3.bf16.msra.mxu0 %v4841_v9 }
  0x10   :  { %4635 = vmatmul.mubr.msk.f32.vlgmr.msra.gmra.mrb[0].mxu0 %vm53_vm0, %v38_v10 }
  0x11   :  { %4637 = vmatprep.mubr.msk.f32.mxu0 %vm53_vm0, %v39_v11 }
  0x14   :  { %4638 = vmatmul.mubr.msk.f32.gmra.mrb[2].mxu0 %vm53_vm0, %v40_v12 }
  0x15   :  { %4640 = vmatprep.mubr.msk.f32.mxu0 %vm53_vm0, %v41_v13 }
  0x18   :  { %4641 = vmatmul.mubr.msk.f32.gmra.mrb[4].mxu0 %vm53_vm0, %v42_v14 }
  0x19   :  { %4643 = vmatprep.mubr.msk.f32.mxu0 %vm53_vm0, %v43_v15 }
  0x1c   :  { %4644 = vmatmul.mubr.msk.f32.gmra.mrb[6].mxu0 %vm53_vm0, %v44_v16 }
  0xe3   :  { %v4636_v18 = vpop.f32.mrb[0].mxu0 }
  0xe4   :  { %v144_v20 = vpop.f32.mrb[1].mxu0  ;;  %v5422_v22 = vadd.f32 %v4636_v18, %v52_v19 }
  0xe5   :  { %v5420_v21 = vadd.f32 %v144_v20, %v51_v17  ;;  %v322_v20 = vld [vmem:[%s7756_s3 + $0x8] sm:$0xff] }
  0xe6   :  { %v195_v30 = vsel %vm191_vm1, %v5422_v22, 0.0 }
  0xe7   :  { %v4639_v23 = vpop.f32.mrb[2].mxu0  ;;  %v192_v24 = vsel %vm191_vm1, %v5420_v21, 0.0 }
  0xe8   :  { %v154_v25 = vpop.f32.mrb[3].mxu0  ;;  %193 = vadd.xlane.f32.xlu0 %v192_v24  ;;  %v5426_v26 = vadd.f32 %v4639_v23, %v52_v19  ;;  %v323_v24 = vld [vmem:[%s7756_s3 + $0x10] sm:$0xff] }
  0xe9   :  { %v5428_v27 = vadd.f32 %v154_v25, %v51_v17  ;;  %v324_v25 = vld [vmem:[%s7756_s3 + $0x18] sm:$0xff] }
  0xea   :  { %v201_v34 = vsel %vm191_vm1, %v5426_v26, 0.0 }
  0xeb   :  { %7781 = vst [vmem:[#allocation2_spill] sm:$0xff] %v5428_v27  ;;  %v4642_v28 = vpop.f32.mrb[4].mxu0  ;;  %v198_v29 = vsel %vm191_vm1, %v5428_v27, 0.0 }
  0xec   :  { %v164_v31 = vpop.f32.mrb[5].mxu0  ;;  %199 = vadd.xlane.f32.xlu1 %v198_v29  ;;  %196 = vadd.xlane.f32.xlu0 %v195_v30  ;;  %v5434_v32 = vadd.f32 %v4642_v28, %v52_v19  ;;  %v4849_v28 = vpack.c.bf16 %v324_v25, %v323_v24 }
  0xed   :  { %v5436_v33 = vadd.f32 %v164_v31, %v51_v17 }
  0xee   :  { %7782 = vst [vmem:[#allocation3_spill] sm:$0xff] %v5434_v32  ;;  %v207_v40 = vsel %vm191_vm1, %v5434_v32, 0.0 }
  0xef   :  { %7783 = vst [vmem:[#allocation4_spill] sm:$0xff] %v5436_v33  ;;  %v4645_v35 = vpop.f32.mrb[6].mxu0  ;;  %v204_v36 = vsel %vm191_vm1, %v5436_v33, 0.0 }
  0xf0   :  { %v174_v37 = vpop.f32.mrb[7].mxu0  ;;  %202 = vadd.xlane.f32.xlu1 %v201_v34  ;;  %205 = vadd.xlane.f32.xlu0 %v204_v36  ;;  %v5442_v38 = vadd.f32 %v4645_v35, %v52_v19  ;;  %v321_v19 = vld [vmem:[%s7756_s3] sm:$0xff] }
  0xf1   :  { %v5444_v39 = vadd.f32 %v174_v37, %v51_v17  ;;  %v4845_v23 = vpack.c.bf16 %v322_v20, %v321_v19 }
  0xf2   :  { %7784 = vst [vmem:[#allocation5_spill] sm:$0xff] %v5442_v38  ;;  %v213_v42 = vsel %vm191_vm1, %v5442_v38, 0.0 }
  0xf3   :  { %7785 = vst [vmem:[#allocation6_spill] sm:$0xff] %v5444_v39  ;;  %v210_v41 = vsel %vm191_vm1, %v5444_v39, 0.0  ;;  %4846 = vmatprep.subr.bf16.mxu1 %v4845_v23 }
  0xf4   :  { %208 = vadd.xlane.f32.xlu1 %v207_v40  ;;  %211 = vadd.xlane.f32.xlu0 %v210_v41 }
  0xf5   :  { %4848 = vmatpush3.bf16.msra.mxu1 %v4845_v23 }
  0xf6   :  { %4850 = vmatprep.subr.bf16.mxu1 %v4849_v28 }
  0xf8   :  { %214 = vadd.xlane.f32.xlu1 %v213_v42 }
  0xf9   :  { %4852 = vmatpush3.bf16.msra.mxu1 %v4849_v28 }
 0x175   :  { %v194_v43 = vpop.xlane.xlu0 %193 }
 0x176   :  { %v217_v44 = vmul.f32 0.03125, %v194_v43 }
 0x178   :  { %v5453_v45 = vsub.f32 %v5420_v21, %v217_v44 }
 0x179   :  { %v200_v46 = vpop.xlane.xlu1 %199  ;;  %v197_v47 = vpop.xlane.xlu0 %196 }
 0x17a   :  { %v219_v48 = vmul.f32 0.03125, %v200_v46  ;;  %v218_v49 = vmul.f32 0.03125, %v197_v47  ;;  %v233_v50 = vmul.f32 %v5453_v45, %v5453_v45 }
 0x17c   :  { %v5458_v51 = vsub.f32 %v5428_v27, %v219_v48  ;;  %v5461_v52 = vsub.f32 %v5422_v22, %v218_v49  ;;  %v241_v53 = vsel %vm191_vm1, %v233_v50, 0.0 }
 0x17d   :  { %v203_v54 = vpop.xlane.xlu1 %202  ;;  %242 = vadd.xlane.f32.xlu0 %v241_v53  ;;  %v206_v55 = vpop.xlane.xlu0 %205 }
 0x17e   :  { %v220_v56 = vmul.f32 0.03125, %v203_v54  ;;  %v221_v57 = vmul.f32 0.03125, %v206_v55  ;;  %v235_v58 = vmul.f32 %v5458_v51, %v5458_v51  ;;  %v234_v59 = vmul.f32 %v5461_v52, %v5461_v52 }
 0x180   :  { %v5469_v60 = vsub.f32 %v5426_v26, %v220_v56  ;;  %v5472_v61 = vsub.f32 %v5436_v33, %v221_v57  ;;  %v247_v62 = vsel %vm191_vm1, %v235_v58, 0.0  ;;  %v244_v63 = vsel %vm191_vm1, %v234_v59, 0.0  ;;  %v4384_v58 = vld [vmem:[%s7757_s7] ss:$0 sm:$0xff] }
 0x181   :  { %v209_v0 = vpop.xlane.xlu1 %208  ;;  %248 = vadd.xlane.f32.xlu0 %v247_v62  ;;  %245 = vadd.xlane.f32.xlu1 %v244_v63  ;;  %v212_v1 = vpop.xlane.xlu0 %211 }
 0x182   :  { %v222_v2 = vmul.f32 0.03125, %v209_v0  ;;  %v223_v3 = vmul.f32 0.03125, %v212_v1  ;;  %v236_v4 = vmul.f32 %v5469_v60, %v5469_v60  ;;  %v237_v5 = vmul.f32 %v5472_v61, %v5472_v61  ;;  %v4385_v0 = vld [vmem:[%s7757_s7 + $0x1] ss:$0 sm:$0xff] }
 0x184   :  { %v5481_v6 = vsub.f32 %v5434_v32, %v222_v2  ;;  %v5484_v7 = vsub.f32 %v5444_v39, %v223_v3  ;;  %v250_v8 = vsel %vm191_vm1, %v236_v4, 0.0  ;;  %v253_v9 = vsel %vm191_vm1, %v237_v5, 0.0 }
 0x185   :  { %v215_v10 = vpop.xlane.xlu1 %214  ;;  %251 = vadd.xlane.f32.xlu1 %v250_v8  ;;  %254 = vadd.xlane.f32.xlu0 %v253_v9 }
 0x186   :  { %v224_v11 = vmul.f32 0.03125, %v215_v10  ;;  %v238_v12 = vmul.f32 %v5481_v6, %v5481_v6  ;;  %v239_v13 = vmul.f32 %v5484_v7, %v5484_v7 }
 0x188   :  { %v5493_v14 = vsub.f32 %v5442_v38, %v224_v11  ;;  %v256_v15 = vsel %vm191_vm1, %v238_v12, 0.0  ;;  %v259_v16 = vsel %vm191_vm1, %v239_v13, 0.0 }
 0x189   :  { %257 = vadd.xlane.f32.xlu1 %v256_v15  ;;  %260 = vadd.xlane.f32.xlu0 %v259_v16 }
 0x18a   :  { %v240_v17 = vmul.f32 %v5493_v14, %v5493_v14 }
 0x18c   :  { %v262_v18 = vsel %vm191_vm1, %v240_v17, 0.0 }
 0x18d   :  { %263 = vadd.xlane.f32.xlu1 %v262_v18 }
 0x20a   :  { %v243_v29 = vpop.xlane.xlu0 %242 }
 0x20b   :  { %v265_v30 = vmul.f32 0.03125, %v243_v29 }
 0x20d   :  { %v273_v31 = vadd.f32 1e-05, %v265_v30 }
 0x20e   :  { %v246_v34 = vpop.xlane.xlu1 %245  ;;  %v249_v35 = vpop.xlane.xlu0 %248 }
 0x20f   :  { %5063 = vrsqrt.f32 %v273_v31  ;;  %v266_v36 = vmul.f32 0.03125, %v246_v34  ;;  %v267_v37 = vmul.f32 0.03125, %v249_v35 }
 0x211   :  { %v274_v40 = vadd.f32 1e-05, %v266_v36  ;;  %v275_v41 = vadd.f32 1e-05, %v267_v37 }
 0x212   :  { %v252_v42 = vpop.xlane.xlu1 %251  ;;  %v255_v43 = vpop.xlane.xlu0 %254 }
 0x213   :  { %5065 = vrsqrt.f32 %v274_v40  ;;  %v268_v44 = vmul.f32 0.03125, %v252_v42  ;;  %v269_v46 = vmul.f32 0.03125, %v255_v43 }
 0x214   :  { %5067 = vrsqrt.f32 %v275_v41 }
 0x215   :  { %v276_v47 = vadd.f32 1e-05, %v268_v44  ;;  %v277_v48 = vadd.f32 1e-05, %v269_v46 }
 0x216   :  { %v258_v49 = vpop.xlane.xlu1 %257  ;;  %v261_v50 = vpop.xlane.xlu0 %260 }
 0x217   :  { %5069 = vrsqrt.f32 %v276_v47  ;;  %v270_v53 = vmul.f32 0.03125, %v258_v49  ;;  %v271_v54 = vmul.f32 0.03125, %v261_v50 }
 0x218   :  { %5071 = vrsqrt.f32 %v277_v48 }
 0x219   :  { %v5064_v55 = vpop.eup %5063  ;;  %v278_v56 = vadd.f32 1e-05, %v270_v53  ;;  %v279_v57 = vadd.f32 1e-05, %v271_v54 }
 0x21a   :  { %v264_v59 = vpop.xlane.xlu1 %263  ;;  %v289_v62 = vmul.f32 %v5064_v55, %v5453_v45 }
 0x21b   :  { %5073 = vrsqrt.f32 %v278_v56  ;;  %v272_v63 = vmul.f32 0.03125, %v264_v59 }
 0x21c   :  { %5075 = vrsqrt.f32 %v279_v57  ;;  %v301_v1 = vmul.f32 %v4384_v58, %v289_v62 }
 0x21d   :  { %v5066_v2 = vpop.eup %5065  ;;  %v280_v3 = vadd.f32 1e-05, %v272_v63 }
 0x21e   :  { %v5068_v4 = vpop.eup %5067  ;;  %v313_v5 = vadd.f32 %v4385_v0, %v301_v1  ;;  %v290_v8 = vmul.f32 %v5066_v2, %v5461_v52 }
 0x21f   :  { %5077 = vrsqrt.f32 %v280_v3  ;;  %v291_v9 = vmul.f32 %v5068_v4, %v5458_v51 }
 0x220   :  { %4654 = vmatprep.mubr.msk.f32.mxu1 %vm191_vm1, %v313_v5  ;;  %v302_v45 = vmul.f32 %v4384_v58, %v290_v8 }
 0x221   :  { %v5070_v10 = vpop.eup %5069  ;;  %v303_v11 = vmul.f32 %v4384_v58, %v291_v9 }
 0x222   :  { %v5072_v12 = vpop.eup %5071  ;;  %v314_v13 = vadd.f32 %v4385_v0, %v302_v45  ;;  %v292_v15 = vmul.f32 %v5070_v10, %v5469_v60 }
 0x223   :  { %v315_v16 = vadd.f32 %v4385_v0, %v303_v11  ;;  %v293_v17 = vmul.f32 %v5072_v12, %v5472_v61 }
 0x224   :  { %4655 = vmatmul.mubr.msk.f32.vlgmr.msra.gmra.mrb[0].mxu1 %vm191_vm1, %v314_v13  ;;  %v304_v18 = vmul.f32 %v4384_v58, %v292_v15 }
 0x225   :  { %v5074_v19 = vpop.eup %5073  ;;  %4657 = vmatprep.mubr.msk.f32.mxu1 %vm191_vm1, %v315_v16  ;;  %v305_v52 = vmul.f32 %v4384_v58, %v293_v17 }
 0x226   :  { %v5076_v51 = vpop.eup %5075  ;;  %v316_v20 = vadd.f32 %v4385_v0, %v304_v18  ;;  %v294_v23 = vmul.f32 %v5074_v19, %v5481_v6 }
 0x227   :  { %v317_v24 = vadd.f32 %v4385_v0, %v305_v52  ;;  %v295_v25 = vmul.f32 %v5076_v51, %v5484_v7  ;;  %v4386_v7 = vld [vmem:[%s7757_s7 + $0x7] ss:$0 sm:$0xff] }
 0x228   :  { %4658 = vmatmul.mubr.msk.f32.gmra.mrb[2].mxu1 %vm191_vm1, %v316_v20  ;;  %v306_v60 = vmul.f32 %v4384_v58, %v294_v23 }
 0x229   :  { %v5078_v28 = vpop.eup %5077  ;;  %4660 = vmatprep.mubr.msk.f32.mxu1 %vm191_vm1, %v317_v24  ;;  %v307_v61 = vmul.f32 %v4384_v58, %v295_v25 }
 0x22a   :  { %v318_v29 = vadd.f32 %v4385_v0, %v306_v60  ;;  %v296_v30 = vmul.f32 %v5078_v28, %v5493_v14 }
 0x22b   :  { %v319_v31 = vadd.f32 %v4385_v0, %v307_v61 }
 0x22c   :  { %4661 = vmatmul.mubr.msk.f32.gmra.mrb[4].mxu1 %vm191_vm1, %v318_v29  ;;  %v308_v34 = vmul.f32 %v4384_v58, %v296_v30 }
 0x22d   :  { %4663 = vmatprep.mubr.msk.f32.mxu1 %vm191_vm1, %v319_v31 }
 0x22e   :  { %v320_v6 = vadd.f32 %v4385_v0, %v308_v34 }
 0x230   :  { %4664 = vmatmul.mubr.msk.f32.gmra.mrb[6].mxu1 %vm191_vm1, %v320_v6 }
 0x2f7   :  { %v4656_v35 = vpop.f32.mrb[0].mxu1 }
 0x2f8   :  { %v5537_v36 = vadd.f32 %v4656_v35, %v4386_v7  ;;  %v419_v37 = vpop.f32.mrb[1].mxu1 }
 0x2f9   :  { %v5539_v40 = vadd.f32 %v4386_v7, %v419_v37 }
 0x2fa   :  { %464 = vrot.lane.b32.xlu1 %v5537_v36, %s5291_s21  ;;  %v5570_v55 = vmul.f32 0.25, %v5537_v36 }
 0x2fb   :  { %462 = vrot.lane.b32.xlu0 %v5539_v40, %s5291_s21  ;;  %v4659_v14 = vpop.f32.mrb[2].mxu1  ;;  %v5596_v9 = vmul.f32 0.25, %v5539_v40 }
 0x2fc   :  { %v5545_v41 = vadd.f32 %v4659_v14, %v4386_v7  ;;  %v429_v42 = vpop.f32.mrb[3].mxu1 }
 0x2fd   :  { %v5549_v44 = vadd.f32 %v4386_v7, %v429_v42 }
 0x2fe   :  { %481 = vrot.lane.b32.xlu1 %v5545_v41, %s5291_s21  ;;  %v5575_v58 = vmul.f32 0.25, %v5545_v41 }
 0x2ff   :  { %v4662_v43 = vpop.f32.mrb[4].mxu1  ;;  %v5603_v12 = vmul.f32 0.25, %v5549_v44 }
 0x300   :  { %v439_v46 = vpop.f32.mrb[5].mxu1  ;;  %v5557_v49 = vadd.f32 %v4662_v43, %v4386_v7 }
 0x301   :  { %v5551_v47 = vadd.f32 %v4386_v7, %v439_v46 }
 0x302   :  { %479 = vrot.lane.b32.xlu1 %v5549_v44, %s5291_s21  ;;  %v5582_v0 = vmul.f32 0.25, %v5557_v49 }
 0x303   :  { %495 = vrot.lane.b32.xlu0 %v5551_v47, %s5291_s21  ;;  %v4665_v48 = vpop.f32.mrb[6].mxu1  ;;  %v5610_v16 = vmul.f32 0.25, %v5551_v47 }
 0x304   :  { %v449_v50 = vpop.f32.mrb[7].mxu1  ;;  %v5565_v54 = vadd.f32 %v4665_v48, %v4386_v7 }
 0x305   :  { %v5559_v53 = vadd.f32 %v4386_v7, %v449_v50 }
 0x306   :  { %497 = vrot.lane.b32.xlu1 %v5557_v49, %s5291_s21  ;;  %v5589_v3 = vmul.f32 0.25, %v5565_v54 }
 0x307   :  { %511 = vrot.lane.b32.xlu0 %v5559_v53, %s5291_s21  ;;  %v5617_v19 = vmul.f32 0.25, %v5559_v53 }
 0x30a   :  { %513 = vrot.lane.b32.xlu1 %v5565_v54, %s5291_s21 }
 0x36c   :  { %v465_v56 = vpop.permute.xlu1 %464 }
 0x36d   :  { %v469_v57 = vmul.f32 %v465_v56, %v5570_v55  ;;  %v762_v63 = vmul.f32 %v5575_v58, %v465_v56  ;;  %v1026_v2 = vmul.f32 %v5582_v0, %v465_v56  ;;  %v1290_v5 = vmul.f32 %v5589_v3, %v465_v56  ;;  %v463_v8 = vpop.permute.xlu0 %462 }
 0x36e   :  { %v468_v10 = vmul.f32 %v463_v8, %v5596_v9  ;;  %v761_v15 = vmul.f32 %v5603_v12, %v463_v8  ;;  %v1025_v18 = vmul.f32 %v5610_v16, %v463_v8  ;;  %v1289_v51 = vmul.f32 %v5617_v19, %v463_v8 }
 0x36f   :  { %609 = vrot.lane.b32.xlu0 %v469_v57, %s5292_s22  ;;  %v474_v23 = vsel %vm470_vm2, %v469_v57, 0.0  ;;  %v766_v24 = vsel %vm470_vm2, %v762_v63, 0.0  ;;  %v1030_v25 = vsel %vm470_vm2, %v1026_v2, 0.0  ;;  %v1294_v28 = vsel %vm470_vm2, %v1290_v5, 0.0 }
 0x370   :  { %v482_v59 = vpop.permute.xlu1 %481  ;;  %v471_v29 = vsel %vm470_vm2, %v468_v10, 0.0  ;;  %v763_v31 = vsel %vm470_vm2, %v761_v15, 0.0  ;;  %v1027_v6 = vsel %vm470_vm2, %v1025_v18, 0.0  ;;  %v1291_v35 = vsel %vm470_vm2, %v1289_v51, 0.0 }
 0x371   :  { %v486_v62 = vmul.f32 %v482_v59, %v5570_v55  ;;  %v770_v1 = vmul.f32 %v5575_v58, %v482_v59  ;;  %v1034_v4 = vmul.f32 %v5582_v0, %v482_v59  ;;  %v1298_v45 = vmul.f32 %v5589_v3, %v482_v59 }
 0x373   :  { %623 = vrot.lane.b32.xlu1 %v486_v62, %s5292_s22  ;;  %873 = vrot.lane.b32.xlu0 %v762_v63, %s5292_s22  ;;  %v490_v60 = vsel %vm470_vm2, %v486_v62, 0.0  ;;  %v774_v61 = vsel %vm470_vm2, %v770_v1, 0.0  ;;  %v1038_v30 = vsel %vm470_vm2, %v1034_v4, 0.0  ;;  %v1302_v34 = vsel %vm470_vm2, %v1298_v45, 0.0 }
 0x374   :  { %v480_v11 = vpop.permute.xlu1 %479 }
 0x375   :  { %v485_v13 = vmul.f32 %v480_v11, %v5596_v9  ;;  %v769_v17 = vmul.f32 %v5603_v12, %v480_v11  ;;  %v1033_v52 = vmul.f32 %v5610_v16, %v480_v11  ;;  %v1297_v20 = vmul.f32 %v5617_v19, %v480_v11  ;;  %v496_v43 = vpop.permute.xlu0 %495 }
 0x376   :  { %v501_v46 = vmul.f32 %v496_v43, %v5596_v9  ;;  %v777_v56 = vmul.f32 %v5603_v12, %v496_v43  ;;  %v1041_v59 = vmul.f32 %v5610_v16, %v496_v43  ;;  %v1305_v63 = vmul.f32 %v5617_v19, %v496_v43 }
 0x377   :  { %887 = vrot.lane.b32.xlu1 %v770_v1, %s5292_s22  ;;  %1137 = vrot.lane.b32.xlu0 %v1026_v2, %s5292_s22  ;;  %v487_v7 = vsel %vm470_vm2, %v485_v13, 0.0  ;;  %v771_v37 = vsel %vm470_vm2, %v769_v17, 0.0  ;;  %v1035_v14 = vsel %vm470_vm2, %v1033_v52, 0.0  ;;  %v1299_v42 = vsel %vm470_vm2, %v1297_v20, 0.0 }
 0x378   :  { %v498_v48 = vpop.permute.xlu1 %497 }
 0x379   :  { %v502_v50 = vmul.f32 %v498_v48, %v5570_v55  ;;  %v778_v57 = vmul.f32 %v5575_v58, %v498_v48  ;;  %v1042_v62 = vmul.f32 %v5582_v0, %v498_v48  ;;  %v1306_v1 = vmul.f32 %v5589_v3, %v498_v48 }
 0x37b   :  { %1151 = vrot.lane.b32.xlu1 %v1034_v4, %s5292_s22  ;;  %1401 = vrot.lane.b32.xlu0 %v1290_v5, %s5292_s22  ;;  %v782_v11 = vsel %vm470_vm2, %v778_v57, 0.0 }
 0x37c   :  { %v514_v2 = vpop.permute.xlu1 %513 }
 0x37d   :  { %v5658_v4 = vmul.f32 %v514_v2, %v5570_v55  ;;  %v5663_v5 = vmul.f32 %v5575_v58, %v514_v2  ;;  %v5668_v8 = vmul.f32 %v5582_v0, %v514_v2  ;;  %v512_v55 = vpop.permute.xlu0 %511  ;;  %v1046_v0 = vsel %vm470_vm2, %v1042_v62, 0.0 }
 0x37f   :  { %1415 = vrot.lane.b32.xlu1 %v1298_v45, %s5292_s22  ;;  %607 = vrot.lane.b32.xlu0 %v468_v10, %s5292_s22  ;;  %v5673_v45 = vmul.f32 %v5589_v3, %v514_v2  ;;  %v506_v10 = vsel %vm470_vm2, %v502_v50, 0.0  ;;  %v1310_v3 = vsel %vm470_vm2, %v1306_v1, 0.0 }
 0x383   :  { %621 = vrot.lane.b32.xlu1 %v485_v13, %s5292_s22  ;;  %871 = vrot.lane.b32.xlu0 %v761_v15, %s5292_s22 }
 0x387   :  { %885 = vrot.lane.b32.xlu1 %v769_v17, %s5292_s22  ;;  %1135 = vrot.lane.b32.xlu0 %v1025_v18, %s5292_s22  ;;  %v503_v18 = vsel %vm470_vm2, %v501_v46, 0.0 }
 0x38b   :  { %1149 = vrot.lane.b32.xlu1 %v1033_v52, %s5292_s22  ;;  %1399 = vrot.lane.b32.xlu0 %v1289_v51, %s5292_s22  ;;  %v779_v51 = vsel %vm470_vm2, %v777_v56, 0.0 }
 0x38f   :  { %1413 = vrot.lane.b32.xlu1 %v1297_v20, %s5292_s22 }
 0x3aa   :  { %475 = vadd.xlane.f32.xlu0 %v474_v23  ;;  %v517_v23 = vmul.f32 %v512_v55, %v5596_v9 }
 0x3ae   :  { %767 = vadd.xlane.f32.xlu0 %v766_v24 }
 0x3b2   :  { %1031 = vadd.xlane.f32.xlu0 %v1030_v25  ;;  %v1043_v25 = vsel %vm470_vm2, %v1041_v59, 0.0 }
 0x3b3   :  { %491 = vadd.xlane.f32.xlu1 %v490_v60  ;;  %v519_v60 = vsel %vm470_vm2, %v517_v23, 0.0 }
 0x3b6   :  { %1295 = vadd.xlane.f32.xlu0 %v1294_v28  ;;  %v785_v28 = vmul.f32 %v5603_v12, %v512_v55 }
 0x3b7   :  { %775 = vadd.xlane.f32.xlu1 %v774_v61 }
 0x3ba   :  { %472 = vadd.xlane.f32.xlu0 %v471_v29  ;;  %v1307_v29 = vsel %vm470_vm2, %v1305_v63, 0.0 }
 0x3bb   :  { %1039 = vadd.xlane.f32.xlu1 %v1038_v30  ;;  %v787_v30 = vsel %vm470_vm2, %v785_v28, 0.0 }
 0x3be   :  { %764 = vadd.xlane.f32.xlu0 %v763_v31  ;;  %v1049_v31 = vmul.f32 %v5610_v16, %v512_v55 }
 0x3bf   :  { %1303 = vadd.xlane.f32.xlu1 %v1302_v34 }
 0x3c2   :  { %1028 = vadd.xlane.f32.xlu0 %v1027_v6  ;;  %v1051_v6 = vsel %vm470_vm2, %v1049_v31, 0.0 }
 0x3c3   :  { %488 = vadd.xlane.f32.xlu1 %v487_v7  ;;  %v1313_v7 = vmul.f32 %v5617_v19, %v512_v55 }
 0x3c6   :  { %1292 = vadd.xlane.f32.xlu0 %v1291_v35  ;;  %v1315_v35 = vsel %vm470_vm2, %v1313_v7, 0.0 }
 0x3c7   :  { %772 = vadd.xlane.f32.xlu1 %v771_v37 }
 0x3cb   :  { %1036 = vadd.xlane.f32.xlu1 %v1035_v14 }
 0x3cf   :  { %1300 = vadd.xlane.f32.xlu1 %v1299_v42 }
 0x3dc   :  { %635 = vrot.lane.b32.xlu0 %v501_v46, %s5292_s22 }
 0x3e0   :  { %637 = vrot.lane.b32.xlu1 %v502_v50, %s5292_s22  ;;  %899 = vrot.lane.b32.xlu0 %v777_v56, %s5292_s22 }
 0x3e1   :  { %v610_v58 = vpop.permute.xlu0 %609 }
 0x3e2   :  { %v616_v14 = vsel %vm470_vm2, %v610_v58, 0.0 }
 0x3e4   :  { %901 = vrot.lane.b32.xlu1 %v778_v57, %s5292_s22  ;;  %1163 = vrot.lane.b32.xlu0 %v1041_v59, %s5292_s22 }
 0x3e5   :  { %v874_v13 = vpop.permute.xlu0 %873  ;;  %v5680_v15 = vpop.permute.xlu1 %623 }
 0x3e6   :  { %v880_v43 = vsel %vm470_vm2, %v874_v13, 0.0 }
 0x3e8   :  { %1165 = vrot.lane.b32.xlu1 %v1042_v62, %s5292_s22  ;;  %1427 = vrot.lane.b32.xlu0 %v1305_v63, %s5292_s22 }
 0x3e9   :  { %v1138_v17 = vpop.permute.xlu0 %1137  ;;  %v5684_v52 = vpop.permute.xlu1 %887 }
 0x3ea   :  { %v1144_v19 = vsel %vm470_vm2, %v1138_v17, 0.0 }
 0x3ec   :  { %1429 = vrot.lane.b32.xlu1 %v1306_v1, %s5292_s22 }
 0x3ed   :  { %v1402_v20 = vpop.permute.xlu0 %1401  ;;  %v5688_v24 = vpop.permute.xlu1 %1151 }
 0x3ee   :  { %v1408_v56 = vsel %vm470_vm2, %v1402_v20, 0.0 }
 0x3f0   :  { %651 = vrot.lane.b32.xlu1 %v5658_v4, %s5292_s22 }
 0x3f1   :  { %v5693_v61 = vpop.permute.xlu0 %607  ;;  %v5698_v9 = vpop.permute.xlu1 %1415 }
 0x3f4   :  { %915 = vrot.lane.b32.xlu1 %v5663_v5, %s5292_s22 }
 0x3f5   :  { %v5700_v34 = vpop.permute.xlu0 %871  ;;  %v5704_v12 = vpop.permute.xlu1 %621 }
 0x3f8   :  { %1179 = vrot.lane.b32.xlu1 %v5668_v8, %s5292_s22 }
 0x3f9   :  { %v5707_v37 = vpop.permute.xlu0 %1135  ;;  %v886_v16 = vpop.permute.xlu1 %885 }
 0x3fa   :  { %v891_v62 = vsel %vm470_vm2, %v886_v16, 0.0 }
 0x3fc   :  { %1443 = vrot.lane.b32.xlu1 %v5673_v45, %s5292_s22 }
 0x3fd   :  { %v5710_v42 = vpop.permute.xlu0 %1399  ;;  %v1150_v46 = vpop.permute.xlu1 %1149 }
 0x3fe   :  { %v1155_v2 = vsel %vm470_vm2, %v1150_v46, 0.0 }
 0x401   :  { %v1414_v57 = vpop.permute.xlu1 %1413 }
 0x402   :  { %v1419_v58 = vsel %vm470_vm2, %v1414_v57, 0.0  ;;  %v613_v57 = vsel %vm470_vm2, %v5693_v61, 0.0 }
 0x407   :  { %507 = vadd.xlane.f32.xlu0 %v506_v10 }
 0x40b   :  { %783 = vadd.xlane.f32.xlu0 %v782_v11 }
 0x40f   :  { %1047 = vadd.xlane.f32.xlu0 %v1046_v0 }
 0x413   :  { %1311 = vadd.xlane.f32.xlu0 %v1310_v3 }
 0x417   :  { %504 = vadd.xlane.f32.xlu0 %v503_v18 }
 0x41b   :  { %780 = vadd.xlane.f32.xlu0 %v779_v51 }
 0x41f   :  { %1044 = vadd.xlane.f32.xlu0 %v1043_v25 }
 0x420   :  { %520 = vadd.xlane.f32.xlu1 %v519_v60 }
 0x423   :  { %1308 = vadd.xlane.f32.xlu0 %v1307_v29 }
 0x424   :  { %788 = vadd.xlane.f32.xlu1 %v787_v30 }
 0x428   :  { %1052 = vadd.xlane.f32.xlu1 %v1051_v6 }
 0x42c   :  { %1316 = vadd.xlane.f32.xlu1 %v1315_v35  ;;  %v522_v35 = vsel %vm470_vm2, %v5658_v4, 0.0 }
 0x430   :  { %617 = vadd.xlane.f32.xlu1 %v616_v14 }
 0x434   :  { %881 = vadd.xlane.f32.xlu1 %v880_v43  ;;  %v790_v43 = vsel %vm470_vm2, %v5663_v5, 0.0 }
 0x437   :  { %v5713_v48 = vpop.xlane.xlu0 %475 }
 0x438   :  { %1145 = vadd.xlane.f32.xlu1 %v1144_v19  ;;  %v1054_v19 = vsel %vm470_vm2, %v5668_v8, 0.0  ;;  %v1141_v8 = vsel %vm470_vm2, %v5707_v37, 0.0  ;;  %v894_v37 = vsel %vm470_vm2, %v5684_v52, 0.0 }
 0x439   :  { %649 = vrot.lane.b32.xlu0 %v517_v23, %s5292_s22 }
 0x43b   :  { %v5717_v50 = vpop.xlane.xlu0 %767 }
 0x43c   :  { %1409 = vadd.xlane.f32.xlu1 %v1408_v56 }
 0x43d   :  { %913 = vrot.lane.b32.xlu0 %v785_v28, %s5292_s22 }
 0x43f   :  { %v5721_v59 = vpop.xlane.xlu0 %1031 }
 0x440   :  { %v5724_v63 = vpop.xlane.xlu1 %491  ;;  %892 = vadd.xlane.f32.xlu1 %v891_v62 }
 0x441   :  { %1177 = vrot.lane.b32.xlu0 %v1049_v31, %s5292_s22 }
 0x443   :  { %v5727_v1 = vpop.xlane.xlu0 %1295 }
 0x444   :  { %v5730_v55 = vpop.xlane.xlu1 %775  ;;  %1156 = vadd.xlane.f32.xlu1 %v1155_v2  ;;  %v877_v2 = vsel %vm470_vm2, %v5700_v34, 0.0 }
 0x445   :  { %1441 = vrot.lane.b32.xlu0 %v1313_v7, %s5292_s22 }
 0x447   :  { %v5733_v10 = vpop.xlane.xlu0 %472 }
 0x448   :  { %v5736_v11 = vpop.xlane.xlu1 %1039  ;;  %1420 = vadd.xlane.f32.xlu1 %v1419_v58 }
 0x44b   :  { %v5738_v0 = vpop.xlane.xlu0 %764 }
 0x44c   :  { %v5740_v13 = vpop.xlane.xlu1 %1303 }
 0x44f   :  { %v5742_v3 = vpop.xlane.xlu0 %1028 }
 0x450   :  { %v5744_v17 = vpop.xlane.xlu1 %488 }
 0x453   :  { %v5746_v18 = vpop.xlane.xlu0 %1292 }
 0x454   :  { %v5748_v51 = vpop.xlane.xlu1 %772 }
 0x457   :  { %v636_v20 = vpop.permute.xlu0 %635 }
 0x458   :  { %v5750_v23 = vpop.xlane.xlu1 %1036  ;;  %v641_v25 = vsel %vm470_vm2, %v636_v20, 0.0 }
 0x459   :  { %642 = vadd.xlane.f32.xlu1 %v641_v25  ;;  %v1405_v25 = vsel %vm470_vm2, %v5710_v42, 0.0  ;;  %v1422_v42 = vsel %vm470_vm2, %v5698_v9, 0.0 }
 0x45b   :  { %v900_v60 = vpop.permute.xlu0 %899 }
 0x45c   :  { %v5753_v28 = vpop.xlane.xlu1 %1300  ;;  %v905_v29 = vsel %vm470_vm2, %v900_v60, 0.0 }
 0x45d   :  { %906 = vadd.xlane.f32.xlu1 %v905_v29  ;;  %v630_v29 = vsel %vm470_vm2, %v5680_v15, 0.0 }
 0x45f   :  { %v1164_v30 = vpop.permute.xlu0 %1163 }
 0x460   :  { %v638_v31 = vpop.permute.xlu1 %637  ;;  %v1169_v6 = vsel %vm470_vm2, %v1164_v30, 0.0  ;;  %v1158_v30 = vsel %vm470_vm2, %v5688_v24, 0.0 }
 0x461   :  { %1170 = vadd.xlane.f32.xlu1 %v1169_v6  ;;  %v627_v6 = vsel %vm470_vm2, %v5704_v12, 0.0  ;;  %v1318_v12 = vsel %vm470_vm2, %v5673_v45, 0.0 }
 0x463   :  { %v1428_v7 = vpop.permute.xlu0 %1427 }
 0x464   :  { %v902_v14 = vpop.permute.xlu1 %901  ;;  %523 = vadd.xlane.f32.xlu0 %v522_v35  ;;  %v1433_v16 = vsel %vm470_vm2, %v1428_v7, 0.0  ;;  %v644_v7 = vsel %vm470_vm2, %v638_v31, 0.0 }
 0x465   :  { %1434 = vadd.xlane.f32.xlu1 %v1433_v16  ;;  %v908_v35 = vsel %vm470_vm2, %v902_v14, 0.0 }
 0x468   :  { %v1166_v46 = vpop.permute.xlu1 %1165  ;;  %791 = vadd.xlane.f32.xlu0 %v790_v43 }
 0x469   :  { %v1172_v16 = vsel %vm470_vm2, %v1166_v46, 0.0 }
 0x46c   :  { %v1430_v56 = vpop.permute.xlu1 %1429  ;;  %1055 = vadd.xlane.f32.xlu0 %v1054_v19 }
 0x46d   :  { %v1436_v43 = vsel %vm470_vm2, %v1430_v56, 0.0 }
 0x470   :  { %v652_v62 = vpop.permute.xlu1 %651  ;;  %614 = vadd.xlane.f32.xlu0 %v613_v57 }
 0x471   :  { %v658_v4 = vsel %vm470_vm2, %v652_v62, 0.0 }
 0x472   :  { %659 = vadd.xlane.f32.xlu1 %v658_v4 }
 0x474   :  { %v916_v58 = vpop.permute.xlu1 %915  ;;  %878 = vadd.xlane.f32.xlu0 %v877_v2 }
 0x475   :  { %v922_v5 = vsel %vm470_vm2, %v916_v58, 0.0 }
 0x476   :  { %923 = vadd.xlane.f32.xlu1 %v922_v5 }
 0x478   :  { %v1180_v20 = vpop.permute.xlu1 %1179  ;;  %1142 = vadd.xlane.f32.xlu0 %v1141_v8 }
 0x479   :  { %v1186_v61 = vsel %vm470_vm2, %v1180_v20, 0.0 }
 0x47a   :  { %1187 = vadd.xlane.f32.xlu1 %v1186_v61 }
 0x47c   :  { %v1444_v60 = vpop.permute.xlu1 %1443  ;;  %1406 = vadd.xlane.f32.xlu0 %v1405_v25 }
 0x47d   :  { %v1450_v34 = vsel %vm470_vm2, %v1444_v60, 0.0 }
 0x47e   :  { %1451 = vadd.xlane.f32.xlu1 %v1450_v34 }
 0x480   :  { %631 = vadd.xlane.f32.xlu0 %v630_v29 }
 0x484   :  { %895 = vadd.xlane.f32.xlu0 %v894_v37  ;;  %v527_v37 = vsel %vm525_vm3, %v5713_v48, %v5724_v63 }
 0x488   :  { %1159 = vadd.xlane.f32.xlu0 %v1158_v30 }
 0x48c   :  { %1423 = vadd.xlane.f32.xlu0 %v1422_v42 }
 0x490   :  { %628 = vadd.xlane.f32.xlu0 %v627_v6 }
 0x494   :  { %645 = vadd.xlane.f32.xlu0 %v644_v7  ;;  %v508_v15 = vpop.xlane.xlu0 %507 }
 0x495   :  { %v530_v42 = vsel %vm528_vm4, %v527_v37, %v508_v15 }
 0x498   :  { %909 = vadd.xlane.f32.xlu0 %v908_v35  ;;  %v784_v52 = vpop.xlane.xlu0 %783 }
 0x49c   :  { %1173 = vadd.xlane.f32.xlu0 %v1172_v16  ;;  %v1048_v24 = vpop.xlane.xlu0 %1047  ;;  %v794_v16 = vsel %vm525_vm3, %v5717_v50, %v5730_v55 }
 0x4a0   :  { %1437 = vadd.xlane.f32.xlu0 %v1436_v43  ;;  %v5790_v9 = vpop.xlane.xlu0 %1311  ;;  %v796_v43 = vsel %vm528_vm4, %v794_v16, %v784_v52 }
 0x4a4   :  { %1319 = vadd.xlane.f32.xlu0 %v1318_v12  ;;  %v5794_v31 = vpop.xlane.xlu0 %504 }
 0x4a8   :  { %v5796_v19 = vpop.xlane.xlu0 %780 }
 0x4ac   :  { %v5798_v14 = vpop.xlane.xlu0 %1044 }
 0x4ad   :  { %v5806_v8 = vpop.xlane.xlu1 %520 }
 0x4b0   :  { %v5800_v57 = vpop.xlane.xlu0 %1308 }
 0x4b1   :  { %v5808_v20 = vpop.xlane.xlu1 %788 }
 0x4b4   :  { %v650_v46 = vpop.permute.xlu0 %649 }
 0x4b5   :  { %v655_v62 = vsel %vm470_vm2, %v650_v46, 0.0  ;;  %v5810_v61 = vpop.xlane.xlu1 %1052  ;;  %v1058_v46 = vsel %vm525_vm3, %v5721_v59, %v5736_v11 }
 0x4b6   :  { %656 = vadd.xlane.f32.xlu1 %v655_v62  ;;  %v1060_v62 = vsel %vm528_vm4, %v1058_v46, %v1048_v24 }
 0x4b8   :  { %v914_v56 = vpop.permute.xlu0 %913 }
 0x4b9   :  { %v919_v4 = vsel %vm470_vm2, %v914_v56, 0.0  ;;  %v5812_v25 = vpop.xlane.xlu1 %1316 }
 0x4ba   :  { %920 = vadd.xlane.f32.xlu1 %v919_v4 }
 0x4bc   :  { %v1178_v2 = vpop.permute.xlu0 %1177 }
 0x4bd   :  { %v1183_v45 = vsel %vm470_vm2, %v1178_v2, 0.0  ;;  %v618_v60 = vpop.xlane.xlu1 %617 }
 0x4be   :  { %1184 = vadd.xlane.f32.xlu1 %v1183_v45 }
 0x4c0   :  { %v1442_v58 = vpop.permute.xlu0 %1441 }
 0x4c1   :  { %v1447_v5 = vsel %vm470_vm2, %v1442_v58, 0.0  ;;  %v882_v34 = vpop.xlane.xlu1 %881 }
 0x4c2   :  { %1448 = vadd.xlane.f32.xlu1 %v1447_v5 }
 0x4c5   :  { %v1146_v29 = vpop.xlane.xlu1 %1145 }
 0x4c9   :  { %v1410_v30 = vpop.xlane.xlu1 %1409 }
 0x4cd   :  { %v5827_v63 = vpop.xlane.xlu1 %892 }
 0x4d1   :  { %v5843_v56 = vpop.xlane.xlu1 %1156 }
 0x4d5   :  { %v5849_v45 = vpop.xlane.xlu1 %1420 }
 0x4e6   :  { %v5853_v11 = vpop.xlane.xlu1 %642 }
 0x4ea   :  { %v5857_v58 = vpop.xlane.xlu1 %906 }
 0x4f1   :  { %v524_v6 = vpop.xlane.xlu0 %523 }
 0x4f2   :  { %v5819_v7 = vsel %vm531_vm5, %v530_v42, %v524_v6  ;;  %v5859_v42 = vpop.xlane.xlu1 %1170 }
 0x4f3   :  { %v538_v35 = vsel %vm534_vm6, %v5819_v7, -inf }
 0x4f4   :  { %539 = vmax.xlane.f32.xlu0 %v538_v35 }
 0x4f5   :  { %v792_v48 = vpop.xlane.xlu0 %791 }
 0x4f6   :  { %v5830_v15 = vsel %vm531_vm5, %v796_v43, %v792_v48  ;;  %v5861_v35 = vpop.xlane.xlu1 %1434 }
 0x4f7   :  { %v802_v12 = vsel %vm534_vm6, %v5830_v15, -inf }
 0x4f8   :  { %803 = vmax.xlane.f32.xlu0 %v802_v12 }
 0x4f9   :  { %v1056_v50 = vpop.xlane.xlu0 %1055 }
 0x4fa   :  { %v5839_v55 = vsel %vm531_vm5, %v1060_v62, %v1056_v50 }
 0x4fb   :  { %v1066_v52 = vsel %vm534_vm6, %v5839_v55, -inf }
 0x4fc   :  { %1067 = vmax.xlane.f32.xlu0 %v1066_v52 }
 0x4fd   :  { %v5845_v4 = vpop.xlane.xlu0 %614 }
 0x4ff   :  { %v660_v43 = vpop.xlane.xlu1 %659 }
 0x501   :  { %v5847_v2 = vpop.xlane.xlu0 %878 }
 0x503   :  { %v924_v62 = vpop.xlane.xlu1 %923 }
 0x505   :  { %v5851_v59 = vpop.xlane.xlu0 %1142 }
 0x509   :  { %v5855_v24 = vpop.xlane.xlu0 %1406 }
 0x50d   :  { %v632_v5 = vpop.xlane.xlu0 %631 }
 0x50e   :  { %v662_v12 = vsel %vm525_vm3, %v618_v60, %v632_v5  ;;  %v1188_v60 = vpop.xlane.xlu1 %1187 }
 0x511   :  { %v896_v37 = vpop.xlane.xlu0 %895 }
 0x512   :  { %v926_v38 = vsel %vm525_vm3, %v882_v34, %v896_v37 }
 0x515   :  { %v1160_v6 = vpop.xlane.xlu0 %1159 }
 0x519   :  { %v1424_v16 = vpop.xlane.xlu0 %1423 }
 0x51d   :  { %v629_v48 = vpop.xlane.xlu0 %628 }
 0x521   :  { %v646_v46 = vpop.xlane.xlu0 %645 }
 0x522   :  { %v664_v50 = vsel %vm528_vm4, %v662_v12, %v646_v46  ;;  %v1190_v12 = vsel %vm525_vm3, %v1146_v29, %v1160_v6  ;;  %v1322_v29 = vsel %vm525_vm3, %v5727_v1, %v5740_v13 }
 0x523   :  { %v5866_v52 = vsel %vm531_vm5, %v664_v50, %v660_v43 }
 0x524   :  { %v670_v39 = vsel %vm534_vm6, %v5866_v52, -inf }
 0x525   :  { %671 = vmax.xlane.f32.xlu1 %v670_v39  ;;  %v910_v33 = vpop.xlane.xlu0 %909 }
 0x526   :  { %v928_v32 = vsel %vm528_vm4, %v926_v38, %v910_v33  ;;  %v1454_v33 = vsel %vm525_vm3, %v1410_v30, %v1424_v16  ;;  %v1452_v38 = vpop.xlane.xlu1 %1451  ;;  %v526_v16 = vsel %vm525_vm3, %v5733_v10, %v5744_v17 }
 0x527   :  { %v5873_v27 = vsel %vm531_vm5, %v928_v32, %v924_v62  ;;  %v1324_v62 = vsel %vm528_vm4, %v1322_v29, %v5790_v9  ;;  %v793_v9 = vsel %vm525_vm3, %v5738_v0, %v5748_v51 }
 0x528   :  { %v934_v5 = vsel %vm534_vm6, %v5873_v27, -inf  ;;  %v795_v10 = vsel %vm528_vm4, %v793_v9, %v5796_v19  ;;  %v1321_v19 = vsel %vm525_vm3, %v5746_v18, %v5753_v28  ;;  %v925_v28 = vsel %vm525_vm3, %v5847_v2, %v5827_v63 }
 0x529   :  { %935 = vmax.xlane.f32.xlu1 %v934_v5  ;;  %v1174_v43 = vpop.xlane.xlu0 %1173  ;;  %v529_v5 = vsel %vm528_vm4, %v526_v16, %v5794_v31  ;;  %v5919_v31 = vsel %vm531_vm5, %v795_v10, %v5808_v20  ;;  %v1323_v20 = vsel %vm528_vm4, %v1321_v19, %v5800_v57 }
 0x52a   :  { %v1192_v46 = vsel %vm528_vm4, %v1190_v12, %v1174_v43  ;;  %v5908_v13 = vsel %vm531_vm5, %v529_v5, %v5806_v8  ;;  %v1057_v8 = vsel %vm525_vm3, %v5742_v3, %v5750_v23  ;;  %v799_v0 = vsel %vm534_vm6, %v5919_v31, -inf }
 0x52b   :  { %v5880_v50 = vsel %vm531_vm5, %v1192_v46, %v1188_v60  ;;  %v535_v17 = vsel %vm534_vm6, %v5908_v13, -inf  ;;  %v1059_v12 = vsel %vm528_vm4, %v1057_v8, %v5798_v14  ;;  %v5941_v23 = vsel %vm531_vm5, %v1323_v20, %v5812_v25 }
 0x52c   :  { %v1198_v39 = vsel %vm534_vm6, %v5880_v50, -inf  ;;  %v5930_v51 = vsel %vm531_vm5, %v1059_v12, %v5810_v61  ;;  %v661_v14 = vsel %vm525_vm3, %v5845_v4, %v629_v48  ;;  %v1327_v18 = vsel %vm534_vm6, %v5941_v23, -inf }
 0x52d   :  { %1199 = vmax.xlane.f32.xlu1 %v1198_v39  ;;  %v1438_v32 = vpop.xlane.xlu0 %1437  ;;  %v1063_v3 = vsel %vm534_vm6, %v5930_v51, -inf  ;;  %v663_v43 = vsel %vm528_vm4, %v661_v14, %v5853_v11  ;;  %v927_v48 = vsel %vm528_vm4, %v925_v28, %v5857_v58  ;;  %v1189_v11 = vsel %vm525_vm3, %v5851_v59, %v5843_v56 }
 0x52e   :  { %v1456_v34 = vsel %vm528_vm4, %v1454_v33, %v1438_v32  ;;  %v1191_v39 = vsel %vm528_vm4, %v1189_v11, %v5859_v42  ;;  %v1453_v33 = vsel %vm525_vm3, %v5855_v24, %v5849_v45 }
 0x52f   :  { %v5887_v37 = vsel %vm531_vm5, %v1456_v34, %v1452_v38  ;;  %v1455_v32 = vsel %vm528_vm4, %v1453_v33, %v5861_v35 }
 0x530   :  { %v1462_v6 = vsel %vm534_vm6, %v5887_v37, -inf }
 0x531   :  { %1463 = vmax.xlane.f32.xlu1 %v1462_v6  ;;  %v1320_v30 = vpop.xlane.xlu0 %1319 }
 0x532   :  { %v5900_v60 = vsel %vm531_vm5, %v1324_v62, %v1320_v30 }
 0x533   :  { %v1330_v1 = vsel %vm534_vm6, %v5900_v60, -inf }
 0x534   :  { %1331 = vmax.xlane.f32.xlu0 %v1330_v1 }
 0x538   :  { %536 = vmax.xlane.f32.xlu0 %v535_v17  ;;  %v7774_v17 = vmov 0  }
 0x539   :  { %4944 = vset.pattern.permute.xlu1 %v7774_v17 }
 0x53c   :  { %800 = vmax.xlane.f32.xlu0 %v799_v0 }
 0x540   :  { %1064 = vmax.xlane.f32.xlu0 %v1063_v3 }
 0x543   :  { %v657_v61 = vpop.xlane.xlu1 %656 }
 0x544   :  { %v5953_v57 = vsel %vm531_vm5, %v663_v43, %v657_v61  ;;  %1328 = vmax.xlane.f32.xlu0 %v1327_v18 }
 0x545   :  { %v667_v25 = vsel %vm534_vm6, %v5953_v57, -inf }
 0x546   :  { %668 = vmax.xlane.f32.xlu1 %v667_v25 }
 0x547   :  { %v921_v4 = vpop.xlane.xlu1 %920 }
 0x548   :  { %v5963_v46 = vsel %vm531_vm5, %v927_v48, %v921_v4 }
 0x549   :  { %v931_v63 = vsel %vm534_vm6, %v5963_v46, -inf }
 0x54a   :  { %932 = vmax.xlane.f32.xlu1 %v931_v63 }
 0x54b   :  { %v1185_v2 = vpop.xlane.xlu1 %1184 }
 0x54c   :  { %v5973_v58 = vsel %vm531_vm5, %v1191_v39, %v1185_v2 }
 0x54d   :  { %v1195_v56 = vsel %vm534_vm6, %v5973_v58, -inf }
 0x54e   :  { %1196 = vmax.xlane.f32.xlu1 %v1195_v56 }
 0x54f   :  { %v1449_v59 = vpop.xlane.xlu1 %1448 }
 0x550   :  { %v5980_v38 = vsel %vm531_vm5, %v1455_v32, %v1449_v59 }
 0x551   :  { %v1459_v42 = vsel %vm534_vm6, %v5980_v38, -inf }
 0x552   :  { %1460 = vmax.xlane.f32.xlu1 %v1459_v42 }
 0x581   :  { %v540_v34 = vpop.xlane.xlu0 %539 }
 0x582   :  { %v542_v45 = vsub.f32 %v5819_v7, %v540_v34 }
 0x584   :  { %v545_v24 = vmul.f32 1.442695, %v542_v45 }
 0x585   :  { %v804_v29 = vpop.xlane.xlu0 %803 }
 0x586   :  { %5079 = vpow2.f32 %v545_v24  ;;  %v806_v6 = vsub.f32 %v5830_v15, %v804_v29 }
 0x588   :  { %v809_v62 = vmul.f32 1.442695, %v806_v6 }
 0x589   :  { %v1068_v30 = vpop.xlane.xlu0 %1067 }
 0x58a   :  { %5081 = vpow2.f32 %v809_v62  ;;  %v1070_v35 = vsub.f32 %v5839_v55, %v1068_v30  ;;  %v7770_v55 = vmov 3  }
 0x58b   :  { %4947 = vset.pattern.permute.xlu0 %v7770_v55 }
 0x58c   :  { %v1073_v16 = vmul.f32 1.442695, %v1070_v35 }
 0x58e   :  { %5083 = vpow2.f32 %v1073_v16 }
 0x590   :  { %v5987_v5 = vpop.eup %5079 }
 0x591   :  { %v550_v1 = vsel %vm534_vm6, %v5987_v5, 0.0 }
 0x592   :  { %551 = vadd.xlane.f32.xlu0 %v550_v1 }
 0x594   :  { %v5991_v9 = vpop.eup %5081 }
 0x595   :  { %v814_v7 = vsel %vm534_vm6, %v5991_v9, 0.0 }
 0x596   :  { %815 = vadd.xlane.f32.xlu0 %v814_v7 }
 0x598   :  { %v5995_v15 = vpop.eup %5083 }
 0x599   :  { %v1078_v10 = vsel %vm534_vm6, %v5995_v15, 0.0 }
 0x59a   :  { %1079 = vadd.xlane.f32.xlu0 %v1078_v10 }
 0x5b2   :  { %v672_v8 = vpop.xlane.xlu1 %671 }
 0x5b3   :  { %v674_v12 = vsub.f32 %v5866_v52, %v672_v8 }
 0x5b5   :  { %v677_v0 = vmul.f32 1.442695, %v674_v12 }
 0x5b6   :  { %v936_v19 = vpop.xlane.xlu1 %935 }
 0x5b7   :  { %5085 = vpow2.f32 %v677_v0  ;;  %v938_v20 = vsub.f32 %v5873_v27, %v936_v19 }
 0x5b9   :  { %v941_v3 = vmul.f32 1.442695, %v938_v20 }
 0x5ba   :  { %v1200_v14 = vpop.xlane.xlu1 %1199 }
 0x5bb   :  { %5087 = vpow2.f32 %v941_v3  ;;  %v1202_v61 = vsub.f32 %v5880_v50, %v1200_v14 }
 0x5bd   :  { %v1205_v43 = vmul.f32 1.442695, %v1202_v61 }
 0x5be   :  { %v1464_v18 = vpop.xlane.xlu1 %1463 }
 0x5bf   :  { %5089 = vpow2.f32 %v1205_v43  ;;  %v1466_v28 = vsub.f32 %v5887_v37, %v1464_v18 }
 0x5c1   :  { %v6005_v25 = vpop.eup %5085  ;;  %v1469_v4 = vmul.f32 1.442695, %v1466_v28  ;;  %v1332_v48 = vpop.xlane.xlu0 %1331 }
 0x5c2   :  { %v1334_v52 = vsub.f32 %v5900_v60, %v1332_v48  ;;  %v682_v11 = vsel %vm534_vm6, %v6005_v25, 0.0 }
 0x5c3   :  { %5091 = vpow2.f32 %v1469_v4  ;;  %683 = vadd.xlane.f32.xlu1 %v682_v11 }
 0x5c4   :  { %v1337_v27 = vmul.f32 1.442695, %v1334_v52 }
 0x5c5   :  { %v6010_v63 = vpop.eup %5087  ;;  %v537_v50 = vpop.xlane.xlu0 %536 }
 0x5c6   :  { %5093 = vpow2.f32 %v1337_v27  ;;  %v541_v2 = vsub.f32 %v5908_v13, %v537_v50  ;;  %v946_v37 = vsel %vm534_vm6, %v6010_v63, 0.0 }
 0x5c7   :  { %947 = vadd.xlane.f32.xlu1 %v946_v37 }
 0x5c8   :  { %v543_v39 = vmul.f32 1.442695, %v541_v2 }
 0x5c9   :  { %v6015_v33 = vpop.eup %5089  ;;  %v801_v60 = vpop.xlane.xlu0 %800 }
 0x5ca   :  { %5095 = vpow2.f32 %v543_v39  ;;  %v805_v56 = vsub.f32 %v5919_v31, %v801_v60  ;;  %v1210_v59 = vsel %vm534_vm6, %v6015_v33, 0.0 }
 0x5cb   :  { %1211 = vadd.xlane.f32.xlu1 %v1210_v59 }
 0x5cc   :  { %v807_v32 = vmul.f32 1.442695, %v805_v56 }
 0x5cd   :  { %v6020_v42 = vpop.eup %5091  ;;  %v1065_v34 = vpop.xlane.xlu0 %1064 }
 0x5ce   :  { %5097 = vpow2.f32 %v807_v32  ;;  %v1069_v13 = vsub.f32 %v5930_v51, %v1065_v34  ;;  %v1474_v45 = vsel %vm534_vm6, %v6020_v42, 0.0  ;;  %v7772_v34 = vmov 1  }
 0x5cf   :  { %1475 = vadd.xlane.f32.xlu1 %v1474_v45  ;;  %v7776_v45 = vmov 2  }
 0x5d0   :  { %v6025_v24 = vpop.eup %5093  ;;  %v1071_v29 = vmul.f32 1.442695, %v1069_v13 }
 0x5d1   :  { %v1329_v6 = vpop.xlane.xlu0 %1328  ;;  %v1342_v31 = vsel %vm534_vm6, %v6025_v24, 0.0 }
 0x5d2   :  { %5099 = vpow2.f32 %v1071_v29  ;;  %v1333_v62 = vsub.f32 %v5941_v23, %v1329_v6  ;;  %1343 = vadd.xlane.f32.xlu0 %v1342_v31 }
 0x5d3   :  { %v669_v30 = vpop.xlane.xlu1 %668 }
 0x5d4   :  { %v6030_v35 = vpop.eup %5095  ;;  %v1335_v16 = vmul.f32 1.442695, %v1333_v62  ;;  %v673_v51 = vsub.f32 %v5953_v57, %v669_v30 }
 0x5d5   :  { %v547_v1 = vsel %vm534_vm6, %v6030_v35, 0.0 }
 0x5d6   :  { %5101 = vpow2.f32 %v1335_v16  ;;  %v675_v7 = vmul.f32 1.442695, %v673_v51  ;;  %548 = vadd.xlane.f32.xlu0 %v547_v1 }
 0x5d7   :  { %v933_v10 = vpop.xlane.xlu1 %932 }
 0x5d8   :  { %v6035_v8 = vpop.eup %5097  ;;  %5103 = vpow2.f32 %v675_v7  ;;  %v937_v12 = vsub.f32 %v5963_v46, %v933_v10 }
 0x5d9   :  { %v811_v23 = vsel %vm534_vm6, %v6035_v8, 0.0 }
 0x5da   :  { %v939_v0 = vmul.f32 1.442695, %v937_v12  ;;  %812 = vadd.xlane.f32.xlu0 %v811_v23 }
 0x5db   :  { %v1197_v19 = vpop.xlane.xlu1 %1196 }
 0x5dc   :  { %v6040_v20 = vpop.eup %5099  ;;  %5105 = vpow2.f32 %v939_v0  ;;  %v1201_v57 = vsub.f32 %v5973_v58, %v1197_v19 }
 0x5dd   :  { %v1075_v3 = vsel %vm534_vm6, %v6040_v20, 0.0 }
 0x5de   :  { %v1203_v14 = vmul.f32 1.442695, %v1201_v57  ;;  %1076 = vadd.xlane.f32.xlu0 %v1075_v3 }
 0x5df   :  { %v1461_v61 = vpop.xlane.xlu1 %1460 }
 0x5e0   :  { %v6045_v43 = vpop.eup %5101  ;;  %5107 = vpow2.f32 %v1203_v14  ;;  %v1465_v46 = vsub.f32 %v5980_v38, %v1461_v61 }
 0x5e1   :  { %v1339_v18 = vsel %vm534_vm6, %v6045_v43, 0.0 }
 0x5e2   :  { %v6050_v28 = vpop.eup %5103  ;;  %v1467_v4 = vmul.f32 1.442695, %v1465_v46  ;;  %1340 = vadd.xlane.f32.xlu0 %v1339_v18 }
 0x5e3   :  { %v679_v58 = vsel %vm534_vm6, %v6050_v28, 0.0 }
 0x5e4   :  { %5109 = vpow2.f32 %v1467_v4  ;;  %680 = vadd.xlane.f32.xlu1 %v679_v58 }
 0x5e6   :  { %v6054_v48 = vpop.eup %5105 }
 0x5e7   :  { %v943_v52 = vsel %vm534_vm6, %v6054_v48, 0.0 }
 0x5e8   :  { %944 = vadd.xlane.f32.xlu1 %v943_v52 }
 0x5ea   :  { %v6058_v11 = vpop.eup %5107 }
 0x5eb   :  { %v1207_v38 = vsel %vm534_vm6, %v6058_v11, 0.0 }
 0x5ec   :  { %1208 = vadd.xlane.f32.xlu1 %v1207_v38 }
 0x5ee   :  { %v6062_v27 = vpop.eup %5109 }
 0x5ef   :  { %v1471_v50 = vsel %vm534_vm6, %v6062_v27, 0.0 }
 0x5f0   :  { %1472 = vadd.xlane.f32.xlu1 %v1471_v50 }
 0x61f   :  { %v552_v2 = vpop.xlane.xlu0 %551 }
 0x620   :  { %5111 = vrcp.f32 %v552_v2 }
 0x623   :  { %v816_v37 = vpop.xlane.xlu0 %815 }
 0x624   :  { %5113 = vrcp.f32 %v816_v37 }
 0x627   :  { %v1080_v39 = vpop.xlane.xlu0 %1079 }
 0x628   :  { %5115 = vrcp.f32 %v1080_v39 }
 0x62a   :  { %v5112_v60 = vpop.eup %5111 }
 0x62b   :  { %v6067_v56 = vmul.f32 %v5112_v60, %v5987_v5 }
 0x62d   :  { %598 = vperm.xlu0 %4947, %v6067_v56   ;;  %564 = vperm.xlu1 %4944, %v6067_v56  }
 0x62e   :  { %v5114_v59 = vpop.eup %5113 }
 0x62f   :  { %v6072_v32 = vmul.f32 %v5114_v59, %v5991_v9 }
 0x631   :  { %4949 = vset.pattern.permute.xlu0 %v7772_v34  ;;  %4945 = vset.pattern.permute.xlu1 %v7772_v34 }
 0x632   :  { %v5116_v13 = vpop.eup %5115  ;;  %574 = vperm.xlu1 %4945, %v6067_v56   ;;  %838 = vperm.xlu0 %4949, %v6072_v32  }
 0x633   :  { %v6079_v5 = vmul.f32 %v5116_v13, %v5995_v15 }
 0x636   :  { %4946 = vset.pattern.permute.xlu1 %v7776_v45  ;;  %4955 = vset.pattern.permute.xlu0 %v7770_v55 }
 0x637   :  { %586 = vperm.xlu1 %4946, %v6067_v56   ;;  %1126 = vperm.xlu0 %4955, %v6079_v5  }
 0x63b   :  { %4948 = vset.pattern.permute.xlu1 %v7774_v17  ;;  %4957 = vset.pattern.permute.xlu0 %v7772_v34 }
 0x63c   :  { %828 = vperm.xlu1 %4948, %v6072_v32  }
 0x640   :  { %4950 = vset.pattern.permute.xlu1 %v7776_v45 }
 0x641   :  { %850 = vperm.xlu1 %4950, %v6072_v32  }
 0x645   :  { %4951 = vset.pattern.permute.xlu1 %v7770_v55 }
 0x646   :  { %862 = vperm.xlu1 %4951, %v6072_v32  }
 0x64a   :  { %4952 = vset.pattern.permute.xlu1 %v7774_v17 }
 0x64b   :  { %1092 = vperm.xlu1 %4952, %v6079_v5  }
 0x64f   :  { %4953 = vset.pattern.permute.xlu1 %v7772_v34 }
 0x650   :  { %1102 = vperm.xlu1 %4953, %v6079_v5   ;;  %v684_v1 = vpop.xlane.xlu1 %683 }
 0x654   :  { %4954 = vset.pattern.permute.xlu1 %v7776_v45  ;;  %v948_v10 = vpop.xlane.xlu1 %947 }
 0x655   :  { %1114 = vperm.xlu1 %4954, %v6079_v5  }
 0x658   :  { %v1212_v23 = vpop.xlane.xlu1 %1211 }
 0x659   :  { %4956 = vset.pattern.permute.xlu1 %v7774_v17 }
 0x65f   :  { %v1344_v9 = vpop.xlane.xlu0 %1343 }
 0x660   :  { %5117 = vrcp.f32 %v1344_v9 }
 0x663   :  { %v549_v15 = vpop.xlane.xlu0 %548 }
 0x664   :  { %5119 = vrcp.f32 %v549_v15 }
 0x667   :  { %v813_v6 = vpop.xlane.xlu0 %812 }
 0x668   :  { %5121 = vrcp.f32 %v813_v6 }
 0x66a   :  { %v5118_v29 = vpop.eup %5117 }
 0x66b   :  { %v6100_v31 = vmul.f32 %v5118_v29, %v6025_v24  ;;  %v1077_v16 = vpop.xlane.xlu0 %1076 }
 0x66c   :  { %5123 = vrcp.f32 %v1077_v16 }
 0x66d   :  { %1366 = vperm.xlu0 %4957, %v6100_v31   ;;  %1356 = vperm.xlu1 %4956, %v6100_v31  }
 0x66e   :  { %v5120_v62 = vpop.eup %5119 }
 0x66f   :  { %v6105_v30 = vmul.f32 %v5120_v62, %v6030_v35  ;;  %v1341_v35 = vpop.xlane.xlu0 %1340 }
 0x670   :  { %5125 = vrcp.f32 %v1341_v35 }
 0x671   :  { %4959 = vset.pattern.permute.xlu0 %v7774_v17  ;;  %4958 = vset.pattern.permute.xlu1 %v7776_v45  ;;  %5127 = vrcp.f32 %v948_v10 }
 0x672   :  { %1378 = vperm.xlu1 %4958, %v6100_v31   ;;  %559 = vperm.xlu0 %4959, %v6105_v30   ;;  %v5122_v24 = vpop.eup %5121  ;;  %5129 = vrcp.f32 %v1212_v23 }
 0x673   :  { %v6116_v51 = vmul.f32 %v5122_v24, %v6035_v8 }
 0x676   :  { %4960 = vset.pattern.permute.xlu1 %v7772_v34  ;;  %4962 = vset.pattern.permute.xlu0 %v7770_v55  ;;  %v5124_v7 = vpop.eup %5123 }
 0x677   :  { %570 = vperm.xlu1 %4960, %v6105_v30   ;;  %594 = vperm.xlu0 %4962, %v6105_v30   ;;  %v6127_v8 = vmul.f32 %v5124_v7, %v6040_v20  ;;  %v1476_v20 = vpop.xlane.xlu1 %1475 }
 0x678   :  { %5131 = vrcp.f32 %v1476_v20 }
 0x679   :  { %5133 = vrcp.f32 %v684_v1 }
 0x67a   :  { %v5126_v12 = vpop.eup %5125 }
 0x67b   :  { %4961 = vset.pattern.permute.xlu1 %v7776_v45  ;;  %4964 = vset.pattern.permute.xlu0 %v7772_v34  ;;  %v6134_v0 = vmul.f32 %v5126_v12, %v6045_v43  ;;  %v5128_v19 = vpop.eup %5127  ;;  %v681_v3 = vpop.xlane.xlu1 %680 }
 0x67c   :  { %582 = vperm.xlu1 %4961, %v6105_v30   ;;  %834 = vperm.xlu0 %4964, %v6116_v51   ;;  %v6145_v57 = vmul.f32 %v5128_v19, %v6010_v63  ;;  %5135 = vrcp.f32 %v681_v3  ;;  %v5130_v14 = vpop.eup %5129 }
 0x67d   :  { %v6155_v63 = vmul.f32 %v5130_v14, %v6015_v33 }
 0x67f   :  { %v945_v61 = vpop.xlane.xlu1 %944 }
 0x680   :  { %4963 = vset.pattern.permute.xlu1 %v7774_v17  ;;  %4965 = vset.pattern.permute.xlu0 %v7776_v45  ;;  %5137 = vrcp.f32 %v945_v61 }
 0x681   :  { %846 = vperm.xlu0 %4965, %v6116_v51   ;;  %823 = vperm.xlu1 %4963, %v6116_v51  }
 0x682   :  { %v5132_v43 = vpop.eup %5131 }
 0x683   :  { %v5134_v46 = vpop.eup %5133  ;;  %v1209_v18 = vpop.xlane.xlu1 %1208  ;;  %v6162_v4 = vmul.f32 %v5132_v43, %v6020_v42 }
 0x684   :  { %5139 = vrcp.f32 %v1209_v18  ;;  %v6166_v33 = vmul.f32 %v5134_v46, %v6005_v25 }
 0x685   :  { %4970 = vset.pattern.permute.xlu0 %v7770_v55  ;;  %4966 = vset.pattern.permute.xlu1 %v7770_v55 }
 0x686   :  { %858 = vperm.xlu1 %4966, %v6116_v51   ;;  %1122 = vperm.xlu0 %4970, %v6127_v8   ;;  %v5136_v58 = vpop.eup %5135 }
 0x687   :  { %v6172_v52 = vmul.f32 %v5136_v58, %v6050_v28  ;;  %v1473_v42 = vpop.xlane.xlu1 %1472 }
 0x688   :  { %5141 = vrcp.f32 %v1473_v42 }
 0x68a   :  { %4967 = vset.pattern.permute.xlu1 %v7774_v17  ;;  %4972 = vset.pattern.permute.xlu0 %v7772_v34  ;;  %v5138_v38 = vpop.eup %5137 }
 0x68b   :  { %1087 = vperm.xlu1 %4967, %v6127_v8   ;;  %1362 = vperm.xlu0 %4972, %v6134_v0   ;;  %v6178_v25 = vmul.f32 %v5138_v38, %v6054_v48 }
 0x68e   :  { %v5140_v50 = vpop.eup %5139 }
 0x68f   :  { %4968 = vset.pattern.permute.xlu1 %v7772_v34  ;;  %4973 = vset.pattern.permute.xlu0 %v7776_v45  ;;  %v6185_v28 = vmul.f32 %v5140_v50, %v6058_v11 }
 0x690   :  { %1098 = vperm.xlu1 %4968, %v6127_v8   ;;  %1374 = vperm.xlu0 %4973, %v6134_v0  }
 0x692   :  { %v5142_v60 = vpop.eup %5141 }
 0x693   :  { %v6199_v29 = vmul.f32 %v5142_v60, %v6062_v27 }
 0x694   :  { %4969 = vset.pattern.permute.xlu1 %v7776_v45  ;;  %982 = vperm.xlu0 %4973, %v6145_v57  }
 0x695   :  { %1110 = vperm.xlu1 %4969, %v6127_v8  }
 0x698   :  { %4981 = vset.pattern.permute.xlu0 %v7770_v55 }
 0x699   :  { %4971 = vset.pattern.permute.xlu1 %v7774_v17  ;;  %994 = vperm.xlu0 %4981, %v6145_v57  }
 0x69a   :  { %1351 = vperm.xlu1 %4971, %v6134_v0  }
 0x69d   :  { %4982 = vset.pattern.permute.xlu0 %v7774_v17 }
 0x69e   :  { %1224 = vperm.xlu0 %4982, %v6155_v63   ;;  %4974 = vset.pattern.permute.xlu1 %v7770_v55 }
 0x69f   :  { %1386 = vperm.xlu1 %4974, %v6134_v0  }
 0x6a2   :  { %4987 = vset.pattern.permute.xlu0 %v7776_v45 }
 0x6a3   :  { %1510 = vperm.xlu0 %4987, %v6162_v4   ;;  %4975 = vset.pattern.permute.xlu1 %v7774_v17 }
 0x6a4   :  { %696 = vperm.xlu1 %4975, %v6166_v33  }
 0x6a7   :  { %714 = vperm.xlu0 %4987, %v6172_v52  }
 0x6a8   :  { %4976 = vset.pattern.permute.xlu1 %v7772_v34 }
 0x6a9   :  { %706 = vperm.xlu1 %4976, %v6166_v33  }
 0x6ab   :  { %4994 = vset.pattern.permute.xlu0 %v7770_v55 }
 0x6ac   :  { %v565_v2 = vpop.permute.xlu1 %564  ;;  %990 = vperm.xlu0 %4994, %v6178_v25   ;;  %v599_v9 = vpop.permute.xlu0 %598 }
 0x6ad   :  { %4977 = vset.pattern.permute.xlu1 %v7776_v45  ;;  %v568_v39 = vmul.f32 %v565_v2, %v5537_v36  ;;  %v602_v6 = vmul.f32 %v599_v9, %v5565_v54 }
 0x6ae   :  { %718 = vperm.xlu1 %4977, %v6166_v33  }
 0x6b0   :  { %4995 = vset.pattern.permute.xlu0 %v7774_v17 }
 0x6b1   :  { %v575_v37 = vpop.permute.xlu1 %574  ;;  %1219 = vperm.xlu0 %4995, %v6185_v28   ;;  %v839_v24 = vpop.permute.xlu0 %838 }
 0x6b2   :  { %4978 = vset.pattern.permute.xlu1 %v7770_v55  ;;  %v578_v48 = vmul.f32 %v575_v37, %v5545_v41  ;;  %v842_v1 = vmul.f32 %v839_v24, %v5545_v41 }
 0x6b3   :  { %730 = vperm.xlu1 %4978, %v6166_v33  }
 0x6b4   :  { %v580_v11 = vadd.f32 %v578_v48, %v568_v39 }
 0x6b5   :  { %4997 = vset.pattern.permute.xlu0 %v7776_v45 }
 0x6b6   :  { %v587_v59 = vpop.permute.xlu1 %586  ;;  %1242 = vperm.xlu0 %4997, %v6185_v28   ;;  %v1127_v46 = vpop.permute.xlu0 %1126 }
 0x6b7   :  { %v590_v13 = vmul.f32 %v587_v59, %v5557_v49  ;;  %4979 = vset.pattern.permute.xlu1 %v7774_v17  ;;  %v1130_v42 = vmul.f32 %v1127_v46, %v5565_v54 }
 0x6b8   :  { %960 = vperm.xlu1 %4979, %v6145_v57  }
 0x6b9   :  { %v592_v15 = vadd.f32 %v590_v13, %v580_v11 }
 0x6ba   :  { %5002 = vset.pattern.permute.xlu0 %v7770_v55 }
 0x6bb   :  { %v829_v62 = vpop.permute.xlu1 %828  ;;  %1518 = vperm.xlu0 %5002, %v6199_v29   ;;  %v604_v16 = vadd.f32 %v602_v6, %v592_v15 }
 0x6bc   :  { %4980 = vset.pattern.permute.xlu1 %v7772_v34  ;;  %v832_v35 = vmul.f32 %v829_v62, %v5537_v36 }
 0x6bd   :  { %970 = vperm.xlu1 %4980, %v6145_v57  }
 0x6be   :  { %v844_v10 = vadd.f32 %v842_v1, %v832_v35 }
 0x6bf   :  { %743 = vrot.lane.b32.xlu0 %v604_v16, %s5297_s23 }
 0x6c0   :  { %v851_v27 = vpop.permute.xlu1 %850  ;;  %5004 = vset.pattern.permute.xlu0 %v7774_v17 }
 0x6c1   :  { %1234 = vperm.xlu1 %4980, %v6155_v63   ;;  %v854_v7 = vmul.f32 %v851_v27, %v5557_v49 }
 0x6c3   :  { %v856_v23 = vadd.f32 %v854_v7, %v844_v10 }
 0x6c5   :  { %v863_v12 = vpop.permute.xlu1 %862  ;;  %4983 = vset.pattern.permute.xlu1 %v7776_v45 }
 0x6c6   :  { %v866_v19 = vmul.f32 %v863_v12, %v5565_v54  ;;  %1246 = vperm.xlu1 %4983, %v6155_v63  }
 0x6c8   :  { %v868_v20 = vadd.f32 %v866_v19, %v856_v23 }
 0x6ca   :  { %v1093_v3 = vpop.permute.xlu1 %1092  ;;  %4984 = vset.pattern.permute.xlu1 %v7770_v55  ;;  %1007 = vrot.lane.b32.xlu0 %v868_v20, %s5297_s23 }
 0x6cb   :  { %1258 = vperm.xlu1 %4984, %v6155_v63   ;;  %v1096_v43 = vmul.f32 %v1093_v3, %v5537_v36 }
 0x6cf   :  { %v1103_v14 = vpop.permute.xlu1 %1102  ;;  %4985 = vset.pattern.permute.xlu1 %v7774_v17 }
 0x6d0   :  { %1488 = vperm.xlu1 %4985, %v6162_v4   ;;  %v1106_v61 = vmul.f32 %v1103_v14, %v5545_v41 }
 0x6d2   :  { %v1108_v58 = vadd.f32 %v1106_v61, %v1096_v43 }
 0x6d4   :  { %v1115_v18 = vpop.permute.xlu1 %1114  ;;  %4986 = vset.pattern.permute.xlu1 %v7772_v34 }
 0x6d5   :  { %v1118_v38 = vmul.f32 %v1115_v18, %v5557_v49  ;;  %1498 = vperm.xlu1 %4986, %v6162_v4  }
 0x6d7   :  { %v1120_v50 = vadd.f32 %v1118_v38, %v1108_v58 }
 0x6d9   :  { %v1132_v2 = vadd.f32 %v1130_v42, %v1120_v50  ;;  %4988 = vset.pattern.permute.xlu1 %v7774_v17 }
 0x6da   :  { %691 = vperm.xlu1 %4988, %v6172_v52  }
 0x6db   :  { %1271 = vrot.lane.b32.xlu0 %v1132_v2, %s5297_s23 }
 0x6de   :  { %4989 = vset.pattern.permute.xlu1 %v7772_v34 }
 0x6df   :  { %702 = vperm.xlu1 %4989, %v6172_v52  }
 0x6e3   :  { %4990 = vset.pattern.permute.xlu1 %v7770_v55 }
 0x6e4   :  { %726 = vperm.xlu1 %4990, %v6172_v52  }
 0x6e8   :  { %4991 = vset.pattern.permute.xlu1 %v7774_v17 }
 0x6e9   :  { %955 = vperm.xlu1 %4991, %v6178_v25  }
 0x6ec   :  { %v6235_v37 = vpop.permute.xlu1 %1356  ;;  %v6237_v48 = vpop.permute.xlu0 %1366 }
 0x6ed   :  { %4992 = vset.pattern.permute.xlu1 %v7772_v34 }
 0x6ee   :  { %966 = vperm.xlu1 %4992, %v6178_v25  }
 0x6f1   :  { %v6241_v39 = vpop.permute.xlu1 %1378  ;;  %v560_v60 = vpop.permute.xlu0 %559 }
 0x6f2   :  { %4993 = vset.pattern.permute.xlu1 %v7776_v45  ;;  %v567_v9 = vmul.f32 %v560_v60, %v5539_v40 }
 0x6f3   :  { %978 = vperm.xlu1 %4993, %v6178_v25  }
 0x6f6   :  { %v571_v59 = vpop.permute.xlu1 %570  ;;  %v595_v11 = vpop.permute.xlu0 %594 }
 0x6f7   :  { %4996 = vset.pattern.permute.xlu1 %v7772_v34  ;;  %v577_v13 = vmul.f32 %v571_v59, %v5549_v44  ;;  %v601_v24 = vmul.f32 %v595_v11, %v5559_v53 }
 0x6f8   :  { %1230 = vperm.xlu1 %4996, %v6185_v28  }
 0x6f9   :  { %v579_v62 = vadd.f32 %v577_v13, %v567_v9 }
 0x6fb   :  { %v583_v15 = vpop.permute.xlu1 %582  ;;  %v835_v6 = vpop.permute.xlu0 %834 }
 0x6fc   :  { %v589_v16 = vmul.f32 %v583_v15, %v5551_v47  ;;  %4998 = vset.pattern.permute.xlu1 %v7770_v55  ;;  %v841_v10 = vmul.f32 %v835_v6, %v5549_v44 }
 0x6fd   :  { %1254 = vperm.xlu1 %4998, %v6185_v28  }
 0x6fe   :  { %v591_v35 = vadd.f32 %v589_v16, %v579_v62 }
 0x700   :  { %v603_v27 = vadd.f32 %v601_v24, %v591_v35  ;;  %v824_v1 = vpop.permute.xlu1 %823  ;;  %v847_v7 = vpop.permute.xlu0 %846 }
 0x701   :  { %v831_v12 = vmul.f32 %v824_v1, %v5539_v40  ;;  %4999 = vset.pattern.permute.xlu1 %v7774_v17  ;;  %v853_v19 = vmul.f32 %v847_v7, %v5551_v47 }
 0x702   :  { %1483 = vperm.xlu1 %4999, %v6199_v29   ;;  %741 = vrot.lane.b32.xlu0 %v603_v27, %s5297_s23 }
 0x703   :  { %v843_v23 = vadd.f32 %v841_v10, %v831_v12 }
 0x705   :  { %v855_v20 = vadd.f32 %v853_v19, %v843_v23  ;;  %v859_v3 = vpop.permute.xlu1 %858  ;;  %v1123_v46 = vpop.permute.xlu0 %1122 }
 0x706   :  { %v865_v14 = vmul.f32 %v859_v3, %v5559_v53  ;;  %5000 = vset.pattern.permute.xlu1 %v7772_v34  ;;  %v1129_v59 = vmul.f32 %v1123_v46, %v5559_v53 }
 0x707   :  { %1494 = vperm.xlu1 %5000, %v6199_v29  }
 0x708   :  { %v867_v61 = vadd.f32 %v865_v14, %v855_v20 }
 0x70a   :  { %v1088_v43 = vpop.permute.xlu1 %1087  ;;  %1005 = vrot.lane.b32.xlu0 %v867_v61, %s5297_s23  ;;  %v1363_v42 = vpop.permute.xlu0 %1362 }
 0x70b   :  { %5001 = vset.pattern.permute.xlu1 %v7776_v45  ;;  %v1095_v38 = vmul.f32 %v1088_v43, %v5539_v40  ;;  %v1369_v6 = vmul.f32 %v1363_v42, %v5549_v44 }
 0x70c   :  { %1506 = vperm.xlu1 %5001, %v6199_v29  }
 0x70f   :  { %v1099_v18 = vpop.permute.xlu1 %1098  ;;  %v1375_v13 = vpop.permute.xlu0 %1374 }
 0x710   :  { %5003 = vset.pattern.permute.xlu1 %v7770_v55  ;;  %v1105_v58 = vmul.f32 %v1099_v18, %v5549_v44  ;;  %v1381_v16 = vmul.f32 %v1375_v13, %v5551_v47 }
 0x711   :  { %1390 = vperm.xlu1 %5003, %v6100_v31  }
 0x712   :  { %v1107_v2 = vadd.f32 %v1105_v58, %v1095_v38 }
 0x713   :  { %v983_v38 = vpop.permute.xlu0 %982 }
 0x714   :  { %v1111_v50 = vpop.permute.xlu1 %1110 }
 0x715   :  { %v1117_v60 = vmul.f32 %v1111_v50, %v5551_v47  ;;  %1522 = vperm.xlu1 %5003, %v6162_v4  }
 0x717   :  { %v1119_v11 = vadd.f32 %v1117_v60, %v1107_v2 }
 0x718   :  { %v995_v60 = vpop.permute.xlu0 %994 }
 0x719   :  { %v1131_v9 = vadd.f32 %v1129_v59, %v1119_v11  ;;  %v1352_v15 = vpop.permute.xlu1 %1351  ;;  %5005 = vset.pattern.permute.xlu1 %v7772_v34  ;;  %v986_v59 = vmul.f32 %v983_v38, %v5557_v49 }
 0x71a   :  { %v1359_v62 = vmul.f32 %v1352_v15, %v5539_v40 }
 0x71b   :  { %1269 = vrot.lane.b32.xlu0 %v1131_v9, %s5297_s23  ;;  %v998_v9 = vmul.f32 %v995_v60, %v5565_v54 }
 0x71c   :  { %v1371_v24 = vadd.f32 %v1369_v6, %v1359_v62  ;;  %v1585_v62 = vld [vmem:[%s7758_s4] sm:$0xff] }
 0x71e   :  { %v1387_v35 = vpop.permute.xlu1 %1386  ;;  %v1383_v27 = vadd.f32 %v1381_v16, %v1371_v24  ;;  %v1586_v16 = vld [vmem:[%s7758_s4 + $0x8] sm:$0xff]  ;;  %v1587_v24 = vld [vmem:[%s7758_s4 + $0x10] sm:$0xff] }
 0x71f   :  { %v1393_v1 = vmul.f32 %v1387_v35, %v5559_v53  ;;  %v1225_v35 = vpop.permute.xlu0 %1224 }
 0x721   :  { %v1395_v7 = vadd.f32 %v1393_v1, %v1383_v27  ;;  %v4853_v27 = vpack.c.bf16 %v1586_v16, %v1585_v62  ;;  %v1588_v1 = vld [vmem:[%s7758_s4 + $0x18] sm:$0xff] }
 0x723   :  { %v697_v10 = vpop.permute.xlu1 %696  ;;  %1533 = vrot.lane.b32.xlu0 %v1395_v7, %s5297_s23  ;;  %4854 = vmatprep.subr.bf16.mxu1 %v4853_v27 }
 0x724   :  { %v700_v20 = vmul.f32 %v697_v10, %v5537_v36  ;;  %4856 = vmatpush3.bf16.msra.mxu1 %v4853_v27 }
 0x728   :  { %v707_v12 = vpop.permute.xlu1 %706 }
 0x729   :  { %v710_v23 = vmul.f32 %v707_v12, %v5545_v41  ;;  %v4857_v12 = vpack.c.bf16 %v1588_v1, %v1587_v24 }
 0x72b   :  { %v712_v14 = vadd.f32 %v710_v23, %v700_v20  ;;  %v1228_v23 = vmul.f32 %v1225_v35, %v5537_v36  ;;  %4858 = vmatprep.subr.bf16.mxu1 %v4857_v12 }
 0x72c   :  { %4860 = vmatpush3.bf16.msra.mxu1 %v4857_v12 }
 0x72d   :  { %v719_v19 = vpop.permute.xlu1 %718 }
 0x72e   :  { %v722_v3 = vmul.f32 %v719_v19, %v5557_v49 }
 0x730   :  { %v724_v43 = vadd.f32 %v722_v3, %v712_v14 }
 0x732   :  { %v731_v61 = vpop.permute.xlu1 %730 }
 0x733   :  { %v734_v46 = vmul.f32 %v731_v61, %v5565_v54 }
 0x735   :  { %v736_v18 = vadd.f32 %v734_v46, %v724_v43 }
 0x737   :  { %751 = vrot.lane.b32.xlu1 %v736_v18, %s5297_s23  ;;  %v961_v58 = vpop.permute.xlu1 %960 }
 0x738   :  { %v964_v50 = vmul.f32 %v961_v58, %v5537_v36  ;;  %v1511_v58 = vpop.permute.xlu0 %1510 }
 0x73c   :  { %v971_v42 = vpop.permute.xlu1 %970 }
 0x73d   :  { %v974_v2 = vmul.f32 %v971_v42, %v5545_v41  ;;  %v715_v42 = vpop.permute.xlu0 %714 }
 0x73f   :  { %v976_v11 = vadd.f32 %v974_v2, %v964_v50 }
 0x740   :  { %v1235_v13 = vpop.permute.xlu1 %1234 }
 0x741   :  { %v988_v15 = vadd.f32 %v986_v59, %v976_v11  ;;  %v1238_v7 = vmul.f32 %v1235_v13, %v5545_v41  ;;  %v721_v59 = vmul.f32 %v715_v42, %v5551_v47  ;;  %v991_v16 = vpop.permute.xlu0 %990 }
 0x743   :  { %v1000_v6 = vadd.f32 %v998_v9, %v988_v15  ;;  %v1240_v20 = vadd.f32 %v1238_v7, %v1228_v23  ;;  %v997_v23 = vmul.f32 %v991_v16, %v5559_v53 }
 0x745   :  { %v1247_v10 = vpop.permute.xlu1 %1246  ;;  %1015 = vrot.lane.b32.xlu1 %v1000_v6, %s5297_s23  ;;  %v1220_v27 = vpop.permute.xlu0 %1219 }
 0x746   :  { %v1250_v19 = vmul.f32 %v1247_v10, %v5557_v49 }
 0x748   :  { %v1252_v14 = vadd.f32 %v1250_v19, %v1240_v20 }
 0x749   :  { %v1243_v20 = vpop.permute.xlu0 %1242 }
 0x74a   :  { %v1259_v3 = vpop.permute.xlu1 %1258 }
 0x74b   :  { %v1262_v61 = vmul.f32 %v1259_v3, %v5565_v54 }
 0x74d   :  { %v1264_v43 = vadd.f32 %v1262_v61, %v1252_v14  ;;  %v1227_v61 = vmul.f32 %v1220_v27, %v5539_v40  ;;  %v1519_v16 = vpop.permute.xlu0 %1518 }
 0x74f   :  { %v1489_v46 = vpop.permute.xlu1 %1488  ;;  %1279 = vrot.lane.b32.xlu1 %v1264_v43, %s5297_s23 }
 0x754   :  { %v1499_v18 = vpop.permute.xlu1 %1498 }
 0x759   :  { %v692_v38 = vpop.permute.xlu1 %691 }
 0x75a   :  { %v699_v2 = vmul.f32 %v692_v38, %v5539_v40  ;;  %v1249_v38 = vmul.f32 %v1243_v20, %v5551_v47 }
 0x75e   :  { %v703_v50 = vpop.permute.xlu1 %702 }
 0x75f   :  { %v709_v60 = vmul.f32 %v703_v50, %v5549_v44 }
 0x761   :  { %v711_v11 = vadd.f32 %v709_v60, %v699_v2 }
 0x763   :  { %v727_v13 = vpop.permute.xlu1 %726  ;;  %v723_v9 = vadd.f32 %v721_v59, %v711_v11 }
 0x764   :  { %v733_v15 = vmul.f32 %v727_v13, %v5559_v53 }
 0x766   :  { %v735_v6 = vadd.f32 %v733_v15, %v723_v9 }
 0x768   :  { %v956_v62 = vpop.permute.xlu1 %955  ;;  %749 = vrot.lane.b32.xlu1 %v735_v6, %s5297_s23  ;;  %v1360_v6 = vmul.f32 %v6235_v37, %v5537_v36 }
 0x769   :  { %v963_v1 = vmul.f32 %v956_v62, %v5539_v40  ;;  %v1370_v62 = vmul.f32 %v6237_v48, %v5545_v41 }
 0x76d   :  { %v967_v24 = vpop.permute.xlu1 %966 }
 0x76e   :  { %v973_v35 = vmul.f32 %v967_v24, %v5549_v44 }
 0x770   :  { %v975_v10 = vadd.f32 %v973_v35, %v963_v1  ;;  %v1382_v1 = vmul.f32 %v6241_v39, %v5557_v49 }
 0x772   :  { %v979_v7 = vpop.permute.xlu1 %978 }
 0x773   :  { %v985_v12 = vmul.f32 %v979_v7, %v5551_v47  ;;  %v1502_v7 = vmul.f32 %v1499_v18, %v5545_v41 }
 0x775   :  { %v987_v19 = vadd.f32 %v985_v12, %v975_v10  ;;  %v1492_v12 = vmul.f32 %v1489_v46, %v5537_v36  ;;  %v744_v36 = vpop.permute.xlu0 %743 }
 0x777   :  { %v999_v3 = vadd.f32 %v997_v23, %v987_v19  ;;  %v1231_v14 = vpop.permute.xlu1 %1230  ;;  %v1504_v48 = vadd.f32 %v1502_v7, %v1492_v12 }
 0x778   :  { %v1237_v43 = vmul.f32 %v1231_v14, %v5549_v44 }
 0x779   :  { %1013 = vrot.lane.b32.xlu1 %v999_v3, %s5297_s23  ;;  %v1008_v18 = vpop.permute.xlu0 %1007 }
 0x77a   :  { %v1239_v42 = vadd.f32 %v1237_v43, %v1227_v61 }
 0x77c   :  { %v1255_v50 = vpop.permute.xlu1 %1254  ;;  %v1251_v2 = vadd.f32 %v1249_v38, %v1239_v42 }
 0x77d   :  { %v1261_v60 = vmul.f32 %v1255_v50, %v5559_v53  ;;  %v1272_v43 = vpop.permute.xlu0 %1271 }
 0x77f   :  { %v1263_v59 = vadd.f32 %v1261_v60, %v1251_v2 }
 0x781   :  { %v1484_v11 = vpop.permute.xlu1 %1483  ;;  %1277 = vrot.lane.b32.xlu1 %v1263_v59, %s5297_s23  ;;  %v742_v42 = vpop.permute.xlu0 %741 }
 0x782   :  { %v1491_v15 = vmul.f32 %v1484_v11, %v5539_v40  ;;  %v1372_v40 = vadd.f32 %v1370_v62, %v1360_v6 }
 0x784   :  { %v1384_v19 = vadd.f32 %v1382_v1, %v1372_v40  ;;  %v4403_v1 = vld [vmem:[%s7757_s7 + $0x4] ss:$0 sm:$0xff] }
 0x786   :  { %v1495_v13 = vpop.permute.xlu1 %1494 }
 0x787   :  { %v1501_v9 = vmul.f32 %v1495_v13, %v5549_v44  ;;  %v1525_v44 = vmul.f32 %v1519_v16, %v5559_v53 }
 0x789   :  { %v1503_v35 = vadd.f32 %v1501_v9, %v1491_v15 }
 0x78b   :  { %v1507_v24 = vpop.permute.xlu1 %1506 }
 0x78c   :  { %v1513_v27 = vmul.f32 %v1507_v24, %v5551_v47  ;;  %v1514_v47 = vmul.f32 %v1511_v58, %v5557_v49 }
 0x78e   :  { %v1515_v10 = vadd.f32 %v1513_v27, %v1503_v35  ;;  %v1516_v14 = vadd.f32 %v1514_v47, %v1504_v48 }
 0x790   :  { %v1527_v37 = vadd.f32 %v1525_v44, %v1515_v10  ;;  %v1391_v23 = vpop.permute.xlu1 %1390 }
 0x791   :  { %v1394_v20 = vmul.f32 %v1391_v23, %v5565_v54 }
 0x792   :  { %1541 = vrot.lane.b32.xlu1 %v1527_v37, %s5297_s23 }
 0x793   :  { %v1396_v3 = vadd.f32 %v1394_v20, %v1384_v19 }
 0x794   :  { %v1523_v39 = vpop.permute.xlu1 %1522 }
 0x795   :  { %v1526_v41 = vmul.f32 %v1523_v39, %v5565_v54  ;;  %1535 = vrot.lane.b32.xlu0 %v1396_v3, %s5297_s23  ;;  %v1006_v54 = vpop.permute.xlu0 %1005 }
 0x797   :  { %v1528_v53 = vadd.f32 %v1526_v41, %v1516_v14 }
 0x799   :  { %1543 = vrot.lane.b32.xlu1 %v1528_v53, %s5297_s23  ;;  %v1270_v11 = vpop.permute.xlu0 %1269  ;;  %v7787_v53 = vld [vmem:[#allocation3_spill] sm:$0xff] }
 0x79d   :  { %v1534_v6 = vpop.permute.xlu0 %1533 }
 0x7a9   :  { %v752_v46 = vpop.permute.xlu1 %751 }
 0x7aa   :  { %v756_v58 = vsel %vm470_vm2, %v744_v36, %v752_v46 }
 0x7b7   :  { %v1016_v61 = vpop.permute.xlu1 %1015 }
 0x7b8   :  { %v1020_v59 = vsel %vm470_vm2, %v1008_v18, %v1016_v61  ;;  %v7788_v18 = vld [vmem:[#allocation4_spill] sm:$0xff] }
 0x7c1   :  { %v1280_v38 = vpop.permute.xlu1 %1279 }
 0x7c2   :  { %v1284_v15 = vsel %vm470_vm2, %v1272_v43, %v1280_v38 }
 0x7da   :  { %v750_v50 = vpop.permute.xlu1 %749 }
 0x7db   :  { %v755_v49 = vsel %vm470_vm2, %v742_v42, %v750_v50 }
 0x7dc   :  { %4674 = vmatprep.mubr.msk.f32.mxu1 %vm191_vm1, %v755_v49 }
 0x7dd   :  { %4675 = vmatmul.mubr.msk.f32.vlgmr.msra.gmra.mrb[8].mxu1 %vm191_vm1, %v756_v58  ;;  %v7789_v58 = vld [vmem:[#allocation5_spill] sm:$0xff] }
 0x7eb   :  { %v1014_v2 = vpop.permute.xlu1 %1013 }
 0x7ec   :  { %v1019_v60 = vsel %vm470_vm2, %v1006_v54, %v1014_v2 }
 0x7ed   :  { %4677 = vmatprep.mubr.msk.f32.mxu1 %vm191_vm1, %v1019_v60  ;;  %v7790_v60 = vld [vmem:[#allocation6_spill] sm:$0xff] }
 0x7ee   :  { %4678 = vmatmul.mubr.msk.f32.gmra.mrb[10].mxu1 %vm191_vm1, %v1020_v59 }
 0x7f3   :  { %v1278_v13 = vpop.permute.xlu1 %1277 }
 0x7f4   :  { %v1283_v9 = vsel %vm470_vm2, %v1270_v11, %v1278_v13 }
 0x7f5   :  { %4680 = vmatprep.mubr.msk.f32.mxu1 %vm191_vm1, %v1283_v9 }
 0x7f6   :  { %4681 = vmatmul.mubr.msk.f32.gmra.mrb[12].mxu1 %vm191_vm1, %v1284_v15 }
 0x804   :  { %v1542_v62 = vpop.permute.xlu1 %1541 }
 0x805   :  { %v1547_v16 = vsel %vm470_vm2, %v1534_v6, %v1542_v62 }
 0x806   :  { %4683 = vmatprep.mubr.msk.f32.mxu1 %vm191_vm1, %v1547_v16 }
 0x807   :  { %v1536_v24 = vpop.permute.xlu0 %1535 }
 0x80b   :  { %v1544_v35 = vpop.permute.xlu1 %1543 }
 0x80c   :  { %v1548_v27 = vsel %vm470_vm2, %v1536_v24, %v1544_v35 }
 0x80d   :  { %4684 = vmatmul.mubr.msk.f32.gmra.mrb[14].mxu1 %vm191_vm1, %v1548_v27 }
 0x8b0   :  { %v4676_v7 = vpop.f32.mrb[8].mxu1 }
 0x8b1   :  { %v1719_v44 = vadd.f32 %v4676_v7, %v5422_v22  ;;  %v1679_v10 = vpop.f32.mrb[9].mxu1  ;;  %v7786_v22 = vld [vmem:[#allocation2_spill] sm:$0xff] }
 0x8b2   :  { %v1718_v40 = vadd.f32 %v1679_v10, %v5420_v21 }
 0x8b3   :  { %v6360_v12 = vadd.f32 %v4403_v1, %v1719_v44 }
 0x8b4   :  { %v6362_v37 = vadd.f32 %v4403_v1, %v1718_v40 }
 0x8b5   :  { %v1741_v23 = vsel %vm191_vm1, %v6360_v12, 0.0 }
 0x8b6   :  { %1742 = vadd.xlane.f32.xlu1 %v1741_v23  ;;  %v1738_v19 = vsel %vm191_vm1, %v6362_v37, 0.0 }
 0x8b7   :  { %1739 = vadd.xlane.f32.xlu0 %v1738_v19 }
 0x8c1   :  { %v4679_v48 = vpop.f32.mrb[10].mxu1 }
 0x8c2   :  { %v1689_v20 = vpop.f32.mrb[11].mxu1  ;;  %v1721_v47 = vadd.f32 %v4679_v48, %v5426_v26 }
 0x8c3   :  { %v1720_v3 = vadd.f32 %v1689_v20, %v7786_v22 }
 0x8c4   :  { %v6372_v21 = vadd.f32 %v4403_v1, %v1721_v47 }
 0x8c5   :  { %v6370_v39 = vadd.f32 %v4403_v1, %v1720_v3 }
 0x8c6   :  { %v1747_v43 = vsel %vm191_vm1, %v6372_v21, 0.0 }
 0x8c7   :  { %v1744_v14 = vsel %vm191_vm1, %v6370_v39, 0.0 }
 0x8c8   :  { %1745 = vadd.xlane.f32.xlu0 %v1744_v14 }
 0x8c9   :  { %v4682_v41 = vpop.f32.mrb[12].mxu1 }
 0x8ca   :  { %v1723_v36 = vadd.f32 %v4682_v41, %v7787_v53  ;;  %v1699_v46 = vpop.f32.mrb[13].mxu1 }
 0x8cb   :  { %v1722_v61 = vadd.f32 %v1699_v46, %v7788_v18 }
 0x8cc   :  { %v6380_v26 = vadd.f32 %v4403_v1, %v1723_v36  ;;  %1748 = vadd.xlane.f32.xlu0 %v1747_v43 }
 0x8cd   :  { %v6382_v38 = vadd.f32 %v4403_v1, %v1722_v61 }
 0x8ce   :  { %v1753_v42 = vsel %vm191_vm1, %v6380_v26, 0.0 }
 0x8cf   :  { %v1750_v50 = vsel %vm191_vm1, %v6382_v38, 0.0 }
 0x8d0   :  { %1754 = vadd.xlane.f32.xlu0 %v1753_v42  ;;  %1751 = vadd.xlane.f32.xlu1 %v1750_v50 }
 0x8e0   :  { %v4685_v49 = vpop.f32.mrb[14].mxu1 }
 0x8e1   :  { %v1725_v54 = vadd.f32 %v4685_v49, %v7789_v58  ;;  %v1709_v2 = vpop.f32.mrb[15].mxu1 }
 0x8e2   :  { %v1724_v59 = vadd.f32 %v1709_v2, %v7790_v60  ;;  %v1867_v2 = vld [vmem:[%s7759_s5 + $0x8] sm:$0xff] }
 0x8e3   :  { %v6390_v11 = vadd.f32 %v4403_v1, %v1725_v54  ;;  %v1866_v54 = vld [vmem:[%s7759_s5] sm:$0xff] }
 0x8e4   :  { %v6392_v13 = vadd.f32 %v4403_v1, %v1724_v59  ;;  %v4861_v60 = vpack.c.bf16 %v1867_v2, %v1866_v54  ;;  %v1868_v59 = vld [vmem:[%s7759_s5 + $0x10] sm:$0xff] }
 0x8e5   :  { %v1759_v9 = vsel %vm191_vm1, %v6390_v11, 0.0 }
 0x8e6   :  { %1760 = vadd.xlane.f32.xlu0 %v1759_v9  ;;  %v1756_v15 = vsel %vm191_vm1, %v6392_v13, 0.0  ;;  %4862 = vmatprep.subr.bf16.mxu0 %v4861_v60  ;;  %v1869_v9 = vld [vmem:[%s7759_s5 + $0x18] sm:$0xff] }
 0x8e7   :  { %1757 = vadd.xlane.f32.xlu1 %v1756_v15  ;;  %4864 = vmatpush3.bf16.msra.mxu0 %v4861_v60  ;;  %v4865_v15 = vpack.c.bf16 %v1869_v9, %v1868_v59 }
 0x8e9   :  { %4866 = vmatprep.subr.bf16.mxu0 %v4865_v15 }
 0x8eb   :  { %4868 = vmatpush3.bf16.msra.mxu0 %v4865_v15 }
 0x943   :  { %v1743_v6 = vpop.xlane.xlu1 %1742 }
 0x944   :  { %v1763_v62 = vmul.f32 0.03125, %v1743_v6  ;;  %v1740_v16 = vpop.xlane.xlu0 %1739 }
 0x945   :  { %v1762_v24 = vmul.f32 0.03125, %v1740_v16 }
 0x946   :  { %v6399_v35 = vsub.f32 %v6360_v12, %v1763_v62 }
 0x947   :  { %v6402_v27 = vsub.f32 %v6362_v37, %v1762_v24 }
 0x948   :  { %v1779_v1 = vmul.f32 %v6399_v35, %v6399_v35 }
 0x949   :  { %v1778_v7 = vmul.f32 %v6402_v27, %v6402_v27 }
 0x94a   :  { %v1789_v44 = vsel %vm191_vm1, %v1779_v1, 0.0 }
 0x94b   :  { %1790 = vadd.xlane.f32.xlu0 %v1789_v44  ;;  %v1786_v10 = vsel %vm191_vm1, %v1778_v7, 0.0 }
 0x94c   :  { %1787 = vadd.xlane.f32.xlu1 %v1786_v10 }
 0x955   :  { %v1746_v40 = vpop.xlane.xlu0 %1745 }
 0x956   :  { %v1764_v23 = vmul.f32 0.03125, %v1746_v40 }
 0x958   :  { %v6411_v19 = vsub.f32 %v6370_v39, %v1764_v23 }
 0x959   :  { %v1749_v48 = vpop.xlane.xlu0 %1748 }
 0x95a   :  { %v1765_v20 = vmul.f32 0.03125, %v1749_v48  ;;  %v1780_v47 = vmul.f32 %v6411_v19, %v6411_v19 }
 0x95c   :  { %v6416_v22 = vsub.f32 %v6372_v21, %v1765_v20  ;;  %v1792_v3 = vsel %vm191_vm1, %v1780_v47, 0.0 }
 0x95d   :  { %v1752_v14 = vpop.xlane.xlu1 %1751  ;;  %1793 = vadd.xlane.f32.xlu1 %v1792_v3  ;;  %v1755_v41 = vpop.xlane.xlu0 %1754 }
 0x95e   :  { %v1766_v53 = vmul.f32 0.03125, %v1752_v14  ;;  %v1767_v36 = vmul.f32 0.03125, %v1755_v41  ;;  %v1781_v46 = vmul.f32 %v6416_v22, %v6416_v22 }
 0x960   :  { %v6422_v18 = vsub.f32 %v6382_v38, %v1766_v53  ;;  %v6425_v61 = vsub.f32 %v6380_v26, %v1767_v36  ;;  %v1795_v43 = vsel %vm191_vm1, %v1781_v46, 0.0  ;;  %v4404_v36 = vld [vmem:[%s7757_s7 + $0x2] ss:$0 sm:$0xff] }
 0x961   :  { %1796 = vadd.xlane.f32.xlu0 %v1795_v43 }
 0x962   :  { %v1782_v42 = vmul.f32 %v6422_v18, %v6422_v18  ;;  %v1783_v50 = vmul.f32 %v6425_v61, %v6425_v61 }
 0x964   :  { %v1798_v49 = vsel %vm191_vm1, %v1782_v42, 0.0  ;;  %v1801_v58 = vsel %vm191_vm1, %v1783_v50, 0.0 }
 0x965   :  { %1799 = vadd.xlane.f32.xlu1 %v1798_v49  ;;  %1802 = vadd.xlane.f32.xlu0 %v1801_v58  ;;  %v4405_v58 = vld [vmem:[%s7757_s7 + $0x3] ss:$0 sm:$0xff] }
 0x973   :  { %v1761_v6 = vpop.xlane.xlu0 %1760 }
 0x974   :  { %v1769_v62 = vmul.f32 0.03125, %v1761_v6  ;;  %v1758_v16 = vpop.xlane.xlu1 %1757 }
 0x975   :  { %v1768_v24 = vmul.f32 0.03125, %v1758_v16 }
 0x976   :  { %v6447_v1 = vsub.f32 %v6390_v11, %v1769_v62 }
 0x977   :  { %v6450_v7 = vsub.f32 %v6392_v13, %v1768_v24 }
 0x978   :  { %v1785_v44 = vmul.f32 %v6447_v1, %v6447_v1 }
 0x979   :  { %v1784_v10 = vmul.f32 %v6450_v7, %v6450_v7 }
 0x97a   :  { %v1807_v40 = vsel %vm191_vm1, %v1785_v44, 0.0 }
 0x97b   :  { %1808 = vadd.xlane.f32.xlu0 %v1807_v40  ;;  %v1804_v23 = vsel %vm191_vm1, %v1784_v10, 0.0 }
 0x97c   :  { %1805 = vadd.xlane.f32.xlu1 %v1804_v23 }
 0x9d8   :  { %v1791_v48 = vpop.xlane.xlu0 %1790 }
 0x9d9   :  { %v1811_v20 = vmul.f32 0.03125, %v1791_v48  ;;  %v1788_v47 = vpop.xlane.xlu1 %1787 }
 0x9da   :  { %v1810_v3 = vmul.f32 0.03125, %v1788_v47 }
 0x9db   :  { %v1819_v14 = vadd.f32 1e-05, %v1811_v20 }
 0x9dc   :  { %v1818_v41 = vadd.f32 1e-05, %v1810_v3 }
 0x9dd   :  { %5143 = vrsqrt.f32 %v1819_v14 }
 0x9de   :  { %5145 = vrsqrt.f32 %v1818_v41 }
 0x9e7   :  { %v5144_v53 = vpop.eup %5143 }
 0x9e8   :  { %v5146_v46 = vpop.eup %5145  ;;  %v1835_v43 = vmul.f32 %v5144_v53, %v6399_v35 }
 0x9e9   :  { %v1834_v42 = vmul.f32 %v5146_v46, %v6402_v27 }
 0x9ea   :  { %v1847_v50 = vmul.f32 %v4404_v36, %v1835_v43  ;;  %v1794_v49 = vpop.xlane.xlu1 %1793 }
 0x9eb   :  { %v1812_v54 = vmul.f32 0.03125, %v1794_v49  ;;  %v1846_v2 = vmul.f32 %v4404_v36, %v1834_v42 }
 0x9ec   :  { %v1859_v15 = vadd.f32 %v4405_v58, %v1847_v50 }
 0x9ed   :  { %v1820_v60 = vadd.f32 1e-05, %v1812_v54  ;;  %v1858_v59 = vadd.f32 %v4405_v58, %v1846_v2 }
 0x9ee   :  { %v1797_v9 = vpop.xlane.xlu0 %1796 }
 0x9ef   :  { %5147 = vrsqrt.f32 %v1820_v60  ;;  %v1813_v6 = vmul.f32 0.03125, %v1797_v9  ;;  %4694 = vmatprep.mubr.msk.f32.mxu0 %vm191_vm1, %v1858_v59 }
 0x9f0   :  { %4695 = vmatmul.mubr.msk.f32.vlgmr.msra.gmra.mrb[8].mxu0 %vm191_vm1, %v1859_v15 }
 0x9f1   :  { %v1821_v35 = vadd.f32 1e-05, %v1813_v6 }
 0x9f2   :  { %v1800_v27 = vpop.xlane.xlu1 %1799  ;;  %v1803_v62 = vpop.xlane.xlu0 %1802 }
 0x9f3   :  { %5149 = vrsqrt.f32 %v1821_v35  ;;  %v1814_v16 = vmul.f32 0.03125, %v1800_v27  ;;  %v1815_v24 = vmul.f32 0.03125, %v1803_v62 }
 0x9f5   :  { %v1822_v44 = vadd.f32 1e-05, %v1814_v16  ;;  %v1823_v10 = vadd.f32 1e-05, %v1815_v24 }
 0x9f7   :  { %5151 = vrsqrt.f32 %v1822_v44  ;;  %v2043_v44 = vld [vmem:[%s7760_s6] sm:$0xff] }
 0x9f8   :  { %5153 = vrsqrt.f32 %v1823_v10  ;;  %v2044_v10 = vld [vmem:[%s7760_s6 + $0x8] sm:$0xff] }
 0x9f9   :  { %v5148_v40 = vpop.eup %5147 }
 0x9fa   :  { %v1836_v23 = vmul.f32 %v5148_v40, %v6411_v19  ;;  %v4869_v40 = vpack.c.bf16 %v2044_v10, %v2043_v44 }
 0x9fc   :  { %v1848_v48 = vmul.f32 %v4404_v36, %v1836_v23  ;;  %4870 = vmatprep.subr.bf16.mxu1 %v4869_v40  ;;  %v2048_v23 = vld [vmem:[%s7760_s6 + $0x28] sm:$0xff] }
 0x9fd   :  { %v5150_v20 = vpop.eup %5149  ;;  %4872 = vmatpush3.bf16.msra.mxu1 %v4869_v40 }
 0x9fe   :  { %v1860_v47 = vadd.f32 %v4405_v58, %v1848_v48  ;;  %v1837_v3 = vmul.f32 %v5150_v20, %v6416_v22  ;;  %v2049_v20 = vld [vmem:[%s7760_s6 + $0x30] sm:$0xff] }
 0xa00   :  { %4697 = vmatprep.mubr.msk.f32.mxu0 %vm191_vm1, %v1860_v47  ;;  %v1849_v14 = vmul.f32 %v4404_v36, %v1837_v3  ;;  %v2050_v47 = vld [vmem:[%s7760_s6 + $0x38] sm:$0xff] }
 0xa01   :  { %v5152_v41 = vpop.eup %5151  ;;  %v4881_v3 = vpack.c.bf16 %v2050_v47, %v2049_v20 }
 0xa02   :  { %v5154_v53 = vpop.eup %5153  ;;  %v1861_v46 = vadd.f32 %v4405_v58, %v1849_v14  ;;  %v1838_v43 = vmul.f32 %v5152_v41, %v6422_v18  ;;  %v4406_v14 = vld [vmem:[%s7757_s7 + $0x6] ss:$0 sm:$0xff] }
 0xa03   :  { %v1839_v42 = vmul.f32 %v5154_v53, %v6425_v61 }
 0xa04   :  { %4698 = vmatmul.mubr.msk.f32.gmra.mrb[10].mxu0 %vm191_vm1, %v1861_v46  ;;  %v1850_v50 = vmul.f32 %v4404_v36, %v1838_v43 }
 0xa05   :  { %v1851_v49 = vmul.f32 %v4404_v36, %v1839_v42 }
 0xa06   :  { %v1862_v19 = vadd.f32 %v4405_v58, %v1850_v50 }
 0xa07   :  { %v1863_v54 = vadd.f32 %v4405_v58, %v1851_v49 }
 0xa08   :  { %4700 = vmatprep.mubr.msk.f32.mxu0 %vm191_vm1, %v1862_v19  ;;  %v1809_v2 = vpop.xlane.xlu0 %1808 }
 0xa09   :  { %v1817_v22 = vmul.f32 0.03125, %v1809_v2  ;;  %v1806_v60 = vpop.xlane.xlu1 %1805  ;;  %4701 = vmatmul.mubr.msk.f32.gmra.mrb[12].mxu0 %vm191_vm1, %v1863_v54 }
 0xa0a   :  { %v1816_v59 = vmul.f32 0.03125, %v1806_v60 }
 0xa0b   :  { %v1825_v9 = vadd.f32 1e-05, %v1817_v22 }
 0xa0c   :  { %v1824_v15 = vadd.f32 1e-05, %v1816_v59 }
 0xa0d   :  { %5155 = vrsqrt.f32 %v1825_v9 }
 0xa0e   :  { %5157 = vrsqrt.f32 %v1824_v15 }
 0xa17   :  { %v5156_v18 = vpop.eup %5155 }
 0xa18   :  { %v5158_v61 = vpop.eup %5157  ;;  %v1841_v6 = vmul.f32 %v5156_v18, %v6447_v1  ;;  %v2045_v1 = vld [vmem:[%s7760_s6 + $0x10] sm:$0xff] }
 0xa19   :  { %v1840_v35 = vmul.f32 %v5158_v61, %v6450_v7  ;;  %v2046_v7 = vld [vmem:[%s7760_s6 + $0x18] sm:$0xff] }
 0xa1a   :  { %v1853_v27 = vmul.f32 %v4404_v36, %v1841_v6 }
 0xa1b   :  { %v1852_v62 = vmul.f32 %v4404_v36, %v1840_v35  ;;  %v4873_v36 = vpack.c.bf16 %v2046_v7, %v2045_v1 }
 0xa1c   :  { %v1865_v24 = vadd.f32 %v4405_v58, %v1853_v27 }
 0xa1d   :  { %v1864_v16 = vadd.f32 %v4405_v58, %v1852_v62  ;;  %4874 = vmatprep.subr.bf16.mxu1 %v4873_v36  ;;  %v2047_v58 = vld [vmem:[%s7760_s6 + $0x20] sm:$0xff] }
 0xa1e   :  { %4876 = vmatpush3.bf16.msra.mxu1 %v4873_v36  ;;  %v4877_v48 = vpack.c.bf16 %v2048_v23, %v2047_v58 }
 0xa1f   :  { %4703 = vmatprep.mubr.msk.f32.mxu0 %vm191_vm1, %v1864_v16 }
 0xa20   :  { %4704 = vmatmul.mubr.msk.f32.gmra.mrb[14].mxu0 %vm191_vm1, %v1865_v24  ;;  %4878 = vmatprep.subr.bf16.mxu1 %v4877_v48 }
 0xa22   :  { %4880 = vmatpush3.bf16.msra.mxu1 %v4877_v48 }
 0xa23   :  { %4882 = vmatprep.subr.bf16.mxu1 %v4881_v3 }
 0xa26   :  { %4884 = vmatpush3.bf16.msra.mxu1 %v4881_v3 }
 0xac3   :  { %v4696_v41 = vpop.f32.mrb[8].mxu0 }
 0xac4   :  { %v1970_v53 = vadd.f32 %v4696_v41, %v4406_v14  ;;  %v1964_v46 = vpop.f32.mrb[9].mxu0 }
 0xac5   :  { %v1965_v43 = vadd.f32 %v4406_v14, %v1964_v46 }
 0xac6   :  { %v2012_v42 = vmul.f32 0.70710677, %v1970_v53  ;;  %v2004_v60 = vmul.f32 0.5, %v1970_v53 }
 0xac7   :  { %v2011_v50 = vmul.f32 0.70710677, %v1965_v43  ;;  %v2003_v2 = vmul.f32 0.5, %v1965_v43 }
 0xac8   :  { %5159 = verf.f32 %v2012_v42 }
 0xac9   :  { %5161 = verf.f32 %v2011_v50 }
 0xad2   :  { %v5160_v49 = vpop.eup %5159 }
 0xad3   :  { %v5162_v19 = vpop.eup %5161  ;;  %v2028_v54 = vadd.f32 1.0, %v5160_v49 }
 0xad4   :  { %v2027_v22 = vadd.f32 1.0, %v5162_v19 }
 0xad5   :  { %v2036_v9 = vmul.f32 %v2028_v54, %v2004_v60 }
 0xad6   :  { %v2035_v59 = vmul.f32 %v2027_v22, %v2003_v2 }
 0xad7   :  { %v4699_v15 = vpop.f32.mrb[10].mxu0 }
 0xad8   :  { %v1980_v18 = vadd.f32 %v4699_v15, %v4406_v14  ;;  %v1974_v61 = vpop.f32.mrb[11].mxu0  ;;  %4722 = vmatprep.mubr.msk.f32.mxu1 %vm2051_vm7, %v2035_v59 }
 0xad9   :  { %v1975_v6 = vadd.f32 %v4406_v14, %v1974_v61  ;;  %4723 = vmatmul.mubr.msk.f32.vlgmr.msra.gmra.mrb[16].mxu1 %vm2051_vm7, %v2036_v9 }
 0xada   :  { %v2014_v35 = vmul.f32 0.70710677, %v1980_v18  ;;  %v2006_v48 = vmul.f32 0.5, %v1980_v18 }
 0xadb   :  { %v2013_v27 = vmul.f32 0.70710677, %v1975_v6  ;;  %v2005_v58 = vmul.f32 0.5, %v1975_v6 }
 0xadc   :  { %5163 = verf.f32 %v2014_v35  ;;  %v4702_v62 = vpop.f32.mrb[12].mxu0 }
 0xadd   :  { %5165 = verf.f32 %v2013_v27  ;;  %v1990_v16 = vadd.f32 %v4702_v62, %v4406_v14  ;;  %v1984_v24 = vpop.f32.mrb[13].mxu0 }
 0xade   :  { %v1985_v44 = vadd.f32 %v4406_v14, %v1984_v24 }
 0xadf   :  { %v2016_v10 = vmul.f32 0.70710677, %v1990_v16  ;;  %v2008_v42 = vmul.f32 0.5, %v1990_v16 }
 0xae0   :  { %v2015_v40 = vmul.f32 0.70710677, %v1985_v44  ;;  %v2007_v46 = vmul.f32 0.5, %v1985_v44 }
 0xae1   :  { %5167 = verf.f32 %v2016_v10 }
 0xae2   :  { %5169 = verf.f32 %v2015_v40 }
 0xae6   :  { %v5164_v1 = vpop.eup %5163 }
 0xae7   :  { %v5166_v7 = vpop.eup %5165  ;;  %v2030_v36 = vadd.f32 1.0, %v5164_v1 }
 0xae8   :  { %v2029_v23 = vadd.f32 1.0, %v5166_v7 }
 0xae9   :  { %v2038_v3 = vmul.f32 %v2030_v36, %v2006_v48 }
 0xaea   :  { %v2037_v20 = vmul.f32 %v2029_v23, %v2005_v58 }
 0xaeb   :  { %v5168_v47 = vpop.eup %5167 }
 0xaec   :  { %v5170_v41 = vpop.eup %5169  ;;  %v2032_v53 = vadd.f32 1.0, %v5168_v47  ;;  %4725 = vmatprep.mubr.msk.f32.mxu1 %vm2051_vm7, %v2037_v20 }
 0xaed   :  { %v2031_v43 = vadd.f32 1.0, %v5170_v41  ;;  %4726 = vmatmul.mubr.msk.f32.gmra.mrb[18].mxu1 %vm2051_vm7, %v2038_v3 }
 0xaee   :  { %v2040_v49 = vmul.f32 %v2032_v53, %v2008_v42 }
 0xaef   :  { %v2039_v50 = vmul.f32 %v2031_v43, %v2007_v46 }
 0xaf1   :  { %4728 = vmatprep.mubr.msk.f32.mxu1 %vm2051_vm7, %v2039_v50 }
 0xaf2   :  { %4729 = vmatmul.mubr.msk.f32.gmra.mrb[20].mxu1 %vm2051_vm7, %v2040_v49 }
 0xaf3   :  { %v4705_v19 = vpop.f32.mrb[14].mxu0 }
 0xaf4   :  { %v2000_v54 = vadd.f32 %v4705_v19, %v4406_v14  ;;  %v1994_v2 = vpop.f32.mrb[15].mxu0 }
 0xaf5   :  { %v1995_v22 = vadd.f32 %v4406_v14, %v1994_v2  ;;  %v4423_v14 = vld [vmem:[%s7757_s7 + $0x5] ss:$0 sm:$0xff] }
 0xaf6   :  { %v2018_v60 = vmul.f32 0.70710677, %v2000_v54  ;;  %v2010_v35 = vmul.f32 0.5, %v2000_v54 }
 0xaf7   :  { %v2017_v59 = vmul.f32 0.70710677, %v1995_v22  ;;  %v2009_v61 = vmul.f32 0.5, %v1995_v22 }
 0xaf8   :  { %5171 = verf.f32 %v2018_v60 }
 0xaf9   :  { %5173 = verf.f32 %v2017_v59 }
 0xb02   :  { %v5172_v9 = vpop.eup %5171 }
 0xb03   :  { %v5174_v15 = vpop.eup %5173  ;;  %v2034_v18 = vadd.f32 1.0, %v5172_v9 }
 0xb04   :  { %v2033_v6 = vadd.f32 1.0, %v5174_v15 }
 0xb05   :  { %v2042_v62 = vmul.f32 %v2034_v18, %v2010_v35 }
 0xb06   :  { %v2041_v27 = vmul.f32 %v2033_v6, %v2009_v61 }
 0xb08   :  { %4731 = vmatprep.mubr.msk.f32.mxu1 %vm2051_vm7, %v2041_v27 }
 0xb09   :  { %4732 = vmatmul.mubr.msk.f32.gmra.mrb[22].mxu1 %vm2051_vm7, %v2042_v62 }
 0xbac   :  { %v4724_v16 = vpop.f32.mrb[16].mxu1 }
 0xbad   :  { %v2182_v24 = vadd.f32 %v4724_v16, %v6360_v12  ;;  %v2142_v44 = vpop.f32.mrb[17].mxu1 }
 0xbae   :  { %v2181_v10 = vadd.f32 %v2142_v44, %v6362_v37 }
 0xbaf   :  { %v6520_v40 = vadd.f32 %v4423_v14, %v2182_v24 }
 0xbb0   :  { %v6522_v1 = vadd.f32 %v4423_v14, %v2181_v10 }
 0xbb1   :  { %v2213_v7 = vsel %vm191_vm1, %v6520_v40, 0.0 }
 0xbb2   :  { %2214 = vadd.xlane.f32.xlu0 %v2213_v7  ;;  %v2210_v36 = vsel %vm191_vm1, %v6522_v1, 0.0 }
 0xbb3   :  { %2211 = vadd.xlane.f32.xlu1 %v2210_v36 }
 0xbc0   :  { %v4727_v58 = vpop.f32.mrb[18].mxu1 }
 0xbc1   :  { %v2184_v23 = vadd.f32 %v4727_v58, %v6372_v21  ;;  %v2152_v48 = vpop.f32.mrb[19].mxu1 }
 0xbc2   :  { %v2183_v12 = vadd.f32 %v2152_v48, %v6370_v39 }
 0xbc3   :  { %v6530_v20 = vadd.f32 %v4423_v14, %v2184_v23 }
 0xbc4   :  { %v6532_v37 = vadd.f32 %v4423_v14, %v2183_v12 }
 0xbc5   :  { %v4730_v47 = vpop.f32.mrb[20].mxu1  ;;  %v2219_v3 = vsel %vm191_vm1, %v6530_v20, 0.0 }
 0xbc6   :  { %v2186_v41 = vadd.f32 %v4730_v47, %v6380_v26  ;;  %2220 = vadd.xlane.f32.xlu0 %v2219_v3  ;;  %v2162_v53 = vpop.f32.mrb[21].mxu1  ;;  %v2216_v46 = vsel %vm191_vm1, %v6532_v37, 0.0 }
 0xbc7   :  { %v2185_v21 = vadd.f32 %v2162_v53, %v6382_v38  ;;  %2217 = vadd.xlane.f32.xlu1 %v2216_v46 }
 0xbc8   :  { %v6540_v43 = vadd.f32 %v4423_v14, %v2186_v41 }
 0xbc9   :  { %v6542_v39 = vadd.f32 %v4423_v14, %v2185_v21 }
 0xbca   :  { %v2225_v42 = vsel %vm191_vm1, %v6540_v43, 0.0 }
 0xbcb   :  { %7791 = vst [vmem:[#allocation2_spill] sm:$0xff] %v6542_v39  ;;  %2226 = vadd.xlane.f32.xlu0 %v2225_v42  ;;  %v2222_v50 = vsel %vm191_vm1, %v6542_v39, 0.0 }
 0xbcc   :  { %2223 = vadd.xlane.f32.xlu1 %v2222_v50 }
 0xbdc   :  { %v4733_v26 = vpop.f32.mrb[22].mxu1 }
 0xbdd   :  { %v2188_v49 = vadd.f32 %v4733_v26, %v6390_v11  ;;  %v2172_v19 = vpop.f32.mrb[23].mxu1  ;;  %v4434_v26 = vld [vmem:[%s7756_s3 + $0x20] sm:$0xff] }
 0xbde   :  { %v2187_v54 = vadd.f32 %v2172_v19, %v6392_v13 }
 0xbdf   :  { %v6550_v38 = vadd.f32 %v4423_v14, %v2188_v49  ;;  %v4435_v49 = vld [vmem:[%s7756_s3 + $0x28] sm:$0xff] }
 0xbe0   :  { %v6552_v2 = vadd.f32 %v4423_v14, %v2187_v54  ;;  %v4885_v19 = vpack.c.bf16 %v4435_v49, %v4434_v26  ;;  %v4436_v54 = vld [vmem:[%s7756_s3 + $0x30] sm:$0xff] }
 0xbe1   :  { %7792 = vst [vmem:[#allocation3_spill] sm:$0xff] %v6550_v38  ;;  %v2231_v22 = vsel %vm191_vm1, %v6550_v38, 0.0 }
 0xbe2   :  { %7793 = vst [vmem:[#allocation4_spill] sm:$0xff] %v6552_v2  ;;  %2232 = vadd.xlane.f32.xlu0 %v2231_v22  ;;  %v2228_v60 = vsel %vm191_vm1, %v6552_v2, 0.0  ;;  %4886 = vmatprep.subr.bf16.mxu0 %v4885_v19  ;;  %v4437_v22 = vld [vmem:[%s7756_s3 + $0x38] sm:$0xff]  ;;  %s5299_s3 = smov 8  }
 0xbe3   :  { %2229 = vadd.xlane.f32.xlu1 %v2228_v60  ;;  %4888 = vmatpush3.bf16.msra.mxu0 %v4885_v19  ;;  %v4889_v60 = vpack.c.bf16 %v4437_v22, %v4436_v54 }
 0xbe5   :  { %4890 = vmatprep.subr.bf16.mxu0 %v4889_v60 }
 0xbe7   :  { %4892 = vmatpush3.bf16.msra.mxu0 %v4889_v60 }
 0xc3f   :  { %v2215_v59 = vpop.xlane.xlu0 %2214 }
 0xc40   :  { %v2235_v9 = vmul.f32 0.03125, %v2215_v59  ;;  %v2212_v15 = vpop.xlane.xlu1 %2211  ;;  %v1001_v59 = vadd.f32 %v6178_v25, %v6116_v51  ;;  %v1530_v25 = vadd.f32 %v6162_v4, %v6100_v31 }
 0xc41   :  { %v2234_v18 = vmul.f32 0.03125, %v2212_v15 }
 0xc42   :  { %v6559_v11 = vsub.f32 %v6520_v40, %v2235_v9 }
 0xc43   :  { %v6562_v13 = vsub.f32 %v6522_v1, %v2234_v18  ;;  %v1021_v18 = vmul.f32 0.5, %v1001_v59 }
 0xc44   :  { %v2251_v61 = vmul.f32 %v6559_v11, %v6559_v11 }
 0xc45   :  { %v2250_v6 = vmul.f32 %v6562_v13, %v6562_v13 }
 0xc46   :  { %v2261_v35 = vsel %vm191_vm1, %v2251_v61, 0.0  ;;  %v1265_v61 = vadd.f32 %v6185_v28, %v6127_v8  ;;  %v1550_v28 = vmul.f32 0.5, %v1530_v25 }
 0xc47   :  { %2262 = vadd.xlane.f32.xlu0 %v2261_v35  ;;  %v2258_v27 = vsel %vm191_vm1, %v2250_v6, 0.0 }
 0xc48   :  { %2259 = vadd.xlane.f32.xlu1 %v2258_v27  ;;  %v1285_v35 = vmul.f32 0.5, %v1265_v61 }
 0xc53   :  { %v2221_v62 = vpop.xlane.xlu0 %2220 }
 0xc54   :  { %v2237_v14 = vmul.f32 0.03125, %v2221_v62  ;;  %v2218_v16 = vpop.xlane.xlu1 %2217  ;;  %v1266_v62 = vadd.f32 %v6155_v63, %v6079_v5  ;;  %v1529_v63 = vadd.f32 %v6199_v29, %v6134_v0 }
 0xc55   :  { %v2236_v24 = vmul.f32 0.03125, %v2218_v16 }
 0xc56   :  { %v6571_v44 = vsub.f32 %v6530_v20, %v2237_v14  ;;  %v1286_v8 = vmul.f32 0.5, %v1266_v62  ;;  %v1002_v14 = vadd.f32 %v6145_v57, %v6072_v32  ;;  %v1549_v16 = vmul.f32 0.5, %v1529_v63 }
 0xc57   :  { %v6574_v10 = vsub.f32 %v6532_v37, %v2236_v24 }
 0xc58   :  { %v2227_v7 = vpop.xlane.xlu0 %2226  ;;  %v2253_v36 = vmul.f32 %v6571_v44, %v6571_v44  ;;  %v1022_v5 = vmul.f32 0.5, %v1002_v14 }
 0xc59   :  { %v2239_v58 = vmul.f32 0.03125, %v2227_v7  ;;  %v2224_v23 = vpop.xlane.xlu1 %2223  ;;  %v2252_v48 = vmul.f32 %v6574_v10, %v6574_v10 }
 0xc5a   :  { %v2238_v12 = vmul.f32 0.03125, %v2224_v23  ;;  %v2267_v47 = vsel %vm191_vm1, %v2253_v36, 0.0 }
 0xc5b   :  { %v6582_v3 = vsub.f32 %v6540_v43, %v2239_v58  ;;  %2268 = vadd.xlane.f32.xlu0 %v2267_v47  ;;  %v2264_v41 = vsel %vm191_vm1, %v2252_v48, 0.0 }
 0xc5c   :  { %v6586_v53 = vsub.f32 %v6542_v39, %v2238_v12  ;;  %2265 = vadd.xlane.f32.xlu1 %v2264_v41  ;;  %v6639_v12 = vld [vmem:[%s7757_s7 + $0x8] ss:$0 sm:$0xff] }
 0xc5d   :  { %v2255_v46 = vmul.f32 %v6582_v3, %v6582_v3 }
 0xc5e   :  { %v2254_v21 = vmul.f32 %v6586_v53, %v6586_v53 }
 0xc5f   :  { %v2273_v42 = vsel %vm191_vm1, %v2255_v46, 0.0 }
 0xc60   :  { %2274 = vadd.xlane.f32.xlu0 %v2273_v42  ;;  %v2270_v50 = vsel %vm191_vm1, %v2254_v21, 0.0  ;;  %v6647_v42 = vld [vmem:[%s7757_s7 + $0x9] ss:$0 sm:$0xff] }
 0xc61   :  { %2271 = vadd.xlane.f32.xlu1 %v2270_v50 }
 0xc6f   :  { %v2233_v9 = vpop.xlane.xlu0 %2232 }
 0xc70   :  { %v2241_v15 = vmul.f32 0.03125, %v2233_v9  ;;  %v2230_v24 = vpop.xlane.xlu1 %2229 }
 0xc71   :  { %v2240_v31 = vmul.f32 0.03125, %v2230_v24 }
 0xc72   :  { %v6611_v6 = vsub.f32 %v6550_v38, %v2241_v15  ;;  %1553 = vrot.lane.b32.xlu1 %v1021_v18, %s5298_s15 }
 0xc73   :  { %v6631_v4 = vsub.f32 %v6552_v2, %v2240_v31 }
 0xc74   :  { %v2257_v27 = vmul.f32 %v6611_v6, %v6611_v6 }
 0xc75   :  { %v2256_v7 = vmul.f32 %v6631_v4, %v6631_v4 }
 0xc76   :  { %1561 = vrot.lane.b32.xlu1 %v1285_v35, %s5299_s3  ;;  %v2279_v51 = vsel %vm191_vm1, %v2257_v27, 0.0 }
 0xc77   :  { %2280 = vadd.xlane.f32.xlu0 %v2279_v51  ;;  %v2276_v36 = vsel %vm191_vm1, %v2256_v7, 0.0 }
 0xc7a   :  { %1563 = vrot.lane.b32.xlu1 %v1286_v8, %s5299_s3 }
 0xc7e   :  { %1571 = vrot.lane.b32.xlu1 %v1550_v28, %s5300_s2 }
 0xc8d   :  { %1555 = vrot.lane.b32.xlu0 %v1022_v5, %s5298_s15 }
 0xc91   :  { %1569 = vrot.lane.b32.xlu0 %v1549_v16, %s5300_s2 }
 0xca2   :  { %2277 = vadd.xlane.f32.xlu1 %v2276_v36 }
 0xcd4   :  { %v2263_v32 = vpop.xlane.xlu0 %2262 }
 0xcd5   :  { %v2283_v57 = vmul.f32 0.03125, %v2263_v32  ;;  %v2260_v58 = vpop.xlane.xlu1 %2259 }
 0xcd6   :  { %v2282_v0 = vmul.f32 0.03125, %v2260_v58 }
 0xcd7   :  { %v2291_v29 = vadd.f32 1e-05, %v2283_v57 }
 0xcd8   :  { %v2290_v23 = vadd.f32 1e-05, %v2282_v0 }
 0xcd9   :  { %5175 = vrsqrt.f32 %v2291_v29 }
 0xcda   :  { %5177 = vrsqrt.f32 %v2290_v23 }
 0xce3   :  { %v5176_v48 = vpop.eup %5175 }
 0xce4   :  { %v5178_v47 = vpop.eup %5177  ;;  %v2307_v41 = vmul.f32 %v5176_v48, %v6559_v11 }
 0xce5   :  { %v2306_v46 = vmul.f32 %v5178_v47, %v6562_v13 }
 0xce6   :  { %v2319_v21 = vmul.f32 %v6639_v12, %v2307_v41 }
 0xce7   :  { %v2318_v50 = vmul.f32 %v6639_v12, %v2306_v46 }
 0xce8   :  { %v2269_v26 = vpop.xlane.xlu0 %2268  ;;  %v2331_v60 = vadd.f32 %v6647_v42, %v2319_v21 }
 0xce9   :  { %v2285_v49 = vmul.f32 0.03125, %v2269_v26  ;;  %v2266_v19 = vpop.xlane.xlu1 %2265  ;;  %v2330_v54 = vadd.f32 %v6647_v42, %v2318_v50 }
 0xcea   :  { %v2284_v22 = vmul.f32 0.03125, %v2266_v19 }
 0xceb   :  { %v2293_v11 = vadd.f32 1e-05, %v2285_v49  ;;  %4742 = vmatprep.mubr.msk.f32.mxu0 %vm191_vm1, %v2330_v54 }
 0xcec   :  { %v2292_v13 = vadd.f32 1e-05, %v2284_v22  ;;  %4743 = vmatmul.mubr.msk.f32.vlgmr.msra.gmra.mrb[16].mxu0 %vm191_vm1, %v2331_v60 }
 0xced   :  { %5179 = vrsqrt.f32 %v2293_v11  ;;  %v2275_v59 = vpop.xlane.xlu0 %2274 }
 0xcee   :  { %5181 = vrsqrt.f32 %v2292_v13  ;;  %v2287_v9 = vmul.f32 0.03125, %v2275_v59  ;;  %v2272_v15 = vpop.xlane.xlu1 %2271 }
 0xcef   :  { %v2286_v18 = vmul.f32 0.03125, %v2272_v15 }
 0xcf0   :  { %v2295_v61 = vadd.f32 1e-05, %v2287_v9 }
 0xcf1   :  { %v2294_v35 = vadd.f32 1e-05, %v2286_v18 }
 0xcf2   :  { %5183 = vrsqrt.f32 %v2295_v61  ;;  %v1554_v51 = vpop.permute.xlu1 %1553  ;;  %v4438_v61 = vld [vmem:[%s7757_s7 + $0xf] ss:$0 sm:$0xff] }
 0xcf3   :  { %5185 = vrsqrt.f32 %v2294_v35 }
 0xcf6   :  { %v1562_v31 = vpop.permute.xlu1 %1561 }
 0xcf7   :  { %v5180_v27 = vpop.eup %5179 }
 0xcf8   :  { %v5182_v62 = vpop.eup %5181  ;;  %v2309_v8 = vmul.f32 %v5180_v27, %v6571_v44 }
 0xcf9   :  { %v2308_v25 = vmul.f32 %v5182_v62, %v6574_v10 }
 0xcfa   :  { %v2321_v28 = vmul.f32 %v6639_v12, %v2309_v8  ;;  %v1564_v58 = vpop.permute.xlu1 %1563 }
 0xcfb   :  { %v2320_v14 = vmul.f32 %v6639_v12, %v2308_v25 }
 0xcfc   :  { %v5184_v5 = vpop.eup %5183  ;;  %v2333_v7 = vadd.f32 %v6647_v42, %v2321_v28 }
 0xcfd   :  { %v5186_v63 = vpop.eup %5185  ;;  %v2332_v16 = vadd.f32 %v6647_v42, %v2320_v14  ;;  %v2311_v24 = vmul.f32 %v5184_v5, %v6582_v3  ;;  %v738_v3 = vadd.f32 %v6166_v33, %v6067_v56 }
 0xcfe   :  { %v2310_v36 = vmul.f32 %v5186_v63, %v6586_v53  ;;  %v737_v53 = vadd.f32 %v6172_v52, %v6105_v30  ;;  %v1572_v41 = vpop.permute.xlu1 %1571 }
 0xcff   :  { %4745 = vmatprep.mubr.msk.f32.mxu0 %vm191_vm1, %v2332_v16  ;;  %v2323_v44 = vmul.f32 %v6639_v12, %v2311_v24  ;;  %v758_v29 = vmul.f32 0.5, %v738_v3 }
 0xd00   :  { %4746 = vmatmul.mubr.msk.f32.gmra.mrb[18].mxu0 %vm191_vm1, %v2333_v7  ;;  %v2322_v10 = vmul.f32 %v6639_v12, %v2310_v36  ;;  %v757_v48 = vmul.f32 0.5, %v737_v53 }
 0xd01   :  { %v2335_v57 = vadd.f32 %v6647_v42, %v2323_v44 }
 0xd02   :  { %v2334_v32 = vadd.f32 %v6647_v42, %v2322_v10  ;;  %v1575_v56 = vsel %vm534_vm6, %v757_v48, %v1554_v51 }
 0xd03   :  { %v1578_v21 = vsel %vm1577_vm9, %v1575_v56, %v1562_v31 }
 0xd04   :  { %4748 = vmatprep.mubr.msk.f32.mxu0 %vm191_vm1, %v2334_v32  ;;  %v2281_v0 = vpop.xlane.xlu0 %2280 }
 0xd05   :  { %4749 = vmatmul.mubr.msk.f32.gmra.mrb[20].mxu0 %vm191_vm1, %v2335_v57  ;;  %v2289_v50 = vmul.f32 0.03125, %v2281_v0 }
 0xd07   :  { %v2297_v26 = vadd.f32 1e-05, %v2289_v50 }
 0xd08   :  { %v1556_v23 = vpop.permute.xlu0 %1555 }
 0xd09   :  { %v1576_v47 = vsel %vm534_vm6, %v758_v29, %v1556_v23  ;;  %5187 = vrsqrt.f32 %v2297_v26 }
 0xd0a   :  { %v1579_v46 = vsel %vm1577_vm9, %v1576_v47, %v1564_v58 }
 0xd0b   :  { %v1582_v33 = vsel %vm1580_vm8, %v1579_v46, %v1572_v41 }
 0xd0c   :  { %1584 = vst.msk [vmem:[%s7761_s11 + $0x8] sm:$0xff] %vm470_vm2, %v1582_v33  ;;  %v1570_v30 = vpop.permute.xlu0 %1569 }
 0xd0d   :  { %v1581_v52 = vsel %vm1580_vm8, %v1578_v21, %v1570_v30 }
 0xd0e   :  { %1583 = vst.msk [vmem:[%s7761_s11] sm:$0xff] %vm470_vm2, %v1581_v52 }
 0xd13   :  { %v5188_v22 = vpop.eup %5187 }
 0xd14   :  { %v2313_v60 = vmul.f32 %v5188_v22, %v6611_v6 }
 0xd16   :  { %v2325_v59 = vmul.f32 %v6639_v12, %v2313_v60 }
 0xd18   :  { %v2337_v18 = vadd.f32 %v6647_v42, %v2325_v59 }
 0xd2f   :  { %v2278_v49 = vpop.xlane.xlu1 %2277 }
 0xd30   :  { %v2288_v19 = vmul.f32 0.03125, %v2278_v49 }
 0xd32   :  { %v2296_v54 = vadd.f32 1e-05, %v2288_v19 }
 0xd34   :  { %5189 = vrsqrt.f32 %v2296_v54 }
 0xd3e   :  { %v5190_v11 = vpop.eup %5189 }
 0xd3f   :  { %v2312_v13 = vmul.f32 %v5190_v11, %v6631_v4 }
 0xd41   :  { %v2324_v9 = vmul.f32 %v6639_v12, %v2312_v13 }
 0xd43   :  { %v2336_v15 = vadd.f32 %v6647_v42, %v2324_v9 }
 0xd45   :  { %4751 = vmatprep.mubr.msk.f32.mxu0 %vm191_vm1, %v2336_v15 }
 0xd46   :  { %4752 = vmatmul.mubr.msk.f32.gmra.mrb[22].mxu0 %vm191_vm1, %v2337_v18 }
 0xdbf   :  { %v4744_v6 = vpop.f32.mrb[16].mxu0 }
 0xdc0   :  { %v6699_v35 = vadd.f32 %v4744_v6, %v4438_v61  ;;  %v2437_v4 = vpop.f32.mrb[17].mxu0 }
 0xdc1   :  { %v6701_v27 = vadd.f32 %v4438_v61, %v2437_v4 }
 0xdc2   :  { %2482 = vrot.lane.b32.xlu1 %v6699_v35, %s5291_s21  ;;  %v6732_v31 = vmul.f32 0.25, %v6699_v35 }
 0xdc3   :  { %2480 = vrot.lane.b32.xlu0 %v6701_v27, %s5291_s21  ;;  %v6736_v10 = vmul.f32 0.25, %v6701_v27 }
 0xdd3   :  { %v4747_v12 = vpop.f32.mrb[18].mxu0 }
 0xdd4   :  { %v6707_v42 = vadd.f32 %v4747_v12, %v4438_v61  ;;  %v2447_v62 = vpop.f32.mrb[19].mxu0 }
 0xdd5   :  { %v6709_v51 = vadd.f32 %v4438_v61, %v2447_v62 }
 0xdd6   :  { %2498 = vrot.lane.b32.xlu1 %v6707_v42, %s5291_s21  ;;  %v6740_v32 = vmul.f32 0.25, %v6707_v42 }
 0xdd7   :  { %2496 = vrot.lane.b32.xlu0 %v6709_v51, %s5291_s21  ;;  %v6763_v33 = vmul.f32 0.25, %v6709_v51 }
 0xdd8   :  { %v4750_v8 = vpop.f32.mrb[20].mxu0 }
 0xdd9   :  { %v6715_v25 = vadd.f32 %v4750_v8, %v4438_v61  ;;  %v2457_v28 = vpop.f32.mrb[21].mxu0 }
 0xdda   :  { %v6717_v14 = vadd.f32 %v4438_v61, %v2457_v28 }
 0xddb   :  { %2514 = vrot.lane.b32.xlu1 %v6715_v25, %s5291_s21  ;;  %v6747_v0 = vmul.f32 0.25, %v6715_v25 }
 0xddc   :  { %2512 = vrot.lane.b32.xlu0 %v6717_v14, %s5291_s21  ;;  %v6768_v30 = vmul.f32 0.25, %v6717_v14 }
 0xe19   :  { %v4753_v5 = vpop.f32.mrb[22].mxu0 }
 0xe1a   :  { %v6723_v63 = vadd.f32 %v4753_v5, %v4438_v61  ;;  %v2467_v16 = vpop.f32.mrb[23].mxu0 }
 0xe1b   :  { %v6725_v24 = vadd.f32 %v4438_v61, %v2467_v16 }
 0xe1c   :  { %2530 = vrot.lane.b32.xlu1 %v6723_v63, %s5291_s21  ;;  %v6752_v29 = vmul.f32 0.25, %v6723_v63 }
 0xe1d   :  { %2528 = vrot.lane.b32.xlu0 %v6725_v24, %s5291_s21  ;;  %v6773_v50 = vmul.f32 0.25, %v6725_v24 }
 0xe34   :  { %v2483_v7 = vpop.permute.xlu1 %2482 }
 0xe35   :  { %v2481_v36 = vpop.permute.xlu0 %2480  ;;  %v2487_v44 = vmul.f32 %v2483_v7, %v6732_v31  ;;  %v2775_v3 = vmul.f32 %v6740_v32, %v2483_v7  ;;  %v3039_v53 = vmul.f32 %v6747_v0, %v2483_v7  ;;  %v3303_v23 = vmul.f32 %v6752_v29, %v2483_v7 }
 0xe36   :  { %v2486_v57 = vmul.f32 %v2481_v36, %v6736_v10  ;;  %v2774_v19 = vmul.f32 %v6763_v33, %v2481_v36  ;;  %v3038_v54 = vmul.f32 %v6768_v30, %v2481_v36  ;;  %v3302_v22 = vmul.f32 %v6773_v50, %v2481_v36 }
 0xe37   :  { %2622 = vrot.lane.b32.xlu1 %v2487_v44, %s5292_s22  ;;  %v2491_v49 = vsel %vm470_vm2, %v2487_v44, 0.0  ;;  %v2779_v6 = vsel %vm470_vm2, %v2775_v3, 0.0  ;;  %v3043_v4 = vsel %vm470_vm2, %v3039_v53, 0.0  ;;  %v3307_v62 = vsel %vm470_vm2, %v3303_v23, 0.0 }
 0xe38   :  { %v2488_v58 = vsel %vm470_vm2, %v2486_v57, 0.0  ;;  %v2776_v28 = vsel %vm470_vm2, %v2774_v19, 0.0  ;;  %v3040_v16 = vsel %vm470_vm2, %v3038_v54, 0.0  ;;  %v3304_v36 = vsel %vm470_vm2, %v3302_v22, 0.0 }
 0xe3b   :  { %2886 = vrot.lane.b32.xlu1 %v2775_v3, %s5292_s22 }
 0xe3c   :  { %2489 = vadd.xlane.f32.xlu0 %v2488_v58 }
 0xe3f   :  { %3150 = vrot.lane.b32.xlu1 %v3039_v53, %s5292_s22 }
 0xe43   :  { %3414 = vrot.lane.b32.xlu1 %v3303_v23, %s5292_s22 }
 0xe48   :  { %v2499_v48 = vpop.permute.xlu1 %2498 }
 0xe49   :  { %v2783_v47 = vmul.f32 %v6740_v32, %v2499_v48  ;;  %v3047_v41 = vmul.f32 %v6747_v0, %v2499_v48  ;;  %v3311_v46 = vmul.f32 %v6752_v29, %v2499_v48  ;;  %v2497_v56 = vpop.permute.xlu0 %2496 }
 0xe4a   :  { %v2782_v21 = vmul.f32 %v6763_v33, %v2497_v56  ;;  %v3046_v52 = vmul.f32 %v6768_v30, %v2497_v56  ;;  %v3310_v26 = vmul.f32 %v6773_v50, %v2497_v56  ;;  %v2502_v59 = vmul.f32 %v2497_v56, %v6736_v10 }
 0xe4b   :  { %v2787_v60 = vsel %vm470_vm2, %v2783_v47, 0.0  ;;  %v3051_v11 = vsel %vm470_vm2, %v3047_v41, 0.0  ;;  %v3315_v13 = vsel %vm470_vm2, %v3311_v46, 0.0 }
 0xe4c   :  { %v2504_v9 = vsel %vm470_vm2, %v2502_v59, 0.0  ;;  %v2784_v15 = vsel %vm470_vm2, %v2782_v21, 0.0  ;;  %v3048_v18 = vsel %vm470_vm2, %v3046_v52, 0.0  ;;  %v3312_v61 = vsel %vm470_vm2, %v3310_v26, 0.0 }
 0xe4d   :  { %v2515_v12 = vpop.permute.xlu1 %2514 }
 0xe4e   :  { %v2519_v8 = vmul.f32 %v2515_v12, %v6732_v31  ;;  %v6800_v5 = vmul.f32 %v6740_v32, %v2515_v12  ;;  %v6806_v7 = vmul.f32 %v6747_v0, %v2515_v12  ;;  %v6812_v44 = vmul.f32 %v6752_v29, %v2515_v12  ;;  %v2513_v3 = vpop.permute.xlu0 %2512 }
 0xe4f   :  { %v2518_v58 = vmul.f32 %v2513_v3, %v6736_v10 }
 0xe51   :  { %v2520_v53 = vsel %vm470_vm2, %v2518_v58, 0.0 }
 0xe52   :  { %2900 = vrot.lane.b32.xlu0 %v2783_v47, %s5292_s22 }
 0xe56   :  { %3164 = vrot.lane.b32.xlu0 %v3047_v41, %s5292_s22 }
 0xe5a   :  { %3428 = vrot.lane.b32.xlu0 %v3311_v46, %s5292_s22 }
 0xe5e   :  { %2898 = vrot.lane.b32.xlu0 %v2782_v21, %s5292_s22 }
 0xe62   :  { %3162 = vrot.lane.b32.xlu0 %v3046_v52, %s5292_s22 }
 0xe66   :  { %3426 = vrot.lane.b32.xlu0 %v3310_v26, %s5292_s22 }
 0xe67   :  { %2492 = vadd.xlane.f32.xlu1 %v2491_v49 }
 0xe78   :  { %2620 = vrot.lane.b32.xlu1 %v2486_v57, %s5292_s22  ;;  %v2503_v57 = vmul.f32 %v2499_v48, %v6732_v31 }
 0xe7a   :  { %v2507_v47 = vsel %vm470_vm2, %v2503_v57, 0.0 }
 0xe7c   :  { %2884 = vrot.lane.b32.xlu1 %v2774_v19, %s5292_s22 }
 0xe80   :  { %3148 = vrot.lane.b32.xlu1 %v3038_v54, %s5292_s22 }
 0xe84   :  { %3412 = vrot.lane.b32.xlu1 %v3302_v22, %s5292_s22 }
 0xe85   :  { %2788 = vadd.xlane.f32.xlu0 %v2787_v60 }
 0xe89   :  { %3052 = vadd.xlane.f32.xlu0 %v3051_v11  ;;  %v2523_v11 = vsel %vm470_vm2, %v2519_v8, 0.0 }
 0xe8d   :  { %3316 = vadd.xlane.f32.xlu0 %v3315_v13 }
 0xe8e   :  { %v2531_v23 = vpop.permute.xlu1 %2530 }
 0xe8f   :  { %v6822_v41 = vmul.f32 %v2531_v23, %v6732_v31  ;;  %v6827_v48 = vmul.f32 %v6740_v32, %v2531_v23  ;;  %v6832_v46 = vmul.f32 %v6747_v0, %v2531_v23  ;;  %v6837_v56 = vmul.f32 %v6752_v29, %v2531_v23  ;;  %v6842_v26 = vpop.permute.xlu0 %2528 }
 0xe90   :  { %v6848_v0 = vmul.f32 %v6842_v26, %v6736_v10  ;;  %v6854_v19 = vmul.f32 %v6763_v33, %v6842_v26  ;;  %v6862_v60 = vmul.f32 %v6768_v30, %v6842_v26 }
 0xe91   :  { %2505 = vadd.xlane.f32.xlu0 %v2504_v9 }
 0xe92   :  { %v2536_v29 = vsel %vm470_vm2, %v6848_v0, 0.0  ;;  %v2800_v22 = vsel %vm470_vm2, %v6854_v19, 0.0  ;;  %v3064_v13 = vsel %vm470_vm2, %v6862_v60, 0.0 }
 0xe95   :  { %2785 = vadd.xlane.f32.xlu0 %v2784_v15 }
 0xe99   :  { %3049 = vadd.xlane.f32.xlu0 %v3048_v18 }
 0xe9d   :  { %3313 = vadd.xlane.f32.xlu0 %v3312_v61 }
 0xea8   :  { %2780 = vadd.xlane.f32.xlu1 %v2779_v6 }
 0xea9   :  { %v2623_v31 = vpop.permute.xlu1 %2622 }
 0xeac   :  { %3044 = vadd.xlane.f32.xlu1 %v3043_v4 }
 0xead   :  { %v2887_v32 = vpop.permute.xlu1 %2886 }
 0xeae   :  { %v2893_v15 = vsel %vm470_vm2, %v2887_v32, 0.0 }
 0xeb0   :  { %3308 = vadd.xlane.f32.xlu1 %v3307_v62  ;;  %v2790_v62 = vmul.f32 %v6763_v33, %v2513_v3 }
 0xeb1   :  { %v3151_v21 = vpop.permute.xlu1 %3150 }
 0xeb2   :  { %v3157_v61 = vsel %vm470_vm2, %v3151_v21, 0.0 }
 0xeb3   :  { %2650 = vrot.lane.b32.xlu0 %v2519_v8, %s5292_s22 }
 0xeb4   :  { %2777 = vadd.xlane.f32.xlu1 %v2776_v28  ;;  %v3054_v28 = vmul.f32 %v6768_v30, %v2513_v3 }
 0xeb5   :  { %v3415_v52 = vpop.permute.xlu1 %3414 }
 0xeb6   :  { %v3421_v4 = vsel %vm470_vm2, %v3415_v52, 0.0 }
 0xeb7   :  { %2914 = vrot.lane.b32.xlu0 %v6800_v5, %s5292_s22 }
 0xeb8   :  { %3041 = vadd.xlane.f32.xlu1 %v3040_v16 }
 0xebb   :  { %3178 = vrot.lane.b32.xlu0 %v6806_v7, %s5292_s22 }
 0xebc   :  { %3305 = vadd.xlane.f32.xlu1 %v3304_v36 }
 0xebf   :  { %3442 = vrot.lane.b32.xlu0 %v6812_v44, %s5292_s22 }
 0xec9   :  { %v6887_v16 = vpop.xlane.xlu0 %2489 }
 0xecd   :  { %2636 = vrot.lane.b32.xlu1 %v2503_v57, %s5292_s22  ;;  %v3318_v57 = vmul.f32 %v6773_v50, %v2513_v3 }
 0xede   :  { %2521 = vadd.xlane.f32.xlu0 %v2520_v53 }
 0xef1   :  { %2508 = vadd.xlane.f32.xlu1 %v2507_v47 }
 0xef4   :  { %2664 = vrot.lane.b32.xlu0 %v6822_v41, %s5292_s22  ;;  %v6844_v49 = vpop.xlane.xlu1 %2492 }
 0xef8   :  { %2928 = vrot.lane.b32.xlu0 %v6827_v48, %s5292_s22  ;;  %v6856_v54 = vpop.permute.xlu1 %2620 }
 0xefc   :  { %3192 = vrot.lane.b32.xlu0 %v6832_v46, %s5292_s22  ;;  %v6864_v10 = vpop.permute.xlu1 %2884 }
 0xf00   :  { %3456 = vrot.lane.b32.xlu0 %v6837_v56, %s5292_s22  ;;  %v6870_v9 = vpop.permute.xlu1 %3148 }
 0xf02   :  { %2634 = vrot.lane.b32.xlu1 %v2502_v59, %s5292_s22  ;;  %v2629_v59 = vsel %vm470_vm2, %v2623_v31, 0.0 }
 0xf04   :  { %v6873_v18 = vpop.permute.xlu1 %3412 }
 0xf1f   :  { %2537 = vadd.xlane.f32.xlu0 %v2536_v29  ;;  %v2795_v29 = vsel %vm470_vm2, %v6800_v5, 0.0  ;;  %v2539_v5 = vsel %vm470_vm2, %v6822_v41, 0.0 }
 0xf23   :  { %2801 = vadd.xlane.f32.xlu0 %v2800_v22  ;;  %v3059_v22 = vsel %vm470_vm2, %v6806_v7, 0.0 }
 0xf26   :  { %2524 = vadd.xlane.f32.xlu1 %v2523_v11 }
 0xf27   :  { %3065 = vadd.xlane.f32.xlu0 %v3064_v13  ;;  %v2792_v13 = vsel %vm470_vm2, %v2790_v62, 0.0 }
 0xf2b   :  { %2630 = vadd.xlane.f32.xlu0 %v2629_v59 }
 0xf2f   :  { %2894 = vadd.xlane.f32.xlu0 %v2893_v15  ;;  %v3056_v15 = vsel %vm470_vm2, %v3054_v28, 0.0 }
 0xf33   :  { %3158 = vadd.xlane.f32.xlu0 %v3157_v61  ;;  %v3320_v61 = vsel %vm470_vm2, %v3318_v57, 0.0 }
 0xf35   :  { %v6876_v6 = vpop.xlane.xlu1 %2780 }
 0xf37   :  { %2648 = vrot.lane.b32.xlu1 %v2518_v58, %s5292_s22  ;;  %3422 = vadd.xlane.f32.xlu0 %v3421_v4  ;;  %v6894_v58 = vpop.permute.xlu0 %2900 }
 0xf39   :  { %v6880_v12 = vpop.xlane.xlu1 %3044 }
 0xf3b   :  { %2912 = vrot.lane.b32.xlu1 %v2790_v62, %s5292_s22  ;;  %v6900_v23 = vpop.permute.xlu0 %3164 }
 0xf3d   :  { %v6884_v8 = vpop.xlane.xlu1 %3308 }
 0xf3f   :  { %3176 = vrot.lane.b32.xlu1 %v3054_v28, %s5292_s22  ;;  %v6903_v31 = vpop.permute.xlu0 %3428 }
 0xf41   :  { %v6890_v36 = vpop.xlane.xlu1 %2777 }
 0xf43   :  { %3440 = vrot.lane.b32.xlu1 %v3318_v57, %s5292_s22  ;;  %v2899_v32 = vpop.permute.xlu0 %2898 }
 0xf44   :  { %v2904_v28 = vsel %vm470_vm2, %v2899_v32, 0.0  ;;  %v3326_v32 = vmul.f32 %v6773_v50, %v6842_v26  ;;  %v3067_v26 = vsel %vm470_vm2, %v6832_v46, 0.0  ;;  %v3154_v46 = vsel %vm470_vm2, %v6870_v9, 0.0 }
 0xf45   :  { %v6896_v53 = vpop.xlane.xlu1 %3041  ;;  %v3171_v9 = vsel %vm470_vm2, %v6900_v23, 0.0 }
 0xf47   :  { %v3163_v21 = vpop.permute.xlu0 %3162 }
 0xf49   :  { %v6898_v33 = vpop.xlane.xlu1 %3305 }
 0xf4b   :  { %v3427_v52 = vpop.permute.xlu0 %3426 }
 0xf4c   :  { %v3432_v41 = vsel %vm470_vm2, %v3427_v52, 0.0 }
 0xf4d   :  { %v2637_v47 = vpop.permute.xlu1 %2636 }
 0xf4e   :  { %v2643_v30 = vsel %vm470_vm2, %v2637_v47, 0.0 }
 0xf4f   :  { %2644 = vadd.xlane.f32.xlu0 %v2643_v30  ;;  %v6905_v3 = vpop.xlane.xlu0 %2788 }
 0xf53   :  { %v6911_v11 = vpop.xlane.xlu0 %3052 }
 0xf57   :  { %v6914_v59 = vpop.xlane.xlu0 %3316 }
 0xf5b   :  { %v6918_v4 = vpop.xlane.xlu0 %2505 }
 0xf5f   :  { %v6922_v7 = vpop.xlane.xlu0 %2785 }
 0xf60   :  { %v2806_v45 = vsel %vm525_vm3, %v6890_v36, %v6922_v7 }
 0xf67   :  { %2796 = vadd.xlane.f32.xlu1 %v2795_v29  ;;  %v6927_v29 = vpop.xlane.xlu0 %3049 }
 0xf6b   :  { %3060 = vadd.xlane.f32.xlu1 %v3059_v22  ;;  %v6930_v57 = vpop.xlane.xlu0 %3313  ;;  %v3168_v22 = vsel %vm470_vm2, %v3163_v21, 0.0 }
 0xf6f   :  { %2793 = vadd.xlane.f32.xlu1 %v2792_v13  ;;  %v2651_v13 = vpop.permute.xlu0 %2650 }
 0xf73   :  { %3057 = vadd.xlane.f32.xlu1 %v3056_v15  ;;  %v2657_v15 = vsel %vm470_vm2, %v2651_v13, 0.0  ;;  %v2626_v13 = vsel %vm470_vm2, %v6856_v54, 0.0  ;;  %v3418_v54 = vsel %vm470_vm2, %v6873_v18, 0.0 }
 0xf77   :  { %3321 = vadd.xlane.f32.xlu1 %v3320_v61 }
 0xf7b   :  { %2540 = vadd.xlane.f32.xlu1 %v2539_v5 }
 0xf7e   :  { %v6924_v47 = vpop.xlane.xlu1 %2508 }
 0xf82   :  { %v2635_v62 = vpop.permute.xlu1 %2634 }
 0xf83   :  { %v2640_v30 = vsel %vm470_vm2, %v2635_v62, 0.0 }
 0xf84   :  { %2641 = vadd.xlane.f32.xlu0 %v2640_v30  ;;  %v2803_v30 = vsel %vm470_vm2, %v6827_v48, 0.0 }
 0xf88   :  { %2905 = vadd.xlane.f32.xlu0 %v2904_v28 }
 0xf8c   :  { %2662 = vrot.lane.b32.xlu1 %v6848_v0, %s5292_s22  ;;  %3169 = vadd.xlane.f32.xlu0 %v3168_v22  ;;  %v2915_v0 = vpop.permute.xlu0 %2914 }
 0xf8d   :  { %v2921_v18 = vsel %vm470_vm2, %v2915_v0, 0.0 }
 0xf90   :  { %2926 = vrot.lane.b32.xlu1 %v6854_v19, %s5292_s22  ;;  %3433 = vadd.xlane.f32.xlu0 %v3432_v41  ;;  %v3179_v21 = vpop.permute.xlu0 %3178 }
 0xf94   :  { %3190 = vrot.lane.b32.xlu1 %v6862_v60, %s5292_s22  ;;  %2658 = vadd.xlane.f32.xlu0 %v2657_v15  ;;  %v6944_v61 = vpop.permute.xlu0 %3442  ;;  %v2890_v15 = vsel %vm470_vm2, %v6864_v10, 0.0  ;;  %v2907_v10 = vsel %vm470_vm2, %v6894_v58, 0.0 }
 0xf98   :  { %3454 = vrot.lane.b32.xlu1 %v3326_v32, %s5292_s22  ;;  %v6948_v5 = vpop.xlane.xlu0 %2521 }
 0xf9c   :  { %v2665_v28 = vpop.permute.xlu0 %2664 }
 0xf9d   :  { %v2671_v48 = vsel %vm470_vm2, %v2665_v28, 0.0 }
 0xfa0   :  { %v2929_v41 = vpop.permute.xlu0 %2928 }
 0xfb3   :  { %v6946_v52 = vpop.xlane.xlu1 %2524 }
 0xfb7   :  { %v2649_v19 = vpop.permute.xlu1 %2648 }
 0xfb8   :  { %v2654_v58 = vsel %vm470_vm2, %v2649_v19, 0.0 }
 0xfbb   :  { %v2913_v62 = vpop.permute.xlu1 %2912 }
 0xfbc   :  { %2804 = vadd.xlane.f32.xlu1 %v2803_v30  ;;  %v2918_v60 = vsel %vm470_vm2, %v2913_v62, 0.0  ;;  %v2935_v62 = vsel %vm470_vm2, %v2929_v41, 0.0  ;;  %v3193_v30 = vpop.permute.xlu0 %3192 }
 0xfbd   :  { %2919 = vadd.xlane.f32.xlu0 %v2918_v60  ;;  %v3199_v60 = vsel %vm470_vm2, %v3193_v30, 0.0 }
 0xfbf   :  { %v3177_v50 = vpop.permute.xlu1 %3176 }
 0xfc0   :  { %3068 = vadd.xlane.f32.xlu1 %v3067_v26  ;;  %v3182_v22 = vsel %vm470_vm2, %v3177_v50, 0.0  ;;  %v3328_v26 = vsel %vm470_vm2, %v3326_v32, 0.0 }
 0xfc1   :  { %3183 = vadd.xlane.f32.xlu0 %v3182_v22  ;;  %v3457_v22 = vpop.permute.xlu0 %3456 }
 0xfc2   :  { %v3463_v41 = vsel %vm470_vm2, %v3457_v22, 0.0  ;;  %v3323_v22 = vsel %vm470_vm2, %v6812_v44, 0.0 }
 0xfc3   :  { %v3441_v50 = vpop.permute.xlu1 %3440 }
 0xfc4   :  { %2627 = vadd.xlane.f32.xlu1 %v2626_v13  ;;  %v3446_v28 = vsel %vm470_vm2, %v3441_v50, 0.0  ;;  %v3185_v13 = vsel %vm470_vm2, %v3179_v21, 0.0 }
 0xfc5   :  { %2672 = vadd.xlane.f32.xlu0 %v2671_v48  ;;  %v2538_v23 = vpop.xlane.xlu0 %2537 }
 0xfc8   :  { %2891 = vadd.xlane.f32.xlu1 %v2890_v15 }
 0xfc9   :  { %2936 = vadd.xlane.f32.xlu0 %v2935_v62 }
 0xfcc   :  { %3155 = vadd.xlane.f32.xlu1 %v3154_v46  ;;  %v6983_v46 = vpop.xlane.xlu0 %2801 }
 0xfcd   :  { %3200 = vadd.xlane.f32.xlu0 %v3199_v60 }
 0xfd0   :  { %3419 = vadd.xlane.f32.xlu1 %v3418_v54  ;;  %v6986_v21 = vpop.xlane.xlu0 %3065  ;;  %v3435_v54 = vsel %vm470_vm2, %v6903_v31, 0.0 }
 0xfd1   :  { %3447 = vadd.xlane.f32.xlu0 %v3446_v28 }
 0xfd4   :  { %2908 = vadd.xlane.f32.xlu1 %v2907_v10  ;;  %v2631_v10 = vpop.xlane.xlu0 %2630 }
 0xfd5   :  { %3329 = vadd.xlane.f32.xlu0 %v3328_v26 }
 0xfd8   :  { %3172 = vadd.xlane.f32.xlu1 %v3171_v9 }
 0xfd9   :  { %3464 = vadd.xlane.f32.xlu0 %v3463_v41  ;;  %v2543_v41 = vsel %vm525_vm3, %v6844_v49, %v6924_v47  ;;  %v3331_v47 = vsel %vm470_vm2, %v6837_v56, 0.0 }
 0xfda   :  { %v2545_v31 = vsel %vm528_vm4, %v2543_v41, %v6946_v52 }
 0xfdc   :  { %2922 = vadd.xlane.f32.xlu1 %v2921_v18 }
 0xfe0   :  { %3186 = vadd.xlane.f32.xlu1 %v3185_v13  ;;  %v3449_v13 = vsel %vm470_vm2, %v6944_v61, 0.0 }
 0xfe4   :  { %2655 = vadd.xlane.f32.xlu1 %v2654_v58 }
 0xff4   :  { %v2797_v48 = vpop.xlane.xlu1 %2796 }
 0xff8   :  { %v3061_v32 = vpop.xlane.xlu1 %3060 }
 0xffc   :  { %v6977_v15 = vpop.xlane.xlu1 %2793 }
0x1000   :  { %v6979_v62 = vpop.xlane.xlu1 %3057 }
0x1004   :  { %v6981_v30 = vpop.xlane.xlu1 %3321 }
0x1008   :  { %v2541_v60 = vpop.xlane.xlu1 %2540 }
0x1009   :  { %v7003_v44 = vsel %vm531_vm5, %v2545_v31, %v2541_v60 }
0x100a   :  { %v2551_v61 = vsel %vm534_vm6, %v7003_v44, -inf }
0x100c   :  { %v2663_v0 = vpop.permute.xlu1 %2662 }
0x100d   :  { %v2668_v50 = vsel %vm470_vm2, %v2663_v0, 0.0  ;;  %v2895_v0 = vpop.xlane.xlu0 %2894 }
0x100e   :  { %2669 = vadd.xlane.f32.xlu1 %v2668_v50  ;;  %v2542_v50 = vsel %vm525_vm3, %v6887_v16, %v6918_v4 }
0x100f   :  { %v2544_v49 = vsel %vm528_vm4, %v2542_v50, %v6948_v5 }
0x1010   :  { %v2927_v19 = vpop.permute.xlu1 %2926  ;;  %v7015_v52 = vsel %vm531_vm5, %v2544_v49, %v2538_v23  ;;  %v2807_v23 = vsel %vm525_vm3, %v6876_v6, %v6905_v3 }
0x1011   :  { %v2932_v28 = vsel %vm470_vm2, %v2927_v19, 0.0  ;;  %v3159_v60 = vpop.xlane.xlu0 %3158  ;;  %v2548_v19 = vsel %vm534_vm6, %v7015_v52, -inf }
0x1012   :  { %3436 = vadd.xlane.f32.xlu1 %v3435_v54  ;;  %2933 = vadd.xlane.f32.xlu0 %v2932_v28 }
0x1014   :  { %v3191_v26 = vpop.permute.xlu1 %3190 }
0x1015   :  { %v3196_v9 = vsel %vm470_vm2, %v3191_v26, 0.0  ;;  %v3423_v16 = vpop.xlane.xlu0 %3422 }
0x1016   :  { %3324 = vadd.xlane.f32.xlu1 %v3323_v22  ;;  %3197 = vadd.xlane.f32.xlu0 %v3196_v9  ;;  %v2809_v22 = vsel %vm528_vm4, %v2807_v23, %v2797_v48 }
0x1018   :  { %v3455_v18 = vpop.permute.xlu1 %3454 }
0x1019   :  { %v3460_v58 = vsel %vm470_vm2, %v3455_v18, 0.0  ;;  %v2645_v4 = vpop.xlane.xlu0 %2644 }
0x101a   :  { %3450 = vadd.xlane.f32.xlu1 %v3449_v13  ;;  %3461 = vadd.xlane.f32.xlu0 %v3460_v58  ;;  %v3071_v13 = vsel %vm525_vm3, %v6880_v12, %v6911_v11  ;;  %v2675_v49 = vsel %vm525_vm3, %v2631_v10, %v2645_v4 }
0x101b   :  { %v3073_v58 = vsel %vm528_vm4, %v3071_v13, %v3061_v32 }
0x101d   :  { %v7019_v54 = vpop.xlane.xlu0 %2641 }
0x101e   :  { %3332 = vadd.xlane.f32.xlu1 %v3331_v47  ;;  %2552 = vmax.xlane.f32.xlu0 %v2551_v61 }
0x1021   :  { %v2906_v5 = vpop.xlane.xlu0 %2905 }
0x1022   :  { %2549 = vmax.xlane.f32.xlu0 %v2548_v19 }
0x1025   :  { %v7021_v28 = vpop.xlane.xlu0 %3169 }
0x1029   :  { %v7023_v56 = vpop.xlane.xlu0 %3433 }
0x102d   :  { %v2659_v26 = vpop.xlane.xlu0 %2658 }
0x102e   :  { %v2677_v61 = vsel %vm528_vm4, %v2675_v49, %v2659_v26 }
0x1049   :  { %v2805_v9 = vpop.xlane.xlu1 %2804 }
0x104a   :  { %v7030_v41 = vsel %vm531_vm5, %v2809_v22, %v2805_v9  ;;  %v2920_v18 = vpop.xlane.xlu0 %2919 }
0x104b   :  { %v2815_v31 = vsel %vm534_vm6, %v7030_v41, -inf }
0x104c   :  { %2816 = vmax.xlane.f32.xlu1 %v2815_v31 }
0x104d   :  { %v3069_v50 = vpop.xlane.xlu1 %3068 }
0x104e   :  { %v7039_v6 = vsel %vm531_vm5, %v3073_v58, %v3069_v50  ;;  %v3184_v3 = vpop.xlane.xlu0 %3183 }
0x104f   :  { %v3079_v48 = vsel %vm534_vm6, %v7039_v6, -inf }
0x1050   :  { %3080 = vmax.xlane.f32.xlu1 %v3079_v48 }
0x1051   :  { %v7044_v47 = vpop.xlane.xlu1 %2627 }
0x1052   :  { %v2673_v19 = vpop.xlane.xlu0 %2672 }
0x1053   :  { %v7048_v12 = vsel %vm531_vm5, %v2677_v61, %v2673_v19 }
0x1054   :  { %v2683_v11 = vsel %vm534_vm6, %v7048_v12, -inf }
0x1055   :  { %v2892_v32 = vpop.xlane.xlu1 %2891  ;;  %2684 = vmax.xlane.f32.xlu0 %v2683_v11 }
0x1056   :  { %v2937_v13 = vpop.xlane.xlu0 %2936 }
0x1059   :  { %v3156_v23 = vpop.xlane.xlu1 %3155 }
0x105a   :  { %v3201_v61 = vpop.xlane.xlu0 %3200 }
0x105d   :  { %v3420_v22 = vpop.xlane.xlu1 %3419 }
0x1061   :  { %v2909_v9 = vpop.xlane.xlu1 %2908 }
0x1062   :  { %v2939_v10 = vsel %vm525_vm3, %v2895_v0, %v2909_v9  ;;  %v3448_v9 = vpop.xlane.xlu0 %3447 }
0x1065   :  { %v3173_v31 = vpop.xlane.xlu1 %3172 }
0x1066   :  { %v3203_v48 = vsel %vm525_vm3, %v3159_v60, %v3173_v31 }
0x1069   :  { %v2923_v4 = vpop.xlane.xlu1 %2922 }
0x106a   :  { %v2941_v58 = vsel %vm528_vm4, %v2939_v10, %v2923_v4 }
0x106b   :  { %v7055_v26 = vsel %vm531_vm5, %v2941_v58, %v2937_v13  ;;  %v3330_v13 = vpop.xlane.xlu0 %3329 }
0x106c   :  { %v2947_v50 = vsel %vm534_vm6, %v7055_v26, -inf }
0x106d   :  { %v3187_v49 = vpop.xlane.xlu1 %3186  ;;  %2948 = vmax.xlane.f32.xlu0 %v2947_v50  ;;  %v2938_v50 = vsel %vm525_vm3, %v2892_v32, %v2906_v5  ;;  %v3202_v5 = vsel %vm525_vm3, %v3156_v23, %v7021_v28 }
0x106e   :  { %v3205_v19 = vsel %vm528_vm4, %v3203_v48, %v3187_v49  ;;  %v2940_v2 = vsel %vm528_vm4, %v2938_v50, %v2920_v18 }
0x106f   :  { %v7062_v11 = vsel %vm531_vm5, %v3205_v19, %v3201_v61  ;;  %v3465_v4 = vpop.xlane.xlu0 %3464 }
0x1070   :  { %v3211_v0 = vsel %vm534_vm6, %v7062_v11, -inf }
0x1071   :  { %3212 = vmax.xlane.f32.xlu0 %v3211_v0  ;;  %v2656_v10 = vpop.xlane.xlu1 %2655  ;;  %v3335_v0 = vsel %vm525_vm3, %v6884_v8, %v6914_v59 }
0x109b   :  { %v2670_v58 = vpop.xlane.xlu1 %2669 }
0x109f   :  { %v3437_v55 = vpop.xlane.xlu1 %3436  ;;  %v2934_v34 = vpop.xlane.xlu0 %2933 }
0x10a0   :  { %v3467_v48 = vsel %vm525_vm3, %v3423_v16, %v3437_v55  ;;  %v2808_v16 = vsel %vm528_vm4, %v2806_v45, %v6977_v15  ;;  %v7086_v32 = vsel %vm531_vm5, %v2940_v2, %v2934_v34  ;;  %v3070_v45 = vsel %vm525_vm3, %v6896_v53, %v6927_v29 }
0x10a1   :  { %v3204_v34 = vsel %vm528_vm4, %v3202_v5, %v3184_v3  ;;  %v2944_v28 = vsel %vm534_vm6, %v7086_v32, -inf  ;;  %v7103_v18 = vsel %vm531_vm5, %v2808_v16, %v6983_v46  ;;  %v3466_v53 = vsel %vm525_vm3, %v3420_v22, %v7023_v56 }
0x10a2   :  { %v2812_v3 = vsel %vm534_vm6, %v7103_v18, -inf  ;;  %v3468_v23 = vsel %vm528_vm4, %v3466_v53, %v3448_v9  ;;  %v3334_v56 = vsel %vm525_vm3, %v6898_v33, %v6930_v57 }
0x10a3   :  { %v3325_v60 = vpop.xlane.xlu1 %3324  ;;  %v3198_v31 = vpop.xlane.xlu0 %3197  ;;  %v3336_v22 = vsel %vm528_vm4, %v3334_v56, %v6981_v30 }
0x10a4   :  { %v3337_v8 = vsel %vm528_vm4, %v3335_v0, %v3325_v60  ;;  %v7110_v29 = vsel %vm531_vm5, %v3204_v34, %v3198_v31  ;;  %v3338_v31 = vsel %vm531_vm5, %v3336_v22, %v3330_v13 }
0x10a5   :  { %v3208_v46 = vsel %vm534_vm6, %v7110_v29, -inf  ;;  %v3340_v33 = vsel %vm534_vm6, %v3338_v31, -inf }
0x10a7   :  { %v3451_v49 = vpop.xlane.xlu1 %3450  ;;  %v3462_v61 = vpop.xlane.xlu0 %3461 }
0x10a8   :  { %v3469_v19 = vsel %vm528_vm4, %v3467_v48, %v3451_v49  ;;  %v7120_v60 = vsel %vm531_vm5, %v3468_v23, %v3462_v61 }
0x10a9   :  { %v7070_v17 = vsel %vm531_vm5, %v3469_v19, %v3465_v4  ;;  %v3472_v50 = vsel %vm534_vm6, %v7120_v60, -inf }
0x10aa   :  { %v3475_v55 = vsel %vm534_vm6, %v7070_v17, -inf }
0x10ab   :  { %v3333_v59 = vpop.xlane.xlu1 %3332  ;;  %3476 = vmax.xlane.f32.xlu0 %v3475_v55  ;;  %v2553_v4 = vpop.xlane.xlu0 %2552 }
0x10ac   :  { %v7090_v36 = vsel %vm531_vm5, %v3337_v8, %v3333_v59  ;;  %v2555_v7 = vsub.f32 %v7003_v44, %v2553_v4  ;;  %v3072_v44 = vsel %vm528_vm4, %v3070_v45, %v6979_v62 }
0x10ad   :  { %v3343_v15 = vsel %vm534_vm6, %v7090_v36, -inf  ;;  %v3074_v62 = vsel %vm531_vm5, %v3072_v44, %v6986_v21  ;;  %v2674_v21 = vsel %vm525_vm3, %v7044_v47, %v7019_v54 }
0x10ae   :  { %v2558_v2 = vmul.f32 1.442695, %v2555_v7  ;;  %3344 = vmax.xlane.f32.xlu1 %v3343_v15  ;;  %v3076_v9 = vsel %vm534_vm6, %v3074_v62, -inf  ;;  %v2676_v48 = vsel %vm528_vm4, %v2674_v21, %v2656_v10 }
0x10af   :  { %2945 = vmax.xlane.f32.xlu0 %v2944_v28  ;;  %v7139_v30 = vsel %vm531_vm5, %v2676_v48, %v2670_v58  ;;  %v2550_v61 = vpop.xlane.xlu0 %2549 }
0x10b0   :  { %5191 = vpow2.f32 %v2558_v2  ;;  %v2680_v49 = vsel %vm534_vm6, %v7139_v30, -inf  ;;  %v2554_v54 = vsub.f32 %v7015_v52, %v2550_v61 }
0x10b2   :  { %2813 = vmax.xlane.f32.xlu1 %v2812_v3  ;;  %v2556_v19 = vmul.f32 1.442695, %v2554_v54 }
0x10b3   :  { %3209 = vmax.xlane.f32.xlu0 %v3208_v46 }
0x10b6   :  { %3077 = vmax.xlane.f32.xlu1 %v3076_v9 }
0x10b7   :  { %3473 = vmax.xlane.f32.xlu0 %v3472_v50 }
0x10ba   :  { %v7136_v57 = vpop.eup %5191  ;;  %3341 = vmax.xlane.f32.xlu1 %v3340_v33 }
0x10bb   :  { %v2563_v13 = vsel %vm534_vm6, %v7136_v57, 0.0 }
0x10bc   :  { %2564 = vadd.xlane.f32.xlu0 %v2563_v13 }
0x10be   :  { %2681 = vmax.xlane.f32.xlu1 %v2680_v49 }
0x10d9   :  { %v2817_v47 = vpop.xlane.xlu1 %2816 }
0x10da   :  { %v2819_v10 = vsub.f32 %v7030_v41, %v2817_v47 }
0x10dc   :  { %v2822_v0 = vmul.f32 1.442695, %v2819_v10 }
0x10dd   :  { %v3081_v55 = vpop.xlane.xlu1 %3080 }
0x10de   :  { %5193 = vpow2.f32 %v2822_v0  ;;  %v3083_v58 = vsub.f32 %v7039_v6, %v3081_v55 }
0x10df   :  { %5195 = vpow2.f32 %v2556_v19 }
0x10e0   :  { %v3086_v16 = vmul.f32 1.442695, %v3083_v58 }
0x10e2   :  { %5197 = vpow2.f32 %v3086_v16  ;;  %v2685_v6 = vpop.xlane.xlu0 %2684 }
0x10e3   :  { %v2687_v50 = vsub.f32 %v7048_v12, %v2685_v6 }
0x10e5   :  { %v2690_v49 = vmul.f32 1.442695, %v2687_v50 }
0x10e8   :  { %v7148_v5 = vpop.eup %5193 }
0x10e9   :  { %v2827_v8 = vsel %vm534_vm6, %v7148_v5, 0.0  ;;  %v7152_v59 = vpop.eup %5195 }
0x10ea   :  { %2828 = vadd.xlane.f32.xlu1 %v2827_v8  ;;  %v2560_v4 = vsel %vm534_vm6, %v7152_v59, 0.0 }
0x10ec   :  { %v7154_v52 = vpop.eup %5197 }
0x10ed   :  { %v3091_v41 = vsel %vm534_vm6, %v7154_v52, 0.0 }
0x10ee   :  { %3092 = vadd.xlane.f32.xlu0 %v3091_v41  ;;  %2561 = vadd.xlane.f32.xlu1 %v2560_v4 }
0x10fa   :  { %v2949_v7 = vpop.xlane.xlu0 %2948 }
0x10fb   :  { %v2951_v61 = vsub.f32 %v7055_v26, %v2949_v7 }
0x10fd   :  { %v2954_v12 = vmul.f32 1.442695, %v2951_v61 }
0x10fe   :  { %v3213_v45 = vpop.xlane.xlu0 %3212 }
0x10ff   :  { %v3215_v47 = vsub.f32 %v7062_v11, %v3213_v45 }
0x1101   :  { %v3218_v26 = vmul.f32 1.442695, %v3215_v47  ;;  %v7797_v47 = vmov 3  }
0x1138   :  { %v3477_v15 = vpop.xlane.xlu0 %3476 }
0x1139   :  { %v3479_v19 = vsub.f32 %v7070_v17, %v3477_v15 }
0x113b   :  { %v3345_v34 = vpop.xlane.xlu1 %3344  ;;  %v3482_v8 = vmul.f32 1.442695, %v3479_v19 }
0x113c   :  { %v3347_v2 = vsub.f32 %v7090_v36, %v3345_v34  ;;  %v2946_v28 = vpop.xlane.xlu0 %2945 }
0x113d   :  { %v2950_v6 = vsub.f32 %v7086_v32, %v2946_v28  ;;  %v7795_v32 = vmov 0  }
0x113e   :  { %v3350_v44 = vmul.f32 1.442695, %v3347_v2 }
0x113f   :  { %v2814_v53 = vpop.xlane.xlu1 %2813 }
0x1140   :  { %5199 = vpow2.f32 %v3350_v44  ;;  %v2818_v3 = vsub.f32 %v7103_v18, %v2814_v53  ;;  %v3210_v23 = vpop.xlane.xlu0 %3209 }
0x1141   :  { %v3214_v34 = vsub.f32 %v7110_v29, %v3210_v23 }
0x1142   :  { %v2820_v46 = vmul.f32 1.442695, %v2818_v3 }
0x1143   :  { %v3078_v56 = vpop.xlane.xlu1 %3077  ;;  %v3216_v28 = vmul.f32 1.442695, %v3214_v34 }
0x1144   :  { %5201 = vpow2.f32 %v2820_v46  ;;  %v3082_v22 = vsub.f32 %v3074_v62, %v3078_v56  ;;  %v3474_v9 = vpop.xlane.xlu0 %3473 }
0x1145   :  { %v3478_v53 = vsub.f32 %v7120_v60, %v3474_v9 }
0x1146   :  { %v3084_v21 = vmul.f32 1.442695, %v3082_v22 }
0x1147   :  { %v3342_v48 = vpop.xlane.xlu1 %3341  ;;  %v3480_v29 = vmul.f32 1.442695, %v3478_v53 }
0x1148   :  { %5203 = vpow2.f32 %v3084_v21  ;;  %v3346_v33 = vsub.f32 %v3338_v31, %v3342_v48 }
0x1149   :  { %v2565_v13 = vpop.xlane.xlu0 %2564 }
0x114a   :  { %v7163_v36 = vpop.eup %5199  ;;  %v3348_v54 = vmul.f32 1.442695, %v3346_v33  ;;  %5205 = vrcp.f32 %v2565_v13 }
0x114b   :  { %v3355_v18 = vsel %vm534_vm6, %v7163_v36, 0.0  ;;  %v2682_v0 = vpop.xlane.xlu1 %2681 }
0x114c   :  { %5207 = vpow2.f32 %v3348_v54  ;;  %3356 = vadd.xlane.f32.xlu0 %v3355_v18  ;;  %v2686_v41 = vsub.f32 %v7139_v30, %v2682_v0  ;;  %v2952_v30 = vmul.f32 1.442695, %v2950_v6  ;;  %v7796_v18 = vmov 1  }
0x114d   :  { %5209 = vpow2.f32 %v2690_v49 }
0x114e   :  { %v7168_v62 = vpop.eup %5201  ;;  %5211 = vpow2.f32 %v2954_v12  ;;  %v2688_v7 = vmul.f32 1.442695, %v2686_v41 }
0x114f   :  { %v2824_v31 = vsel %vm534_vm6, %v7168_v62, 0.0  ;;  %5213 = vpow2.f32 %v3218_v26 }
0x1150   :  { %2825 = vadd.xlane.f32.xlu0 %v2824_v31  ;;  %5215 = vpow2.f32 %v3482_v8 }
0x1151   :  { %5217 = vpow2.f32 %v2688_v7 }
0x1152   :  { %v7173_v10 = vpop.eup %5203  ;;  %5219 = vpow2.f32 %v2952_v30 }
0x1153   :  { %v3088_v55 = vsel %vm534_vm6, %v7173_v10, 0.0  ;;  %5221 = vpow2.f32 %v3216_v28 }
0x1154   :  { %v5206_v58 = vpop.eup %5205  ;;  %3089 = vadd.xlane.f32.xlu0 %v3088_v55  ;;  %5223 = vpow2.f32 %v3480_v29 }
0x1155   :  { %v7179_v16 = vmul.f32 %v5206_v58, %v7136_v57  ;;  %v7794_v57 = vmov 2  }
0x1156   :  { %v7181_v11 = vpop.eup %5207 }
0x1157   :  { %2587 = vperm.xlu1 %5005, %v7179_v16   ;;  %v3352_v17 = vsel %vm534_vm6, %v7181_v11, 0.0  ;;  %v7187_v4 = vpop.eup %5209 }
0x1158   :  { %3353 = vadd.xlane.f32.xlu0 %v3352_v17  ;;  %v2695_v45 = vsel %vm534_vm6, %v7187_v4, 0.0  ;;  %v7193_v15 = vpop.eup %5211 }
0x1159   :  { %v2959_v2 = vsel %vm534_vm6, %v7193_v15, 0.0  ;;  %v7199_v44 = vpop.eup %5213 }
0x115a   :  { %v3223_v3 = vsel %vm534_vm6, %v7199_v44, 0.0  ;;  %v7205_v46 = vpop.eup %5215 }
0x115b   :  { %5006 = vset.pattern.permute.xlu1 %v7794_v57  ;;  %v3487_v23 = vsel %vm534_vm6, %v7205_v46, 0.0  ;;  %v7209_v56 = vpop.eup %5217 }
0x115c   :  { %2696 = vadd.xlane.f32.xlu0 %v2695_v45  ;;  %2599 = vperm.xlu1 %5006, %v7179_v16   ;;  %v2692_v22 = vsel %vm534_vm6, %v7209_v56, 0.0  ;;  %v7213_v50 = vpop.eup %5219 }
0x115d   :  { %v2956_v60 = vsel %vm534_vm6, %v7213_v50, 0.0  ;;  %v7217_v9 = vpop.eup %5221 }
0x115e   :  { %v3220_v21 = vsel %vm534_vm6, %v7217_v9, 0.0  ;;  %v7221_v48 = vpop.eup %5223 }
0x115f   :  { %v3484_v13 = vsel %vm534_vm6, %v7221_v48, 0.0 }
0x1160   :  { %2960 = vadd.xlane.f32.xlu0 %v2959_v2  ;;  %5008 = vset.pattern.permute.xlu1 %v7795_v32 }
0x1164   :  { %3224 = vadd.xlane.f32.xlu0 %v3223_v3 }
0x1168   :  { %3488 = vadd.xlane.f32.xlu0 %v3487_v23 }
0x116c   :  { %2693 = vadd.xlane.f32.xlu0 %v2692_v22 }
0x1170   :  { %2957 = vadd.xlane.f32.xlu0 %v2956_v60 }
0x1174   :  { %3221 = vadd.xlane.f32.xlu0 %v3220_v21 }
0x1177   :  { %v2829_v33 = vpop.xlane.xlu1 %2828 }
0x1178   :  { %5225 = vrcp.f32 %v2829_v33  ;;  %3485 = vadd.xlane.f32.xlu0 %v3484_v13 }
0x117b   :  { %v3093_v61 = vpop.xlane.xlu0 %3092  ;;  %v2562_v0 = vpop.xlane.xlu1 %2561 }
0x117c   :  { %5227 = vrcp.f32 %v3093_v61 }
0x1182   :  { %v5226_v49 = vpop.eup %5225 }
0x1183   :  { %v7226_v54 = vmul.f32 %v5226_v49, %v7148_v5 }
0x1185   :  { %2841 = vperm.xlu1 %5008, %v7226_v54  }
0x1186   :  { %v5228_v12 = vpop.eup %5227 }
0x1187   :  { %v7236_v31 = vmul.f32 %v5228_v12, %v7154_v52 }
0x1189   :  { %5009 = vset.pattern.permute.xlu1 %v7796_v18 }
0x118a   :  { %2851 = vperm.xlu1 %5009, %v7226_v54  }
0x118e   :  { %5010 = vset.pattern.permute.xlu1 %v7794_v57  ;;  %2577 = vperm.xlu0 %5004, %v7179_v16  }
0x118f   :  { %2863 = vperm.xlu1 %5010, %v7226_v54  }
0x1192   :  { %5007 = vset.pattern.permute.xlu0 %v7797_v47 }
0x1193   :  { %5011 = vset.pattern.permute.xlu1 %v7795_v32  ;;  %2611 = vperm.xlu0 %5007, %v7179_v16  }
0x1194   :  { %3105 = vperm.xlu1 %5011, %v7236_v31  }
0x1197   :  { %2875 = vperm.xlu0 %5007, %v7226_v54  }
0x1198   :  { %5013 = vset.pattern.permute.xlu1 %v7794_v57 }
0x1199   :  { %3127 = vperm.xlu1 %5013, %v7236_v31  }
0x119b   :  { %5012 = vset.pattern.permute.xlu0 %v7796_v18 }
0x119c   :  { %3115 = vperm.xlu0 %5012, %v7236_v31  }
0x119d   :  { %5014 = vset.pattern.permute.xlu1 %v7797_v47 }
0x119e   :  { %3139 = vperm.xlu1 %5014, %v7236_v31  }
0x11a2   :  { %5015 = vset.pattern.permute.xlu1 %v7795_v32 }
0x11d9   :  { %v3357_v5 = vpop.xlane.xlu0 %3356 }
0x11da   :  { %5229 = vrcp.f32 %v3357_v5 }
0x11dd   :  { %v2826_v52 = vpop.xlane.xlu0 %2825 }
0x11de   :  { %5231 = vrcp.f32 %v2826_v52 }
0x11e1   :  { %v3090_v26 = vpop.xlane.xlu0 %3089 }
0x11e2   :  { %5233 = vrcp.f32 %v3090_v26 }
0x11e3   :  { %5235 = vrcp.f32 %v2562_v0 }
0x11e4   :  { %v5230_v19 = vpop.eup %5229 }
0x11e5   :  { %v3354_v55 = vpop.xlane.xlu0 %3353  ;;  %v7250_v58 = vmul.f32 %v5230_v19, %v7163_v36 }
0x11e6   :  { %5237 = vrcp.f32 %v3354_v55 }
0x11e7   :  { %3369 = vperm.xlu1 %5015, %v7250_v58  }
0x11e8   :  { %v5232_v8 = vpop.eup %5231 }
0x11e9   :  { %v7254_v41 = vmul.f32 %v5232_v8, %v7168_v62  ;;  %v2697_v17 = vpop.xlane.xlu0 %2696 }
0x11ea   :  { %5239 = vrcp.f32 %v2697_v17 }
0x11eb   :  { %5016 = vset.pattern.permute.xlu1 %v7796_v18  ;;  %2847 = vperm.xlu0 %5012, %v7254_v41  }
0x11ec   :  { %3379 = vperm.xlu1 %5016, %v7250_v58   ;;  %v5234_v6 = vpop.eup %5233 }
0x11ed   :  { %v2961_v36 = vpop.xlane.xlu0 %2960  ;;  %v5236_v7 = vpop.eup %5235  ;;  %v7264_v62 = vmul.f32 %v5234_v6, %v7173_v10 }
0x11ee   :  { %v7268_v45 = vmul.f32 %v5236_v7, %v7152_v59  ;;  %5241 = vrcp.f32 %v2961_v36 }
0x11ef   :  { %5024 = vset.pattern.permute.xlu0 %v7797_v47 }
0x11f0   :  { %5017 = vset.pattern.permute.xlu1 %v7794_v57  ;;  %2871 = vperm.xlu0 %5024, %v7254_v41   ;;  %v5238_v34 = vpop.eup %5237 }
0x11f1   :  { %3391 = vperm.xlu1 %5017, %v7250_v58   ;;  %v3225_v30 = vpop.xlane.xlu0 %3224  ;;  %v7278_v59 = vmul.f32 %v5238_v34, %v7181_v11 }
0x11f2   :  { %5243 = vrcp.f32 %v3225_v30 }
0x11f4   :  { %5026 = vset.pattern.permute.xlu0 %v7796_v18  ;;  %v5240_v2 = vpop.eup %5239 }
0x11f5   :  { %5018 = vset.pattern.permute.xlu1 %v7795_v32  ;;  %3111 = vperm.xlu0 %5026, %v7264_v62   ;;  %v3489_v10 = vpop.xlane.xlu0 %3488  ;;  %v7285_v28 = vmul.f32 %v5240_v2, %v7187_v4 }
0x11f6   :  { %2572 = vperm.xlu1 %5018, %v7268_v45   ;;  %5245 = vrcp.f32 %v3489_v10 }
0x11f8   :  { %v5242_v3 = vpop.eup %5241 }
0x11f9   :  { %5027 = vset.pattern.permute.xlu0 %v7794_v57  ;;  %v7287_v53 = vpop.xlane.xlu0 %2693  ;;  %v7293_v11 = vmul.f32 %v5242_v3, %v7193_v15 }
0x11fa   :  { %5019 = vset.pattern.permute.xlu1 %v7796_v18  ;;  %3123 = vperm.xlu0 %5027, %v7264_v62  }
0x11fb   :  { %2583 = vperm.xlu1 %5019, %v7268_v45  }
0x11fc   :  { %v5244_v29 = vpop.eup %5243 }
0x11fd   :  { %v2958_v23 = vpop.xlane.xlu0 %2957  ;;  %v7300_v4 = vmul.f32 %v5244_v29, %v7199_v44 }
0x11fe   :  { %5032 = vset.pattern.permute.xlu0 %v7797_v47  ;;  %5247 = vrcp.f32 %v2958_v23 }
0x11ff   :  { %5020 = vset.pattern.permute.xlu1 %v7794_v57  ;;  %3399 = vperm.xlu0 %5032, %v7278_v59  }
0x1200   :  { %2595 = vperm.xlu1 %5020, %v7268_v45   ;;  %v5246_v22 = vpop.eup %5245 }
0x1201   :  { %v3222_v15 = vpop.xlane.xlu0 %3221  ;;  %v7311_v60 = vmul.f32 %v5246_v22, %v7205_v46 }
0x1202   :  { %5249 = vrcp.f32 %v3222_v15 }
0x1203   :  { %2743 = vperm.xlu0 %5032, %v7285_v28  }
0x1204   :  { %5021 = vset.pattern.permute.xlu1 %v7797_v47 }
0x1205   :  { %2607 = vperm.xlu1 %5021, %v7268_v45   ;;  %v3486_v44 = vpop.xlane.xlu0 %3485 }
0x1206   :  { %5251 = vrcp.f32 %v3486_v44 }
0x1207   :  { %5036 = vset.pattern.permute.xlu0 %v7795_v32  ;;  %5253 = vrcp.f32 %v7287_v53 }
0x1208   :  { %2973 = vperm.xlu0 %5036, %v7293_v11   ;;  %v5248_v21 = vpop.eup %5247 }
0x1209   :  { %5022 = vset.pattern.permute.xlu1 %v7795_v32  ;;  %v7318_v33 = vmul.f32 %v5248_v21, %v7213_v50 }
0x120a   :  { %2836 = vperm.xlu1 %5022, %v7254_v41  }
0x120c   :  { %5042 = vset.pattern.permute.xlu0 %v7794_v57  ;;  %v5250_v13 = vpop.eup %5249 }
0x120d   :  { %3259 = vperm.xlu0 %5042, %v7300_v4   ;;  %v7325_v46 = vmul.f32 %v5250_v13, %v7217_v9  ;;  %v2588_v9 = vpop.permute.xlu1 %2587  ;;  %v2578_v7 = vpop.permute.xlu0 %2577 }
0x120e   :  { %5023 = vset.pattern.permute.xlu1 %v7794_v57  ;;  %v2581_v29 = vmul.f32 %v2578_v7, %v6699_v35  ;;  %v2591_v23 = vmul.f32 %v2588_v9, %v6707_v42 }
0x120f   :  { %2859 = vperm.xlu1 %5023, %v7254_v41  }
0x1210   :  { %v5252_v49 = vpop.eup %5251  ;;  %v2593_v15 = vadd.f32 %v2591_v23, %v2581_v29 }
0x1211   :  { %5043 = vset.pattern.permute.xlu0 %v7797_v47  ;;  %v7332_v50 = vmul.f32 %v5252_v49, %v7221_v48  ;;  %v2600_v48 = vpop.permute.xlu1 %2599  ;;  %v5254_v26 = vpop.eup %5253 }
0x1212   :  { %3271 = vperm.xlu0 %5043, %v7300_v4   ;;  %v7365_v19 = vmul.f32 %v5254_v26, %v7209_v56  ;;  %v2612_v34 = vpop.permute.xlu0 %2611  ;;  %v2603_v21 = vmul.f32 %v2600_v48, %v6715_v25 }
0x1213   :  { %5025 = vset.pattern.permute.xlu1 %v7795_v32  ;;  %v2615_v49 = vmul.f32 %v2612_v34, %v6723_v63 }
0x1214   :  { %3100 = vperm.xlu1 %5025, %v7264_v62   ;;  %v2605_v13 = vadd.f32 %v2603_v21, %v2593_v15 }
0x1215   :  { %v7352_v61 = vpop.permute.xlu1 %2841 }
0x1216   :  { %5044 = vset.pattern.permute.xlu0 %v7795_v32  ;;  %v2876_v53 = vpop.permute.xlu0 %2875  ;;  %v2845_v9 = vmul.f32 %v7352_v61, %v6699_v35  ;;  %v2617_v23 = vadd.f32 %v2615_v49, %v2605_v13 }
0x1217   :  { %3501 = vperm.xlu0 %5044, %v7311_v60  }
0x1218   :  { %5028 = vset.pattern.permute.xlu1 %v7797_v47 }
0x1219   :  { %3135 = vperm.xlu1 %5028, %v7264_v62   ;;  %v2852_v12 = vpop.permute.xlu1 %2851 }
0x121b   :  { %5052 = vset.pattern.permute.xlu0 %v7794_v57 }
0x121c   :  { %2991 = vperm.xlu0 %5052, %v7318_v33  }
0x121d   :  { %5029 = vset.pattern.permute.xlu1 %v7795_v32  ;;  %v2864_v5 = vpop.permute.xlu1 %2863 }
0x121e   :  { %3364 = vperm.xlu1 %5029, %v7278_v59   ;;  %v2867_v7 = vmul.f32 %v2864_v5, %v6715_v25 }
0x1220   :  { %5057 = vset.pattern.permute.xlu0 %v7797_v47 }
0x1221   :  { %3267 = vperm.xlu0 %5057, %v7325_v46   ;;  %v3106_v52 = vpop.permute.xlu1 %3105 }
0x1222   :  { %5030 = vset.pattern.permute.xlu1 %v7796_v18  ;;  %v3109_v29 = vmul.f32 %v3106_v52, %v6699_v35 }
0x1223   :  { %3375 = vperm.xlu1 %5030, %v7278_v59  }
0x1225   :  { %5058 = vset.pattern.permute.xlu0 %v7795_v32  ;;  %v3128_v0 = vpop.permute.xlu1 %3127 }
0x1226   :  { %3496 = vperm.xlu0 %5058, %v7332_v50   ;;  %v3131_v34 = vmul.f32 %v3128_v0, %v6715_v25 }
0x1227   :  { %5031 = vset.pattern.permute.xlu1 %v7794_v57 }
0x1228   :  { %3387 = vperm.xlu1 %5031, %v7278_v59  }
0x1229   :  { %v7369_v55 = vpop.permute.xlu1 %3139 }
0x122a   :  { %5060 = vset.pattern.permute.xlu0 %v7794_v57 }
0x122b   :  { %3519 = vperm.xlu0 %5060, %v7332_v50  }
0x122c   :  { %5033 = vset.pattern.permute.xlu1 %v7795_v32 }
0x122d   :  { %2709 = vperm.xlu1 %5033, %v7285_v28  }
0x122f   :  { %5062 = vset.pattern.permute.xlu0 %v7797_v47 }
0x1230   :  { %3535 = vperm.xlu0 %5062, %v7311_v60  }
0x1231   :  { %5034 = vset.pattern.permute.xlu1 %v7796_v18 }
0x1232   :  { %2719 = vperm.xlu1 %5034, %v7285_v28  }
0x1236   :  { %5035 = vset.pattern.permute.xlu1 %v7794_v57 }
0x1237   :  { %2731 = vperm.xlu1 %5035, %v7285_v28  }
0x123b   :  { %5037 = vset.pattern.permute.xlu1 %v7796_v18 }
0x123c   :  { %2983 = vperm.xlu1 %5037, %v7293_v11  }
0x1240   :  { %5038 = vset.pattern.permute.xlu1 %v7794_v57 }
0x1241   :  { %2995 = vperm.xlu1 %5038, %v7293_v11  }
0x1245   :  { %5039 = vset.pattern.permute.xlu1 %v7797_v47 }
0x1246   :  { %3007 = vperm.xlu1 %5039, %v7293_v11  }
0x124a   :  { %5040 = vset.pattern.permute.xlu1 %v7795_v32 }
0x124b   :  { %3237 = vperm.xlu1 %5040, %v7300_v4  }
0x124f   :  { %5041 = vset.pattern.permute.xlu1 %v7796_v18 }
0x1250   :  { %3247 = vperm.xlu1 %5041, %v7300_v4  }
0x1254   :  { %3511 = vperm.xlu1 %5041, %v7311_v60  }
0x1258   :  { %5045 = vset.pattern.permute.xlu1 %v7794_v57 }
0x1259   :  { %3523 = vperm.xlu1 %5045, %v7311_v60  }
0x125d   :  { %5046 = vset.pattern.permute.xlu1 %v7795_v32 }
0x125e   :  { %2704 = vperm.xlu1 %5046, %v7365_v19  }
0x1262   :  { %5047 = vset.pattern.permute.xlu1 %v7796_v18 }
0x1263   :  { %2715 = vperm.xlu1 %5047, %v7365_v19  }
0x1266   :  { %v7373_v8 = vpop.permute.xlu1 %3369 }
0x1267   :  { %5048 = vset.pattern.permute.xlu1 %v7794_v57 }
0x1268   :  { %2727 = vperm.xlu1 %5048, %v7365_v19  }
0x126b   :  { %v7377_v17 = vpop.permute.xlu1 %3379 }
0x126c   :  { %5049 = vset.pattern.permute.xlu1 %v7797_v47 }
0x126d   :  { %2739 = vperm.xlu1 %5049, %v7365_v19  }
0x1270   :  { %v7381_v56 = vpop.permute.xlu1 %3391 }
0x1271   :  { %5050 = vset.pattern.permute.xlu1 %v7795_v32 }
0x1272   :  { %2968 = vperm.xlu1 %5050, %v7318_v33  }
0x1275   :  { %v2573_v6 = vpop.permute.xlu1 %2572 }
0x1276   :  { %5051 = vset.pattern.permute.xlu1 %v7796_v18  ;;  %v2580_v13 = vmul.f32 %v2573_v6, %v6701_v27 }
0x1277   :  { %2979 = vperm.xlu1 %5051, %v7318_v33  }
0x127a   :  { %v2584_v36 = vpop.permute.xlu1 %2583 }
0x127b   :  { %5053 = vset.pattern.permute.xlu1 %v7797_v47  ;;  %v2590_v5 = vmul.f32 %v2584_v36, %v6709_v51 }
0x127c   :  { %3003 = vperm.xlu1 %5053, %v7318_v33  }
0x127f   :  { %v2596_v30 = vpop.permute.xlu1 %2595 }
0x1280   :  { %5054 = vset.pattern.permute.xlu1 %v7795_v32  ;;  %v3116_v32 = vpop.permute.xlu0 %3115 }
0x1281   :  { %3232 = vperm.xlu1 %5054, %v7325_v46  }
0x1284   :  { %v2608_v10 = vpop.permute.xlu1 %2607  ;;  %v2848_v44 = vpop.permute.xlu0 %2847 }
0x1285   :  { %5055 = vset.pattern.permute.xlu1 %v7796_v18  ;;  %v2854_v0 = vmul.f32 %v2848_v44, %v6709_v51  ;;  %v2614_v36 = vmul.f32 %v2608_v10, %v6725_v24 }
0x1286   :  { %3243 = vperm.xlu1 %5055, %v7325_v46  }
0x1289   :  { %v2837_v2 = vpop.permute.xlu1 %2836 }
0x128a   :  { %5056 = vset.pattern.permute.xlu1 %v7794_v57  ;;  %v2855_v57 = vmul.f32 %v2852_v12, %v6707_v42  ;;  %v2879_v12 = vmul.f32 %v2876_v53, %v6723_v63  ;;  %v2844_v52 = vmul.f32 %v2837_v2, %v6701_v27  ;;  %v2602_v53 = vmul.f32 %v2596_v30, %v6717_v14 }
0x128b   :  { %3255 = vperm.xlu1 %5056, %v7325_v46  }
0x128c   :  { %v2857_v48 = vadd.f32 %v2855_v57, %v2845_v9  ;;  %v3143_v57 = vmul.f32 %v7369_v55, %v6723_v63 }
0x128e   :  { %v2860_v3 = vpop.permute.xlu1 %2859  ;;  %v2869_v21 = vadd.f32 %v2867_v7, %v2857_v48  ;;  %v2592_v7 = vadd.f32 %v2590_v5, %v2580_v13 }
0x128f   :  { %5059 = vset.pattern.permute.xlu1 %v7796_v18  ;;  %v3119_v18 = vmul.f32 %v3116_v32, %v6707_v42  ;;  %v2866_v49 = vmul.f32 %v2860_v3, %v6717_v14 }
0x1290   :  { %3507 = vperm.xlu1 %5059, %v7332_v50   ;;  %v2881_v38 = vadd.f32 %v2879_v12, %v2869_v21  ;;  %v2604_v48 = vadd.f32 %v2602_v53, %v2592_v7 }
0x1291   :  { %v3121_v15 = vadd.f32 %v3119_v18, %v3109_v29  ;;  %v2856_v29 = vadd.f32 %v2854_v0, %v2844_v52 }
0x1293   :  { %v3101_v22 = vpop.permute.xlu1 %3100  ;;  %v3133_v61 = vadd.f32 %v3131_v34, %v3121_v15  ;;  %v2868_v30 = vadd.f32 %v2866_v49, %v2856_v29 }
0x1294   :  { %5061 = vset.pattern.permute.xlu1 %v7797_v47  ;;  %v2872_v47 = vpop.permute.xlu0 %2871  ;;  %v3108_v2 = vmul.f32 %v3101_v22, %v6701_v27 }
0x1295   :  { %3531 = vperm.xlu1 %5061, %v7332_v50   ;;  %v3145_v9 = vadd.f32 %v3143_v57, %v3133_v61  ;;  %v2878_v3 = vmul.f32 %v2872_v47, %v6725_v24 }
0x1297   :  { %v2880_v10 = vadd.f32 %v2878_v3, %v2868_v30 }
0x1298   :  { %v3136_v26 = vpop.permute.xlu1 %3135  ;;  %v3112_v39 = vpop.permute.xlu0 %3111 }
0x1299   :  { %3403 = vperm.xlu1 %5061, %v7250_v58   ;;  %v3118_v55 = vmul.f32 %v3112_v39, %v6709_v51  ;;  %v3142_v39 = vmul.f32 %v3136_v26, %v6725_v24 }
0x129c   :  { %v3124_v6 = vpop.permute.xlu0 %3123 }
0x129d   :  { %v3365_v32 = vpop.permute.xlu1 %3364  ;;  %2756 = vrot.lane.b32.xlu1 %v2617_v23, %s5297_s23  ;;  %v3120_v23 = vadd.f32 %v3118_v55, %v3108_v2  ;;  %v3130_v12 = vmul.f32 %v3124_v6, %v6717_v14 }
0x129e   :  { %v3372_v21 = vmul.f32 %v3365_v32, %v6701_v27 }
0x129f   :  { %v3132_v22 = vadd.f32 %v3130_v12, %v3120_v23 }
0x12a0   :  { %v3400_v52 = vpop.permute.xlu0 %3399 }
0x12a1   :  { %3020 = vrot.lane.b32.xlu1 %v2881_v38, %s5297_s23  ;;  %v2616_v38 = vadd.f32 %v2614_v36, %v2604_v48  ;;  %v3144_v47 = vadd.f32 %v3142_v39, %v3132_v22  ;;  %v3406_v13 = vmul.f32 %v3400_v52, %v6725_v24  ;;  %v4452_v52 = vld [vmem:[%s7758_s4 + $0x38] sm:$0xff] }
0x12a2   :  { %v3376_v18 = vpop.permute.xlu1 %3375 }
0x12a3   :  { %v3382_v15 = vmul.f32 %v3376_v18, %v6709_v51 }
0x12a4   :  { %v2744_v32 = vpop.permute.xlu0 %2743 }
0x12a5   :  { %3284 = vrot.lane.b32.xlu1 %v3145_v9, %s5297_s23  ;;  %v3384_v5 = vadd.f32 %v3382_v15, %v3372_v21  ;;  %v2747_v36 = vmul.f32 %v2744_v32, %v6723_v63  ;;  %v4449_v21 = vld [vmem:[%s7758_s4 + $0x20] sm:$0xff] }
0x12a7   :  { %v3388_v44 = vpop.permute.xlu1 %3387 }
0x12a8   :  { %v3394_v34 = vmul.f32 %v3388_v44, %v6717_v14  ;;  %v2974_v48 = vpop.permute.xlu0 %2973 }
0x12a9   :  { %2754 = vrot.lane.b32.xlu1 %v2616_v38, %s5297_s23  ;;  %v2977_v38 = vmul.f32 %v2974_v48, %v6699_v35 }
0x12aa   :  { %v3396_v57 = vadd.f32 %v3394_v34, %v3384_v5  ;;  %v4450_v34 = vld [vmem:[%s7758_s4 + $0x28] sm:$0xff] }
0x12ab   :  { %v4893_v5 = vpack.c.bf16 %v4450_v34, %v4449_v21 }
0x12ac   :  { %v2710_v61 = vpop.permute.xlu1 %2709  ;;  %v3408_v0 = vadd.f32 %v3406_v13, %v3396_v57  ;;  %v3260_v39 = vpop.permute.xlu0 %3259 }
0x12ad   :  { %3018 = vrot.lane.b32.xlu1 %v2880_v10, %s5297_s23  ;;  %v2713_v26 = vmul.f32 %v2710_v61, %v6699_v35  ;;  %v4451_v61 = vld [vmem:[%s7758_s4 + $0x30] sm:$0xff]  ;;  %4894 = vmatprep.subr.bf16.mxu1 %v4893_v5 }
0x12ae   :  { %4896 = vmatpush3.bf16.msra.mxu1 %v4893_v5 }
0x12b1   :  { %v2720_v53 = vpop.permute.xlu1 %2719  ;;  %3282 = vrot.lane.b32.xlu1 %v3144_v47, %s5297_s23  ;;  %v4897_v47 = vpack.c.bf16 %v4452_v52, %v4451_v61 }
0x12b2   :  { %v2723_v49 = vmul.f32 %v2720_v53, %v6707_v42 }
0x12b3   :  { %4898 = vmatprep.subr.bf16.mxu1 %v4897_v47 }
0x12b4   :  { %v2725_v9 = vadd.f32 %v2723_v49, %v2713_v26  ;;  %v3263_v49 = vmul.f32 %v3260_v39, %v6715_v25  ;;  %4900 = vmatpush3.bf16.msra.mxu1 %v4897_v47 }
0x12b5   :  { %3546 = vrot.lane.b32.xlu1 %v3408_v0, %s5297_s23  ;;  %v3272_v0 = vpop.permute.xlu0 %3271 }
0x12b6   :  { %v2732_v18 = vpop.permute.xlu1 %2731 }
0x12b7   :  { %v2735_v7 = vmul.f32 %v2732_v18, %v6715_v25  ;;  %v3275_v18 = vmul.f32 %v3272_v0, %v6723_v63 }
0x12b9   :  { %v2737_v2 = vadd.f32 %v2735_v7, %v2725_v9 }
0x12bb   :  { %v2749_v29 = vadd.f32 %v2747_v36, %v2737_v2  ;;  %v2984_v55 = vpop.permute.xlu1 %2983 }
0x12bc   :  { %v2987_v6 = vmul.f32 %v2984_v55, %v6707_v42 }
0x12bd   :  { %2764 = vrot.lane.b32.xlu0 %v2749_v29, %s5297_s23 }
0x12be   :  { %v2989_v44 = vadd.f32 %v2987_v6, %v2977_v38 }
0x12c0   :  { %v2996_v30 = vpop.permute.xlu1 %2995 }
0x12c1   :  { %v2999_v23 = vmul.f32 %v2996_v30, %v6715_v25 }
0x12c3   :  { %v3001_v12 = vadd.f32 %v2999_v23, %v2989_v44 }
0x12c5   :  { %v3008_v3 = vpop.permute.xlu1 %3007 }
0x12c6   :  { %v3011_v15 = vmul.f32 %v3008_v3, %v6723_v63 }
0x12c8   :  { %v3013_v10 = vadd.f32 %v3011_v15, %v3001_v12  ;;  %v3502_v15 = vpop.permute.xlu0 %3501 }
0x12ca   :  { %v3238_v22 = vpop.permute.xlu1 %3237  ;;  %3028 = vrot.lane.b32.xlu0 %v3013_v10, %s5297_s23 }
0x12cb   :  { %v3241_v13 = vmul.f32 %v3238_v22, %v6699_v35 }
0x12cc   :  { %v2992_v22 = vpop.permute.xlu0 %2991 }
0x12cd   :  { %v2998_v61 = vmul.f32 %v2992_v22, %v6717_v14  ;;  %v3383_v22 = vmul.f32 %v7377_v17, %v6707_v42 }
0x12cf   :  { %v3248_v57 = vpop.permute.xlu1 %3247 }
0x12d0   :  { %v3251_v53 = vmul.f32 %v3248_v57, %v6707_v42  ;;  %v3268_v0 = vpop.permute.xlu0 %3267 }
0x12d2   :  { %v3253_v26 = vadd.f32 %v3251_v53, %v3241_v13 }
0x12d3   :  { %v3512_v32 = vpop.permute.xlu1 %3511 }
0x12d4   :  { %v3265_v9 = vadd.f32 %v3263_v49, %v3253_v26 }
0x12d6   :  { %v3277_v7 = vadd.f32 %v3275_v18, %v3265_v9  ;;  %v3497_v18 = vpop.permute.xlu0 %3496 }
0x12d8   :  { %v3524_v36 = vpop.permute.xlu1 %3523  ;;  %3292 = vrot.lane.b32.xlu0 %v3277_v7, %s5297_s23 }
0x12dd   :  { %v2705_v2 = vpop.permute.xlu1 %2704 }
0x12de   :  { %v2712_v6 = vmul.f32 %v2705_v2, %v6701_v27 }
0x12e2   :  { %v2716_v29 = vpop.permute.xlu1 %2715 }
0x12e3   :  { %v2722_v55 = vmul.f32 %v2716_v29, %v6709_v51 }
0x12e5   :  { %v2724_v38 = vadd.f32 %v2722_v55, %v2712_v6  ;;  %v3274_v55 = vmul.f32 %v3268_v0, %v6725_v24  ;;  %v3520_v6 = vpop.permute.xlu0 %3519 }
0x12e7   :  { %v2728_v48 = vpop.permute.xlu1 %2727 }
0x12e8   :  { %v2734_v30 = vmul.f32 %v2728_v48, %v6717_v14 }
0x12ea   :  { %v2736_v44 = vadd.f32 %v2734_v30, %v2724_v38 }
0x12ec   :  { %v2740_v23 = vpop.permute.xlu1 %2739 }
0x12ed   :  { %v2746_v3 = vmul.f32 %v2740_v23, %v6725_v24  ;;  %v3504_v23 = vmul.f32 %v3497_v18, %v6701_v27 }
0x12ef   :  { %v2748_v12 = vadd.f32 %v2746_v3, %v2736_v44  ;;  %v3515_v3 = vmul.f32 %v3512_v32, %v6707_v42 }
0x12f1   :  { %v2969_v10 = vpop.permute.xlu1 %2968  ;;  %2762 = vrot.lane.b32.xlu0 %v2748_v12, %s5297_s23  ;;  %v3526_v12 = vmul.f32 %v3520_v6, %v6717_v14 }
0x12f2   :  { %v2976_v21 = vmul.f32 %v2969_v10, %v6701_v27 }
0x12f6   :  { %v2980_v39 = vpop.permute.xlu1 %2979 }
0x12f7   :  { %v2986_v34 = vmul.f32 %v2980_v39, %v6709_v51  ;;  %v3505_v39 = vmul.f32 %v3502_v15, %v6699_v35 }
0x12f9   :  { %v2988_v5 = vadd.f32 %v2986_v34, %v2976_v21  ;;  %v3527_v21 = vmul.f32 %v3524_v36, %v6715_v25  ;;  %v3517_v32 = vadd.f32 %v3515_v3, %v3505_v39 }
0x12fb   :  { %v3004_v52 = vpop.permute.xlu1 %3003  ;;  %v3000_v47 = vadd.f32 %v2998_v61, %v2988_v5 }
0x12fc   :  { %v3010_v57 = vmul.f32 %v3004_v52, %v6725_v24 }
0x12fe   :  { %v3012_v13 = vadd.f32 %v3010_v57, %v3000_v47  ;;  %v3529_v47 = vadd.f32 %v3527_v21, %v3517_v32  ;;  %v2750_v21 = vadd.f32 %v7365_v19, %v7268_v45 }
0x1300   :  { %v3233_v53 = vpop.permute.xlu1 %3232  ;;  %3026 = vrot.lane.b32.xlu0 %v3012_v13, %s5297_s23 }
0x1301   :  { %v3240_v9 = vmul.f32 %v3233_v53, %v6701_v27  ;;  %v3373_v27 = vmul.f32 %v7373_v8, %v6699_v35  ;;  %v3278_v53 = vadd.f32 %v7325_v46, %v7264_v62 }
0x1303   :  { %v3385_v52 = vadd.f32 %v3383_v22, %v3373_v27 }
0x1305   :  { %v3244_v49 = vpop.permute.xlu1 %3243 }
0x1306   :  { %v3250_v26 = vmul.f32 %v3244_v49, %v6709_v51 }
0x1308   :  { %v3252_v2 = vadd.f32 %v3250_v26, %v3240_v9 }
0x130a   :  { %v3256_v7 = vpop.permute.xlu1 %3255 }
0x130b   :  { %v3262_v29 = vmul.f32 %v3256_v7, %v6717_v14  ;;  %v3536_v14 = vpop.permute.xlu0 %3535 }
0x130c   :  { %v3539_v15 = vmul.f32 %v3536_v14, %v6723_v63 }
0x130d   :  { %v3264_v48 = vadd.f32 %v3262_v29, %v3252_v2 }
0x130e   :  { %v3541_v13 = vadd.f32 %v3539_v15, %v3529_v47 }
0x130f   :  { %v3276_v30 = vadd.f32 %v3274_v55, %v3264_v48  ;;  %v3508_v38 = vpop.permute.xlu1 %3507 }
0x1310   :  { %v3514_v44 = vmul.f32 %v3508_v38, %v6709_v51  ;;  %v3395_v51 = vmul.f32 %v7381_v56, %v6715_v25  ;;  %v3014_v25 = vadd.f32 %v7318_v33, %v7254_v41  ;;  %v3298_v41 = vmul.f32 0.5, %v3278_v53 }
0x1311   :  { %3290 = vrot.lane.b32.xlu0 %v3276_v30, %s5297_s23 }
0x1312   :  { %v3516_v10 = vadd.f32 %v3514_v44, %v3504_v23  ;;  %v3397_v17 = vadd.f32 %v3395_v51, %v3385_v52  ;;  %v3034_v8 = vmul.f32 0.5, %v3014_v25  ;;  %v2770_v51 = vmul.f32 0.5, %v2750_v21 }
0x1314   :  { %v3532_v34 = vpop.permute.xlu1 %3531  ;;  %v3528_v61 = vadd.f32 %v3526_v12, %v3516_v10 }
0x1315   :  { %v3538_v5 = vmul.f32 %v3532_v34, %v6725_v24  ;;  %v3015_v24 = vadd.f32 %v7293_v11, %v7226_v54  ;;  %v3542_v54 = vadd.f32 %v7332_v50, %v7278_v59  ;;  %v3543_v11 = vadd.f32 %v7311_v60, %v7250_v58 }
0x1316   :  { %v2751_v34 = vadd.f32 %v7285_v28, %v7179_v16  ;;  %v4461_v16 = vld [vmem:[%s7757_s7 + $0xc] ss:$0 sm:$0xff] }
0x1317   :  { %v3540_v57 = vadd.f32 %v3538_v5, %v3528_v61  ;;  %v3035_v56 = vmul.f32 0.5, %v3015_v24  ;;  %v3562_v62 = vmul.f32 0.5, %v3542_v54  ;;  %v3563_v46 = vmul.f32 0.5, %v3543_v11 }
0x1318   :  { %v3404_v42 = vpop.permute.xlu1 %3403  ;;  %v2771_v32 = vmul.f32 0.5, %v2751_v34 }
0x1319   :  { %v3407_v36 = vmul.f32 %v3404_v42, %v6723_v63  ;;  %3554 = vrot.lane.b32.xlu0 %v3540_v57, %s5297_s23  ;;  %v3279_v63 = vadd.f32 %v7300_v4, %v7236_v31 }
0x131b   :  { %v3409_v35 = vadd.f32 %v3407_v36, %v3397_v17  ;;  %v3299_v33 = vmul.f32 0.5, %v3279_v63 }
0x131c   :  { %v2757_v31 = vpop.permute.xlu1 %2756 }
0x131d   :  { %3548 = vrot.lane.b32.xlu1 %v3409_v35, %s5297_s23  ;;  %3556 = vrot.lane.b32.xlu0 %v3541_v13, %s5297_s23 }
0x1320   :  { %v3021_v4 = vpop.permute.xlu1 %3020 }
0x1321   :  { %3566 = vrot.lane.b32.xlu1 %v3034_v8, %s5298_s15  ;;  %3568 = vrot.lane.b32.xlu0 %v3035_v56, %s5298_s15 }
0x1324   :  { %v3285_v26 = vpop.permute.xlu1 %3284 }
0x1325   :  { %3574 = vrot.lane.b32.xlu1 %v3298_v41, %s5299_s3  ;;  %3576 = vrot.lane.b32.xlu0 %v3299_v33, %s5299_s3 }
0x1328   :  { %v2755_v59 = vpop.permute.xlu1 %2754 }
0x1329   :  { %3582 = vrot.lane.b32.xlu1 %v3562_v62, %s5300_s2  ;;  %3584 = vrot.lane.b32.xlu0 %v3563_v46, %s5300_s2 }
0x132c   :  { %v3019_v9 = vpop.permute.xlu1 %3018 }
0x132f   :  { %v2765_v0 = vpop.permute.xlu0 %2764 }
0x1330   :  { %v2769_v60 = vsel %vm470_vm2, %v2757_v31, %v2765_v0  ;;  %v3283_v55 = vpop.permute.xlu1 %3282 }
0x1334   :  { %v3547_v38 = vpop.permute.xlu1 %3546 }
0x133c   :  { %v3029_v49 = vpop.permute.xlu0 %3028 }
0x133d   :  { %v3033_v29 = vsel %vm470_vm2, %v3021_v4, %v3029_v49 }
0x134a   :  { %v3293_v18 = vpop.permute.xlu0 %3292 }
0x134b   :  { %v3297_v30 = vsel %vm470_vm2, %v3285_v26, %v3293_v18  ;;  %v7799_v26 = vld [vmem:[#allocation3_spill] sm:$0xff] }
0x1363   :  { %v2763_v50 = vpop.permute.xlu0 %2762 }
0x1364   :  { %v2768_v58 = vsel %vm470_vm2, %v2755_v59, %v2763_v50 }
0x1365   :  { %4762 = vmatprep.mubr.msk.f32.mxu1 %vm191_vm1, %v2768_v58 }
0x1366   :  { %4763 = vmatmul.mubr.msk.f32.vlgmr.msra.gmra.mrb[24].mxu1 %vm191_vm1, %v2769_v60 }
0x1372   :  { %v3027_v7 = vpop.permute.xlu0 %3026 }
0x1373   :  { %v3032_v2 = vsel %vm470_vm2, %v3019_v9, %v3027_v7 }
0x1374   :  { %4765 = vmatprep.mubr.msk.f32.mxu1 %vm191_vm1, %v3032_v2 }
0x1375   :  { %4766 = vmatmul.mubr.msk.f32.gmra.mrb[26].mxu1 %vm191_vm1, %v3033_v29 }
0x1383   :  { %v3291_v48 = vpop.permute.xlu0 %3290 }
0x1384   :  { %v3296_v6 = vsel %vm470_vm2, %v3283_v55, %v3291_v48 }
0x1385   :  { %4768 = vmatprep.mubr.msk.f32.mxu1 %vm191_vm1, %v3296_v6 }
0x1386   :  { %4769 = vmatmul.mubr.msk.f32.gmra.mrb[28].mxu1 %vm191_vm1, %v3297_v30 }
0x138b   :  { %v3555_v23 = vpop.permute.xlu0 %3554 }
0x138c   :  { %v3560_v44 = vsel %vm470_vm2, %v3547_v38, %v3555_v23 }
0x138d   :  { %4771 = vmatprep.mubr.msk.f32.mxu1 %vm191_vm1, %v3560_v44 }
0x138f   :  { %v3549_v3 = vpop.permute.xlu1 %3548  ;;  %v3557_v12 = vpop.permute.xlu0 %3556 }
0x1390   :  { %v3561_v10 = vsel %vm470_vm2, %v3549_v3, %v3557_v12 }
0x1391   :  { %4772 = vmatmul.mubr.msk.f32.gmra.mrb[30].mxu1 %vm191_vm1, %v3561_v10 }
0x1393   :  { %v3567_v22 = vpop.permute.xlu1 %3566  ;;  %v3569_v39 = vpop.permute.xlu0 %3568 }
0x1394   :  { %v3588_v5 = vsel %vm534_vm6, %v2770_v51, %v3567_v22  ;;  %v3589_v14 = vsel %vm534_vm6, %v2771_v32, %v3569_v39 }
0x1397   :  { %v3575_v61 = vpop.permute.xlu1 %3574  ;;  %v3577_v27 = vpop.permute.xlu0 %3576 }
0x1398   :  { %v3590_v52 = vsel %vm1577_vm9, %v3588_v5, %v3575_v61  ;;  %v3591_v47 = vsel %vm1577_vm9, %v3589_v14, %v3577_v27 }
0x139b   :  { %v3583_v57 = vpop.permute.xlu1 %3582  ;;  %v3585_v42 = vpop.permute.xlu0 %3584 }
0x139c   :  { %v3592_v17 = vsel %vm1580_vm8, %v3590_v52, %v3583_v57  ;;  %v3593_v45 = vsel %vm1580_vm8, %v3591_v47, %v3585_v42  ;;  %v4464_v42 = vld [vmem:[%s7759_s5 + $0x20] sm:$0xff] }
0x139d   :  { %4447 = vst.msk [vmem:[%s7761_s11 + $0x10] sm:$0xff] %vm470_vm2, %v3592_v17  ;;  %4448 = vst.msk [vmem:[%s7761_s11 + $0x18] sm:$0xff] %vm470_vm2, %v3593_v45  ;;  %v4465_v17 = vld [vmem:[%s7759_s5 + $0x28] sm:$0xff] }
0x1439   :  { %v4764_v28 = vpop.f32.mrb[24].mxu1 }
0x143a   :  { %v3732_v19 = vadd.f32 %v4764_v28, %v6520_v40  ;;  %v3692_v15 = vpop.f32.mrb[25].mxu1 }
0x143b   :  { %v3731_v36 = vadd.f32 %v3692_v15, %v6522_v1 }
0x143c   :  { %v7554_v13 = vadd.f32 %v4461_v16, %v3732_v19 }
0x143d   :  { %v7556_v35 = vadd.f32 %v4461_v16, %v3731_v36  ;;  %v4466_v36 = vld [vmem:[%s7759_s5 + $0x30] sm:$0xff] }
0x143e   :  { %v3754_v25 = vsel %vm191_vm1, %v7554_v13, 0.0 }
0x143f   :  { %3755 = vadd.xlane.f32.xlu0 %v3754_v25  ;;  %v3751_v24 = vsel %vm191_vm1, %v7556_v35, 0.0  ;;  %v4467_v25 = vld [vmem:[%s7759_s5 + $0x38] sm:$0xff] }
0x1440   :  { %3752 = vadd.xlane.f32.xlu1 %v3751_v24 }
0x1448   :  { %v4767_v8 = vpop.f32.mrb[26].mxu1 }
0x1449   :  { %v3734_v56 = vadd.f32 %v4767_v8, %v6530_v20  ;;  %v3702_v53 = vpop.f32.mrb[27].mxu1  ;;  %v7798_v20 = vld [vmem:[#allocation2_spill] sm:$0xff]  ;;  %v4905_v8 = vpack.c.bf16 %v4467_v25, %v4466_v36 }
0x144a   :  { %v3733_v40 = vadd.f32 %v3702_v53, %v6532_v37 }
0x144b   :  { %v7564_v63 = vadd.f32 %v4461_v16, %v3734_v56 }
0x144c   :  { %v7566_v1 = vadd.f32 %v4461_v16, %v3733_v40 }
0x144d   :  { %v3760_v41 = vsel %vm191_vm1, %v7564_v63, 0.0 }
0x144e   :  { %3761 = vadd.xlane.f32.xlu1 %v3760_v41  ;;  %v3757_v33 = vsel %vm191_vm1, %v7566_v1, 0.0 }
0x144f   :  { %3758 = vadd.xlane.f32.xlu0 %v3757_v33 }
0x1459   :  { %v4770_v54 = vpop.f32.mrb[28].mxu1 }
0x145a   :  { %v3736_v11 = vadd.f32 %v4770_v54, %v6540_v43  ;;  %v3712_v62 = vpop.f32.mrb[29].mxu1  ;;  %v7800_v43 = vld [vmem:[#allocation4_spill] sm:$0xff] }
0x145b   :  { %v3735_v46 = vadd.f32 %v3712_v62, %v7798_v20 }
0x145c   :  { %v7574_v31 = vadd.f32 %v4461_v16, %v3736_v11 }
0x145d   :  { %v7576_v37 = vadd.f32 %v4461_v16, %v3735_v46 }
0x145e   :  { %v3766_v4 = vsel %vm191_vm1, %v7574_v31, 0.0 }
0x145f   :  { %3767 = vadd.xlane.f32.xlu1 %v3766_v4  ;;  %v3763_v0 = vsel %vm191_vm1, %v7576_v37, 0.0 }
0x1460   :  { %3764 = vadd.xlane.f32.xlu0 %v3763_v0 }
0x1464   :  { %v4773_v49 = vpop.f32.mrb[30].mxu1 }
0x1465   :  { %v3738_v18 = vadd.f32 %v4773_v49, %v7799_v26  ;;  %v3722_v59 = vpop.f32.mrb[31].mxu1 }
0x1466   :  { %v3737_v50 = vadd.f32 %v3722_v59, %v7800_v43 }
0x1467   :  { %v7584_v58 = vadd.f32 %v4461_v16, %v3738_v18 }
0x1468   :  { %v7586_v60 = vadd.f32 %v4461_v16, %v3737_v50  ;;  %v4901_v16 = vpack.c.bf16 %v4465_v17, %v4464_v42  ;;  %v4462_v50 = vld [vmem:[%s7757_s7 + $0xa] ss:$0 sm:$0xff] }
0x1469   :  { %v3772_v9 = vsel %vm191_vm1, %v7584_v58, 0.0 }
0x146a   :  { %3773 = vadd.xlane.f32.xlu1 %v3772_v9  ;;  %v3769_v7 = vsel %vm191_vm1, %v7586_v60, 0.0  ;;  %4902 = vmatprep.subr.bf16.mxu0 %v4901_v16 }
0x146b   :  { %3770 = vadd.xlane.f32.xlu0 %v3769_v7  ;;  %4904 = vmatpush3.bf16.msra.mxu0 %v4901_v16 }
0x146c   :  { %4906 = vmatprep.subr.bf16.mxu0 %v4905_v8 }
0x146f   :  { %4908 = vmatpush3.bf16.msra.mxu0 %v4905_v8 }
0x14cc   :  { %v3756_v2 = vpop.xlane.xlu0 %3755 }
0x14cd   :  { %v3776_v29 = vmul.f32 0.03125, %v3756_v2  ;;  %v3753_v55 = vpop.xlane.xlu1 %3752 }
0x14ce   :  { %v3775_v48 = vmul.f32 0.03125, %v3753_v55 }
0x14cf   :  { %v7593_v6 = vsub.f32 %v7554_v13, %v3776_v29 }
0x14d0   :  { %v7596_v30 = vsub.f32 %v7556_v35, %v3775_v48 }
0x14d1   :  { %v3792_v38 = vmul.f32 %v7593_v6, %v7593_v6 }
0x14d2   :  { %v3791_v23 = vmul.f32 %v7596_v30, %v7596_v30 }
0x14d3   :  { %v3802_v44 = vsel %vm191_vm1, %v3792_v38, 0.0 }
0x14d4   :  { %3803 = vadd.xlane.f32.xlu1 %v3802_v44  ;;  %v3799_v3 = vsel %vm191_vm1, %v3791_v23, 0.0  ;;  %v4463_v23 = vld [vmem:[%s7757_s7 + $0xb] ss:$0 sm:$0xff] }
0x14d5   :  { %3800 = vadd.xlane.f32.xlu0 %v3799_v3 }
0x14db   :  { %v3762_v12 = vpop.xlane.xlu1 %3761 }
0x14dc   :  { %v3778_v10 = vmul.f32 0.03125, %v3762_v12  ;;  %v3759_v22 = vpop.xlane.xlu0 %3758 }
0x14dd   :  { %v3777_v39 = vmul.f32 0.03125, %v3759_v22 }
0x14de   :  { %v7605_v21 = vsub.f32 %v7564_v63, %v3778_v10 }
0x14df   :  { %v7608_v34 = vsub.f32 %v7566_v1, %v3777_v39 }
0x14e0   :  { %v3794_v61 = vmul.f32 %v7605_v21, %v7605_v21 }
0x14e1   :  { %v3793_v27 = vmul.f32 %v7608_v34, %v7608_v34 }
0x14e2   :  { %v3808_v51 = vsel %vm191_vm1, %v3794_v61, 0.0 }
0x14e3   :  { %3809 = vadd.xlane.f32.xlu1 %v3808_v51  ;;  %v3805_v32 = vsel %vm191_vm1, %v3793_v27, 0.0 }
0x14e4   :  { %3806 = vadd.xlane.f32.xlu0 %v3805_v32 }
0x14ec   :  { %v3768_v5 = vpop.xlane.xlu1 %3767 }
0x14ed   :  { %v3780_v14 = vmul.f32 0.03125, %v3768_v5  ;;  %v3765_v52 = vpop.xlane.xlu0 %3764 }
0x14ee   :  { %v3779_v47 = vmul.f32 0.03125, %v3765_v52 }
0x14ef   :  { %v7617_v57 = vsub.f32 %v7574_v31, %v3780_v14 }
0x14f0   :  { %v7626_v45 = vsub.f32 %v7576_v37, %v3779_v47 }
0x14f1   :  { %v3796_v28 = vmul.f32 %v7617_v57, %v7617_v57 }
0x14f2   :  { %v3795_v19 = vmul.f32 %v7626_v45, %v7626_v45 }
0x14f3   :  { %v3814_v15 = vsel %vm191_vm1, %v3796_v28, 0.0 }
0x14f4   :  { %3815 = vadd.xlane.f32.xlu1 %v3814_v15  ;;  %v3811_v24 = vsel %vm191_vm1, %v3795_v19, 0.0 }
0x14f5   :  { %3812 = vadd.xlane.f32.xlu0 %v3811_v24 }
0x14f7   :  { %v3774_v56 = vpop.xlane.xlu1 %3773 }
0x14f8   :  { %v3782_v53 = vmul.f32 0.03125, %v3774_v56  ;;  %v3771_v40 = vpop.xlane.xlu0 %3770 }
0x14f9   :  { %v3781_v41 = vmul.f32 0.03125, %v3771_v40 }
0x14fa   :  { %v7641_v33 = vsub.f32 %v7584_v58, %v3782_v53 }
0x14fb   :  { %v7644_v54 = vsub.f32 %v7586_v60, %v3781_v41 }
0x14fc   :  { %v3798_v11 = vmul.f32 %v7641_v33, %v7641_v33 }
0x14fd   :  { %v3797_v62 = vmul.f32 %v7644_v54, %v7644_v54 }
0x14fe   :  { %v3820_v20 = vsel %vm191_vm1, %v3798_v11, 0.0 }
0x14ff   :  { %3821 = vadd.xlane.f32.xlu1 %v3820_v20  ;;  %v3817_v46 = vsel %vm191_vm1, %v3797_v62, 0.0 }
0x1500   :  { %3818 = vadd.xlane.f32.xlu0 %v3817_v46 }
0x1561   :  { %v3804_v4 = vpop.xlane.xlu1 %3803 }
0x1562   :  { %v3824_v0 = vmul.f32 0.03125, %v3804_v4  ;;  %v3801_v49 = vpop.xlane.xlu0 %3800 }
0x1563   :  { %v3823_v26 = vmul.f32 0.03125, %v3801_v49 }
0x1564   :  { %v3832_v18 = vadd.f32 1e-05, %v3824_v0 }
0x1565   :  { %v3831_v59 = vadd.f32 1e-05, %v3823_v26 }
0x1566   :  { %5255 = vrsqrt.f32 %v3832_v18 }
0x1567   :  { %5257 = vrsqrt.f32 %v3831_v59  ;;  %v4478_v59 = vld [vmem:[%s7760_s6 + $0x48] sm:$0xff] }
0x1570   :  { %v5256_v43 = vpop.eup %5255  ;;  %v3810_v9 = vpop.xlane.xlu1 %3809 }
0x1571   :  { %v5258_v7 = vpop.eup %5257  ;;  %v3848_v2 = vmul.f32 %v5256_v43, %v7593_v6  ;;  %v3826_v29 = vmul.f32 0.03125, %v3810_v9  ;;  %v3807_v55 = vpop.xlane.xlu0 %3806  ;;  %v4481_v9 = vld [vmem:[%s7760_s6 + $0x60] sm:$0xff] }
0x1572   :  { %v3825_v48 = vmul.f32 0.03125, %v3807_v55  ;;  %v3847_v38 = vmul.f32 %v5258_v7, %v7596_v30  ;;  %v4482_v7 = vld [vmem:[%s7760_s6 + $0x68] sm:$0xff]  ;;  %v4484_v55 = vld [vmem:[%s7760_s6 + $0x78] sm:$0xff] }
0x1573   :  { %v3860_v44 = vmul.f32 %v4462_v50, %v3848_v2  ;;  %v3834_v3 = vadd.f32 1e-05, %v3826_v29  ;;  %v4917_v2 = vpack.c.bf16 %v4482_v7, %v4481_v9  ;;  %v4483_v29 = vld [vmem:[%s7760_s6 + $0x70] sm:$0xff] }
0x1574   :  { %v3833_v12 = vadd.f32 1e-05, %v3825_v48  ;;  %v3859_v10 = vmul.f32 %v4462_v50, %v3847_v38  ;;  %v4921_v48 = vpack.c.bf16 %v4484_v55, %v4483_v29  ;;  %v4468_v38 = vld [vmem:[%s7757_s7 + $0xe] ss:$0 sm:$0xff] }
0x1575   :  { %5259 = vrsqrt.f32 %v3834_v3  ;;  %v3872_v39 = vadd.f32 %v4463_v23, %v3860_v44 }
0x1576   :  { %5261 = vrsqrt.f32 %v3833_v12  ;;  %v3871_v22 = vadd.f32 %v4463_v23, %v3859_v10 }
0x1578   :  { %4782 = vmatprep.mubr.msk.f32.mxu0 %vm191_vm1, %v3871_v22 }
0x1579   :  { %4783 = vmatmul.mubr.msk.f32.vlgmr.msra.gmra.mrb[24].mxu0 %vm191_vm1, %v3872_v39 }
0x157f   :  { %v5260_v6 = vpop.eup %5259 }
0x1580   :  { %v5262_v61 = vpop.eup %5261  ;;  %v3850_v30 = vmul.f32 %v5260_v6, %v7605_v21 }
0x1581   :  { %v3816_v27 = vpop.xlane.xlu1 %3815  ;;  %v3849_v51 = vmul.f32 %v5262_v61, %v7608_v34 }
0x1582   :  { %v3828_v32 = vmul.f32 0.03125, %v3816_v27  ;;  %v3813_v5 = vpop.xlane.xlu0 %3812  ;;  %v3862_v14 = vmul.f32 %v4462_v50, %v3850_v30 }
0x1583   :  { %v3827_v52 = vmul.f32 0.03125, %v3813_v5  ;;  %v3861_v47 = vmul.f32 %v4462_v50, %v3849_v51 }
0x1584   :  { %v3836_v42 = vadd.f32 1e-05, %v3828_v32  ;;  %v3874_v28 = vadd.f32 %v4463_v23, %v3862_v14 }
0x1585   :  { %v3835_v17 = vadd.f32 1e-05, %v3827_v52  ;;  %v3873_v16 = vadd.f32 %v4463_v23, %v3861_v47 }
0x1586   :  { %5263 = vrsqrt.f32 %v3836_v42 }
0x1587   :  { %5265 = vrsqrt.f32 %v3835_v17  ;;  %4785 = vmatprep.mubr.msk.f32.mxu0 %vm191_vm1, %v3873_v16 }
0x1588   :  { %4786 = vmatmul.mubr.msk.f32.gmra.mrb[26].mxu0 %vm191_vm1, %v3874_v28 }
0x158c   :  { %v3822_v19 = vpop.xlane.xlu1 %3821 }
0x158d   :  { %v3830_v21 = vmul.f32 0.03125, %v3822_v19  ;;  %v3819_v15 = vpop.xlane.xlu0 %3818 }
0x158e   :  { %v3829_v36 = vmul.f32 0.03125, %v3819_v15 }
0x158f   :  { %v3838_v34 = vadd.f32 1e-05, %v3830_v21 }
0x1590   :  { %v5264_v25 = vpop.eup %5263  ;;  %v3837_v24 = vadd.f32 1e-05, %v3829_v36 }
0x1591   :  { %v5266_v8 = vpop.eup %5265  ;;  %5267 = vrsqrt.f32 %v3838_v34  ;;  %v3852_v56 = vmul.f32 %v5264_v25, %v7617_v57 }
0x1592   :  { %5269 = vrsqrt.f32 %v3837_v24  ;;  %v3851_v53 = vmul.f32 %v5266_v8, %v7626_v45  ;;  %v4477_v45 = vld [vmem:[%s7760_s6 + $0x40] sm:$0xff] }
0x1593   :  { %v3864_v40 = vmul.f32 %v4462_v50, %v3852_v56  ;;  %v4909_v43 = vpack.c.bf16 %v4478_v59, %v4477_v45 }
0x1594   :  { %v3863_v41 = vmul.f32 %v4462_v50, %v3851_v53 }
0x1595   :  { %v3876_v62 = vadd.f32 %v4463_v23, %v3864_v40  ;;  %4910 = vmatprep.subr.bf16.mxu1 %v4909_v43 }
0x1596   :  { %v3875_v11 = vadd.f32 %v4463_v23, %v3863_v41  ;;  %4912 = vmatpush3.bf16.msra.mxu1 %v4909_v43 }
0x1598   :  { %4788 = vmatprep.mubr.msk.f32.mxu0 %vm191_vm1, %v3875_v11 }
0x1599   :  { %4789 = vmatmul.mubr.msk.f32.gmra.mrb[28].mxu0 %vm191_vm1, %v3876_v62 }
0x159b   :  { %v5268_v20 = vpop.eup %5267 }
0x159c   :  { %v5270_v46 = vpop.eup %5269  ;;  %v3854_v4 = vmul.f32 %v5268_v20, %v7641_v33  ;;  %v4479_v33 = vld [vmem:[%s7760_s6 + $0x50] sm:$0xff] }
0x159d   :  { %v3853_v0 = vmul.f32 %v5270_v46, %v7644_v54  ;;  %v4480_v54 = vld [vmem:[%s7760_s6 + $0x58] sm:$0xff] }
0x159e   :  { %v3866_v49 = vmul.f32 %v4462_v50, %v3854_v4 }
0x159f   :  { %v3865_v26 = vmul.f32 %v4462_v50, %v3853_v0  ;;  %v4913_v50 = vpack.c.bf16 %v4480_v54, %v4479_v33 }
0x15a0   :  { %v3878_v18 = vadd.f32 %v4463_v23, %v3866_v49 }
0x15a1   :  { %v3877_v57 = vadd.f32 %v4463_v23, %v3865_v26  ;;  %4914 = vmatprep.subr.bf16.mxu1 %v4913_v50 }
0x15a2   :  { %4916 = vmatpush3.bf16.msra.mxu1 %v4913_v50 }
0x15a3   :  { %4791 = vmatprep.mubr.msk.f32.mxu0 %vm191_vm1, %v3877_v57  ;;  %4918 = vmatprep.subr.bf16.mxu1 %v4917_v2 }
0x15a4   :  { %4792 = vmatmul.mubr.msk.f32.gmra.mrb[30].mxu0 %vm191_vm1, %v3878_v18 }
0x15a6   :  { %4920 = vmatpush3.bf16.msra.mxu1 %v4917_v2 }
0x15a7   :  { %4922 = vmatprep.subr.bf16.mxu1 %v4921_v48 }
0x15aa   :  { %4924 = vmatpush3.bf16.msra.mxu1 %v4921_v48 }
0x164c   :  { %v4784_v23 = vpop.f32.mrb[24].mxu0 }
0x164d   :  { %v3984_v44 = vadd.f32 %v4784_v23, %v4468_v38  ;;  %v3978_v3 = vpop.f32.mrb[25].mxu0  ;;  %v4265_v23 = vld [vmem:[%s7762_s8] sm:$0xff] }
0x164e   :  { %v3979_v12 = vadd.f32 %v4468_v38, %v3978_v3 }
0x164f   :  { %v4026_v10 = vmul.f32 0.70710677, %v3984_v44  ;;  %v4018_v52 = vmul.f32 0.5, %v3984_v44  ;;  %v4266_v44 = vld [vmem:[%s7762_s8 + $0x8] sm:$0xff] }
0x1650   :  { %v4025_v22 = vmul.f32 0.70710677, %v3979_v12  ;;  %v4017_v32 = vmul.f32 0.5, %v3979_v12  ;;  %v4926_v3 = vpack.c.bf16 %v4266_v44, %v4265_v23  ;;  %v5301_v12 = vmov 0.0|0.0  }
0x1651   :  { %5271 = verf.f32 %v4026_v10  ;;  %4925 = vmatprep.subr.bf16.mxu0 %v5301_v12  ;;  %v4267_v10 = vld [vmem:[%s7762_s8 + $0x10] sm:$0xff] }
0x1652   :  { %5273 = verf.f32 %v4025_v22  ;;  %4927 = vmatpush3.bf16.msra.mxu0 %v4926_v3  ;;  %v4268_v22 = vld [vmem:[%s7762_s8 + $0x18] sm:$0xff] }
0x1653   :  { %4928 = vmatprep.subr.bf16.mxu0 %v5301_v12 }
0x165b   :  { %v5272_v39 = vpop.eup %5271  ;;  %v4787_v6 = vpop.f32.mrb[26].mxu0 }
0x165c   :  { %v5274_v61 = vpop.eup %5273  ;;  %v4042_v30 = vadd.f32 1.0, %v5272_v39  ;;  %v3994_v27 = vadd.f32 %v4787_v6, %v4468_v38  ;;  %v3988_v51 = vpop.f32.mrb[27].mxu0  ;;  %v4929_v39 = vpack.c.bf16 %v4268_v22, %v4267_v10  ;;  %v5303_v6 = vmov 0.0  }
0x165d   :  { %v4041_v5 = vadd.f32 1.0, %v5274_v61  ;;  %v3989_v14 = vadd.f32 %v4468_v38, %v3988_v51  ;;  %4830 = vmatprep.mubr.msk.f32.mxu0 %vm5302_vm10, %v5303_v6  ;;  %v4493_v61 = vld [vmem:[%s7757_s7 + $0xd] ss:$0 sm:$0xff] }
0x165e   :  { %v4028_v47 = vmul.f32 0.70710677, %v3994_v27  ;;  %v4050_v16 = vmul.f32 %v4042_v30, %v4018_v52  ;;  %v4020_v25 = vmul.f32 0.5, %v3994_v27  ;;  %4930 = vmatpush3.bf16.msra.mxu0 %v4929_v39 }
0x165f   :  { %v4049_v42 = vmul.f32 %v4041_v5, %v4017_v32  ;;  %v4027_v17 = vmul.f32 0.70710677, %v3989_v14  ;;  %v4019_v15 = vmul.f32 0.5, %v3989_v14 }
0x1660   :  { %5275 = verf.f32 %v4028_v47 }
0x1661   :  { %5277 = verf.f32 %v4027_v17  ;;  %4810 = vmatprep.mubr.msk.f32.mxu1 %vm2051_vm7, %v4049_v42 }
0x1662   :  { %4811 = vmatmul.mubr.msk.f32.vlgmr.msra.gmra.mrb[32].mxu1 %vm2051_vm7, %v4050_v16 }
0x166a   :  { %v5276_v28 = vpop.eup %5275 }
0x166b   :  { %v5278_v19 = vpop.eup %5277  ;;  %v4044_v21 = vadd.f32 1.0, %v5276_v28 }
0x166c   :  { %v4043_v36 = vadd.f32 1.0, %v5278_v19  ;;  %v4790_v34 = vpop.f32.mrb[28].mxu0 }
0x166d   :  { %v4004_v24 = vadd.f32 %v4790_v34, %v4468_v38  ;;  %v3998_v8 = vpop.f32.mrb[29].mxu0  ;;  %v4052_v40 = vmul.f32 %v4044_v21, %v4020_v25 }
0x166e   :  { %v4051_v56 = vmul.f32 %v4043_v36, %v4019_v15  ;;  %v3999_v53 = vadd.f32 %v4468_v38, %v3998_v8 }
0x166f   :  { %v4030_v41 = vmul.f32 0.70710677, %v4004_v24  ;;  %v4022_v43 = vmul.f32 0.5, %v4004_v24 }
0x1670   :  { %v4029_v11 = vmul.f32 0.70710677, %v3999_v53  ;;  %4813 = vmatprep.mubr.msk.f32.mxu1 %vm2051_vm7, %v4051_v56  ;;  %v4021_v45 = vmul.f32 0.5, %v3999_v53 }
0x1671   :  { %5279 = verf.f32 %v4030_v41  ;;  %4814 = vmatmul.mubr.msk.f32.gmra.mrb[34].mxu1 %vm2051_vm7, %v4052_v40 }
0x1672   :  { %5281 = verf.f32 %v4029_v11 }
0x1677   :  { %v4793_v62 = vpop.f32.mrb[30].mxu0 }
0x1678   :  { %v4014_v20 = vadd.f32 %v4793_v62, %v4468_v38  ;;  %v4008_v46 = vpop.f32.mrb[31].mxu0 }
0x1679   :  { %v4009_v4 = vadd.f32 %v4468_v38, %v4008_v46 }
0x167a   :  { %v4032_v0 = vmul.f32 0.70710677, %v4014_v20  ;;  %v4024_v55 = vmul.f32 0.5, %v4014_v20 }
0x167b   :  { %v5280_v49 = vpop.eup %5279  ;;  %v4031_v26 = vmul.f32 0.70710677, %v4009_v4  ;;  %v4023_v2 = vmul.f32 0.5, %v4009_v4 }
0x167c   :  { %v5282_v57 = vpop.eup %5281  ;;  %v4046_v18 = vadd.f32 1.0, %v5280_v49  ;;  %5283 = verf.f32 %v4032_v0 }
0x167d   :  { %v4045_v59 = vadd.f32 1.0, %v5282_v57  ;;  %5285 = verf.f32 %v4031_v26 }
0x167e   :  { %v4054_v54 = vmul.f32 %v4046_v18, %v4022_v43 }
0x167f   :  { %v4053_v33 = vmul.f32 %v4045_v59, %v4021_v45 }
0x1681   :  { %4816 = vmatprep.mubr.msk.f32.mxu1 %vm2051_vm7, %v4053_v33 }
0x1682   :  { %4817 = vmatmul.mubr.msk.f32.gmra.mrb[36].mxu1 %vm2051_vm7, %v4054_v54 }
0x1686   :  { %v5284_v50 = vpop.eup %5283 }
0x1687   :  { %v5286_v9 = vpop.eup %5285  ;;  %v4048_v7 = vadd.f32 1.0, %v5284_v50 }
0x1688   :  { %v4047_v29 = vadd.f32 1.0, %v5286_v9 }
0x1689   :  { %v4056_v38 = vmul.f32 %v4048_v7, %v4024_v55 }
0x168a   :  { %v4055_v48 = vmul.f32 %v4047_v29, %v4023_v2 }
0x168c   :  { %4819 = vmatprep.mubr.msk.f32.mxu1 %vm2051_vm7, %v4055_v48 }
0x168d   :  { %4820 = vmatmul.mubr.msk.f32.gmra.mrb[38].mxu1 %vm2051_vm7, %v4056_v38 }
0x1735   :  { %v4812_v30 = vpop.f32.mrb[32].mxu1 }
0x1736   :  { %v4196_v27 = vadd.f32 %v4812_v30, %v7554_v13  ;;  %v4156_v51 = vpop.f32.mrb[33].mxu1 }
0x1737   :  { %v4195_v32 = vadd.f32 %v4156_v51, %v7556_v35 }
0x1738   :  { %v4208_v5 = vadd.f32 %v4493_v61, %v4196_v27 }
0x1739   :  { %v4207_v14 = vadd.f32 %v4493_v61, %v4195_v32 }
0x173a   :  { %v4219_v52 = vsel %vm191_vm1, %v4208_v5, 0.0  ;;  %v4496_v5 = vld [vmem:[%s7763_s9 + $0x1] ss:$0 sm:$0xff] }
0x173b   :  { %v4218_v47 = vsel %vm191_vm1, %v4207_v14, 0.0 }
0x173c   :  { %v4220_v42 = vadd.f32 %v4219_v52, %v4218_v47 }
0x173e   :  { %v4221_v17 = vrot.slane %v4220_v42, 4 }
0x1740   :  { %v4222_v28 = vadd.f32 %v4221_v17, %v4220_v42 }
0x1742   :  { %v4223_v34 = vrot.slane %v4222_v28, 2 }
0x1744   :  { %v4815_v16 = vpop.f32.mrb[34].mxu1  ;;  %v4224_v8 = vadd.f32 %v4223_v34, %v4222_v28 }
0x1745   :  { %v4198_v19 = vadd.f32 %v4815_v16, %v7564_v63  ;;  %v4166_v21 = vpop.f32.mrb[35].mxu1  ;;  %v4497_v16 = vld [vmem:[%s7763_s9 + $0x2] ss:$0 sm:$0xff] }
0x1746   :  { %v4197_v15 = vadd.f32 %v4166_v21, %v7566_v1  ;;  %v4225_v40 = vrot.slane %v4224_v8, 1 }
0x1747   :  { %v4210_v36 = vadd.f32 %v4493_v61, %v4198_v19 }
0x1748   :  { %v4209_v13 = vadd.f32 %v4493_v61, %v4197_v15  ;;  %v4226_v62 = vadd.f32 %v4225_v40, %v4224_v8 }
0x1749   :  { %v4230_v35 = vsel %vm191_vm1, %v4210_v36, 0.0 }
0x174a   :  { %v4229_v25 = vsel %vm191_vm1, %v4209_v13, 0.0  ;;  %v4228_v26 = vmul.f32 0.0625, %v4226_v62 }
0x174b   :  { %v4231_v24 = vadd.f32 %v4230_v35, %v4229_v25 }
0x174d   :  { %v4232_v56 = vrot.slane %v4231_v24, 4 }
0x174f   :  { %v4233_v53 = vadd.f32 %v4232_v56, %v4231_v24 }
0x1751   :  { %v4234_v41 = vrot.slane %v4233_v53, 2 }
0x1753   :  { %v4235_v11 = vadd.f32 %v4234_v41, %v4233_v53 }
0x1755   :  { %v4236_v20 = vrot.slane %v4235_v11, 1  ;;  %v4818_v63 = vpop.f32.mrb[36].mxu1 }
0x1756   :  { %v4200_v46 = vadd.f32 %v4818_v63, %v7574_v31  ;;  %v4176_v1 = vpop.f32.mrb[37].mxu1 }
0x1757   :  { %v4237_v4 = vadd.f32 %v4236_v20, %v4235_v11  ;;  %v4199_v0 = vadd.f32 %v4176_v1, %v7576_v37 }
0x1758   :  { %v4212_v49 = vadd.f32 %v4493_v61, %v4200_v46 }
0x1759   :  { %v4238_v57 = vmul.f32 0.0625, %v4237_v4  ;;  %v4211_v18 = vadd.f32 %v4493_v61, %v4199_v0 }
0x175a   :  { %v4240_v45 = vsel %vm191_vm1, %v4212_v49, 0.0 }
0x175b   :  { %v4239_v59 = vsel %vm191_vm1, %v4211_v18, 0.0  ;;  %v4260_v43 = vsel %vm4259_vm11, %v4228_v26, %v4238_v57 }
0x175c   :  { %v4241_v33 = vadd.f32 %v4240_v45, %v4239_v59 }
0x175e   :  { %v4242_v54 = vrot.slane %v4241_v33, 4 }
0x1760   :  { %v4243_v50 = vadd.f32 %v4242_v54, %v4241_v33  ;;  %v4821_v9 = vpop.f32.mrb[38].mxu1 }
0x1761   :  { %v4202_v31 = vadd.f32 %v4821_v9, %v7584_v58  ;;  %v4186_v7 = vpop.f32.mrb[39].mxu1 }
0x1762   :  { %v4244_v2 = vrot.slane %v4243_v50, 2  ;;  %v4201_v37 = vadd.f32 %v4186_v7, %v7586_v60 }
0x1763   :  { %v4214_v29 = vadd.f32 %v4493_v61, %v4202_v31 }
0x1764   :  { %v4245_v55 = vadd.f32 %v4244_v2, %v4243_v50  ;;  %v4213_v48 = vadd.f32 %v4493_v61, %v4201_v37  ;;  %v4494_v61 = vld [vmem:[%s7763_s9] ss:$0 sm:$0xff] }
0x1765   :  { %v4250_v38 = vsel %vm191_vm1, %v4214_v29, 0.0 }
0x1766   :  { %v4246_v23 = vrot.slane %v4245_v55, 1  ;;  %v4249_v44 = vsel %vm191_vm1, %v4213_v48, 0.0 }
0x1767   :  { %v4251_v3 = vadd.f32 %v4250_v38, %v4249_v44 }
0x1768   :  { %v4247_v12 = vadd.f32 %v4246_v23, %v4245_v55 }
0x1769   :  { %v4252_v10 = vrot.slane %v4251_v3, 4 }
0x176a   :  { %v4248_v22 = vmul.f32 0.0625, %v4247_v12 }
0x176b   :  { %v4253_v39 = vadd.f32 %v4252_v10, %v4251_v3 }
0x176c   :  { %v4262_v6 = vsel %vm4261_vm12, %v4260_v43, %v4248_v22 }
0x176d   :  { %v4254_v58 = vrot.slane %v4253_v39, 2 }
0x176f   :  { %v4255_v30 = vadd.f32 %v4254_v58, %v4253_v39 }
0x1771   :  { %v4256_v27 = vrot.slane %v4255_v30, 1 }
0x1773   :  { %v4257_v51 = vadd.f32 %v4256_v27, %v4255_v30 }
0x1775   :  { %v4258_v60 = vmul.f32 0.0625, %v4257_v51 }
0x1777   :  { %v4264_v32 = vsel %vm4263_vm13, %v4262_v6, %v4258_v60 }
0x1778   :  { %4831 = vmatmul.mubr.msk.f32.vlgmr.msra.gmra.mrb[32].mxu0 %vm191_vm1, %v4264_v32 }
0x184b   :  { %v4342_v14 = vpop.f32.mrb[32].mxu0 }
0x184c   :  { %v4343_v52 = vadd.f32 %v4494_v61, %v4342_v14  ;;  %v4832_v47 = vpop.f32.mrb[33].mxu0 }
0x184e   :  { %v4350_v42 = vmul.f32 %v4496_v5, %v4343_v52 }
0x1850   :  { %v4352_v17 = vsel %vm4351_vm14, %v4350_v42, 0.0 }
0x1851   :  { %4353 = vadd.xlane.f32.xlu0 %v4352_v17 }
0x18de   :  { %v4354_v28 = vpop.xlane.xlu0 %4353 }
0x18df   :  { %v4359_v19 = vadd.f32 %v4497_v16, %v4354_v28 }
0x18e1   :  { %v4498_v21 = vmul.f32 -1.442695, %v4359_v19 }
0x18e3   :  { %5287 = vpow2.f32 %v4498_v21 }
0x18ed   :  { %v5288_v15 = vpop.eup %5287 }
0x18ee   :  { %v4363_v36 = vadd.f32 1.0, %v5288_v15 }
0x18f0   :  { %5289 = vrcp.f32 %v4363_v36 }
0x18fa   :  { %v5290_v13 = vpop.eup %5289 }
0x18fb   :  { %4367 = vst.msk [vmem:[%s7764_s10] sm:$0xf] %vm4366_vm15, %v5290_v13 }

</bundles_post_ra>
